<compile_context>
chip_gen: v7x
topology: tpu7x:2x2x1
jax: 0.10.0
libtpu: 0.0.40
codegen_flags: <defaults>
</compile_context>

<pallas_src>
import jax
import jax.numpy as jnp
from jax import lax
from jax.experimental import pallas as pl
from jax.experimental.pallas import tpu as pltpu

# ------------------------- model hyper-parameters (small) -------------------
N_NODES = 16          # nodes per subgraph
N_EDGES = 48          # directed edges per subgraph
FEAT = 32             # args.gnn_in_features
HID = 16              # args.learner_hid_features
NUM_TASKS = 8         # args.num_tasks
N_LAYERS = 3          # args.backbone_numlayer
TABLE_N = 64          # rows of the (synthetic) node_features table
LEAKY = 0.2           # NodeWeightLearner negative_slope
GEN_T = 1.0           # GENConv softmax temperature t
GEN_EPS = 1e-7        # GENConv message epsilon
BN_EPS = 1e-5         # BatchNorm1d eps

# ------------------------- batching / packing layout ------------------------
P_GRAPHS = 4                      # graphs packed along sublanes per grid step
N_GROUPS = 2                      # grid size ("parallel" axis)
NP = P_GRAPHS * N_NODES           # 64 packed nodes per grid step
EP = P_GRAPHS * N_EDGES           # 192 packed edges per grid step

# wslab ([W_ROWS, FEAT]) sublane layout (all offsets multiples of 8)
ENC_ROWS = TABLE_N + 8            # 72: [table@enc_w1 ; oh_w@enc_w2]
EDGE_OFF = ENC_ROWS               # 72: edge_encoder weight (8 rows)
MLP_OFF = EDGE_OFF + 8            # 80: 3 x [FEAT,FEAT] GENConv MLP (BN folded)
PRED_OFF = MLP_OFF + FEAT * N_LAYERS   # 176: pred_w padded to FEAT lanes
W_ROWS = PRED_OFF + FEAT          # 208

# bslab ([8, 128]) row layout
#  row 0: lanes 0:32 enc_b(+oh fold) | 32:64 edge_b | 64:96 pred_b (padded)
#  rows 1..3: mlp_b[l] (BN folded) in lanes 0:32
#  rows 4..7: learner l: lanes 0:16 lb1 | 16:32 lw2 row | 32 lb2 scalar


# ------------------------------- fused kernel --------------------------------
def _fused_forward_kernel(idx_ref, dst_ref, feat_ref,
                          wslab_ref, lw1_ref, bslab_ref, out_ref):
    f32 = jnp.float32

    # ---- per-group packed data (leading batch-block dim of size 1) ----------
    idx_all = idx_ref[0]                        # [NP+EP, 1] int32
    nidx = idx_all[:NP, :]                      # [NP, 1]  table indices
    srcg = idx_all[NP:, :]                      # [EP, 1]  src (graph-offset)
    dstg = dst_ref[0]                           # [1, EP]  dst (graph-offset)
    feat_all = feat_ref[0]                      # [NP+EP, 8]
    xoh = feat_all[:NP, :]                      # [NP, 8]  one-hot node feats
    eattr = feat_all[NP:, :]                    # [EP, 8]  edge attributes

    # ---- packed biases / small vectors ---------------------------------------
    ball = bslab_ref[...]                       # [8, 128]
    row0 = ball[0:1, :]
    enc_b = row0[:, 0:FEAT]
    edge_b = row0[:, FEAT:2 * FEAT]
    pred_b = row0[:, 2 * FEAT:3 * FEAT]

    def learner(xin, l):
        # NodeWeightLearner: Linear(F,H) -> LeakyReLU(0.2) -> Linear(H,1) -> sigmoid
        r = ball[4 + l:5 + l, :]
        lb1 = r[:, 0:HID]
        lw2 = r[:, HID:2 * HID]
        lb2 = r[:, 2 * HID:2 * HID + 1]
        z = jnp.dot(xin, lw1_ref[l], preferred_element_type=f32) + lb1
        z = jnp.where(z >= 0.0, z, LEAKY * z)
        # [*,HID]@[HID,1] is a degenerate MXU shape -> lane reduction instead.
        logit = jnp.sum(z * lw2, axis=-1, keepdims=True) + lb2
        return 1.0 / (1.0 + jnp.exp(-logit))    # exact sigmoid (review)

    # ---- dense scatter/gather operators from iota (block-diag over P graphs) -
    gmat = (lax.broadcasted_iota(jnp.int32, (NP, TABLE_N), 1) == nidx).astype(f32)
    s_mat = (lax.broadcasted_iota(jnp.int32, (EP, NP), 1) == srcg).astype(f32)
    a_mat = (lax.broadcasted_iota(jnp.int32, (NP, EP), 0) == dstg).astype(f32)

    # ---- node encoding: table gather + one-hot encoder + feature encoder -----
    # fused into ONE matmul against the pre-folded [72, FEAT] weight slab.
    gx = jnp.concatenate([gmat, xoh], axis=-1)                       # [NP, 72]
    h = jnp.dot(gx, wslab_ref[0:ENC_ROWS, :],
                preferred_element_type=f32) + enc_b                  # [NP, F]

    nw = learner(h, 0)
    h = h * nw
    cb = h * nw        # codebank = (h*nw)*nw — matches reference statement order

    # ---- edge_encoder(edge_attr) ----------------------------------------------
    eemb = jnp.dot(eattr, wslab_ref[EDGE_OFF:EDGE_OFF + 8, :],
                   preferred_element_type=f32) + edge_b               # [EP, F]

    # ---- backbone layers (Python loop => fully unrolled) ----------------------
    for l in range(N_LAYERS):
        # GENConv message passing (softmax aggregation, temperature t)
        x_src = jnp.dot(s_mat, h, preferred_element_type=f32)        # h[src] [EP,F]
        msg = jnp.maximum(x_src + eemb, 0.0) + GEN_EPS                # relu(x_j+e)+eps
        logits = GEN_T * msg
        # Per-feature max subtraction fused into the exp argument; exact since
        # softmax is shift invariant within every destination group.
        ex = jnp.exp(logits - jnp.max(logits, axis=0, keepdims=True))
        # Fused num/den aggregation: one matmul, split afterwards.
        packed = jnp.concatenate([ex * msg, ex], axis=-1)             # [EP, 2F]
        agg = jnp.dot(a_mat, packed, preferred_element_type=f32)      # [NP, 2F]
        num = agg[:, 0:FEAT]
        den = agg[:, FEAT:2 * FEAT]
        m = jnp.where(den > 0.0,
                      num * pl.reciprocal(jnp.maximum(den, 1e-30), approx=True),
                      0.0)

        # GENConv MLP (mlp_layers=1) on residual h + m; BatchNorm eval affine is
        # pre-folded into mlp_w / mlp_b; then ReLU.
        mlp_w = wslab_ref[MLP_OFF + FEAT * l:MLP_OFF + FEAT * (l + 1), :]
        mlp_b = ball[1 + l:2 + l, 0:FEAT]
        hr = jnp.maximum(
            jnp.dot(h + m, mlp_w, preferred_element_type=f32) + mlp_b, 0.0)

        # NodeWeightLearner(h, codebank) gating + codebank update
        nw = learner(hr + cb, l + 1)
        h_filt = hr * nw
        h = h_filt + cb * (1.0 - nw)       # dropout is identity in eval mode
        cb = cb + h_filt

    # ---- node_pred_linear(codebank); pred_w/pred_b are lane-padded to FEAT ----
    out32 = jnp.dot(cb, wslab_ref[PRED_OFF:PRED_OFF + FEAT, :],
                    preferred_element_type=f32) + pred_b              # [NP, 32]
    out_ref[0] = out32[:, 0:NUM_TASKS]


# --------------------------- parameter construction --------------------------
def _linear_params(key, fan_in, fan_out):
    kw, kb = jax.random.split(key)
    bound = 1.0 / (fan_in ** 0.5)
    w = jax.random.uniform(kw, (fan_in, fan_out), jnp.float32, -bound, bound)
    b = jax.random.uniform(kb, (1, fan_out), jnp.float32, -bound, bound)
    return w, b


def make_params(key, node_features_table):
    """Builds raw params and packs them into 3 lane/sublane-aligned slabs."""
    keys = jax.random.split(key, 6 + 3 * N_LAYERS)
    it = iter(keys)

    # node_one_hot_encoder: Linear(8, 8); node_features_encoder: Linear(16, FEAT)
    oh_w, oh_b = _linear_params(next(it), 8, 8)
    enc_w, enc_b = _linear_params(next(it), 16, FEAT)
    enc_w1, enc_w2 = enc_w[:8], enc_w[8:]

    # edge_encoder: Linear(8, FEAT)
    edge_w, edge_b = _linear_params(next(it), 8, FEAT)

    # learners[0 .. N_LAYERS]
    lw1, lb1, lw2, lb2 = [], [], [], []
    w1, b1 = _linear_params(next(it), FEAT, HID)
    w2, b2 = _linear_params(next(it), HID, 1)
    lw1.append(w1); lb1.append(b1); lw2.append(w2.T); lb2.append(b2)

    # node_pred_linear: Linear(FEAT, NUM_TASKS)
    pred_w, pred_b = _linear_params(next(it), FEAT, NUM_TASKS)

    # BatchNorm1d eval-mode affine (synthetic gamma=1, beta=0, mean=0, var=1);
    # the fold below is valid for any trained scale/shift.
    bn_scale = jnp.full((1, FEAT), 1.0 / jnp.sqrt(1.0 + BN_EPS), jnp.float32)
    bn_shift = jnp.zeros((1, FEAT), jnp.float32)

    mlp_w, mlp_b = [], []
    for _ in range(N_LAYERS):
        w, b = _linear_params(next(it), FEAT, FEAT)
        mlp_w.append(w * bn_scale)                   # fold BN scale
        mlp_b.append(b * bn_scale + bn_shift)        # fold BN shift
        w1, b1 = _linear_params(next(it), FEAT, HID)
        w2, b2 = _linear_params(next(it), HID, 1)
        lw1.append(w1); lb1.append(b1); lw2.append(w2.T); lb2.append(b2)

    # ---- pack matmul weights: wslab [W_ROWS, FEAT] ---------------------------
    wslab = jnp.zeros((W_ROWS, FEAT), jnp.float32)
    # table gather + encoder fold: h = [gmat|xoh] @ [table@enc_w1 ; oh_w@enc_w2]
    wslab = wslab.at[0:TABLE_N].set(node_features_table @ enc_w1)
    wslab = wslab.at[TABLE_N:ENC_ROWS].set(oh_w @ enc_w2)
    wslab = wslab.at[EDGE_OFF:EDGE_OFF + 8].set(edge_w)
    for l in range(N_LAYERS):
        wslab = wslab.at[MLP_OFF + FEAT * l:MLP_OFF + FEAT * (l + 1)].set(mlp_w[l])
    wslab = wslab.at[PRED_OFF:PRED_OFF + FEAT, 0:NUM_TASKS].set(pred_w)

    # ---- pack biases / learner vectors: bslab [8, 128] ------------------------
    enc_b_comb = enc_b + oh_b @ enc_w2               # one-hot encoder bias fold
    bslab = jnp.zeros((8, 128), jnp.float32)
    bslab = bslab.at[0, 0:FEAT].set(enc_b_comb[0])
    bslab = bslab.at[0, FEAT:2 * FEAT].set(edge_b[0])
    bslab = bslab.at[0, 2 * FEAT:2 * FEAT + NUM_TASKS].set(pred_b[0])
    for l in range(N_LAYERS):
        bslab = bslab.at[1 + l, 0:FEAT].set(mlp_b[l][0])
    for l in range(N_LAYERS + 1):
        bslab = bslab.at[4 + l, 0:HID].set(lb1[l][0])
        bslab = bslab.at[4 + l, HID:2 * HID].set(lw2[l][0])
        bslab = bslab.at[4 + l, 2 * HID].set(lb2[l][0, 0])

    return {"wslab": wslab, "lw1": jnp.stack(lw1), "bslab": bslab}


# --------------------------------- forward -----------------------------------
def deep_nosaf_forward(params, x, node_index, edge_index, edge_attr):
    """Batched forward: x [B,N,8], node_index [B,N], edge_index [B,2,E],
    edge_attr [B,E,8]; B = N_GROUPS * P_GRAPHS."""
    B = x.shape[0]
    assert B == N_GROUPS * P_GRAPHS
    G, P, N, E = N_GROUPS, P_GRAPHS, N_NODES, N_EDGES

    # Pack P graphs per group along the node/edge axis; offset edge endpoints
    # by p*N so the iota-built scatter operators become block-diagonal.
    offs = jnp.repeat(jnp.arange(P, dtype=jnp.int32) * N, E)          # [P*E]
    nidx = node_index.astype(jnp.int32).reshape(G, P * N)
    src = edge_index[:, 0, :].astype(jnp.int32).reshape(G, P * E) + offs[None, :]
    dst = edge_index[:, 1, :].astype(jnp.int32).reshape(G, P * E) + offs[None, :]

    idx_slab = jnp.concatenate([nidx, src], axis=1)[:, :, None]       # [G, NP+EP, 1]
    dst_row = dst[:, None, :]                                         # [G, 1, EP]
    feat_slab = jnp.concatenate(
        [x.reshape(G, P * N, 8), edge_attr.reshape(G, P * E, 8)], axis=1)  # [G, NP+EP, 8]

    out = pl.pallas_call(
        _fused_forward_kernel,
        out_shape=jax.ShapeDtypeStruct((G, NP, NUM_TASKS), jnp.float32),
        grid=(G,),
        in_specs=[
            pl.BlockSpec((1, NP + EP, 1), lambda g: (g, 0, 0)),       # indices
            pl.BlockSpec((1, 1, EP), lambda g: (g, 0, 0)),            # dst row
            pl.BlockSpec((1, NP + EP, 8), lambda g: (g, 0, 0)),       # x / edge_attr
            pl.BlockSpec((W_ROWS, FEAT), lambda g: (0, 0)),           # weight slab
            pl.BlockSpec((N_LAYERS + 1, FEAT, HID), lambda g: (0, 0, 0)),  # learner W1
            pl.BlockSpec((8, 128), lambda g: (0, 0)),                 # bias slab
        ],
        out_specs=pl.BlockSpec((1, NP, NUM_TASKS), lambda g: (g, 0, 0)),
        compiler_params=pltpu.CompilerParams(
            dimension_semantics=("parallel",)),   # shards groups across v7x TCs
    )(idx_slab, dst_row, feat_slab, params["wslab"], params["lw1"], params["bslab"])

    return out.reshape(B, N, NUM_TASKS)


# ----------------------------------- main -------------------------------------
if __name__ == "__main__":
    key = jax.random.PRNGKey(0)
    k_par, k_tab, k_x, k_idx, k_ei, k_ea = jax.random.split(key, 6)

    B = N_GROUPS * P_GRAPHS   # 8 subgraphs per call

    node_features_table = jax.random.normal(k_tab, (TABLE_N, 8), jnp.float32)
    params = make_params(k_par, node_features_table)  # table folded into wslab

    x = jax.nn.one_hot(jax.random.randint(k_x, (B, N_NODES), 0, 8), 8,
                       dtype=jnp.float32)                                 # [B, N, 8]
    node_index = jax.random.randint(k_idx, (B, N_NODES), 0, TABLE_N)      # [B, N]
    edge_index = jax.random.randint(k_ei, (B, 2, N_EDGES), 0, N_NODES)    # [B, 2, E]
    edge_attr = jax.random.uniform(k_ea, (B, N_EDGES, 8), jnp.float32)    # [B, E, 8]

    fwd = jax.jit(deep_nosaf_forward)
    out = fwd(params, x, node_index, edge_index, edge_attr)
    out = jax.block_until_ready(out)
    assert out.shape == (B, N_NODES, NUM_TASKS)
    assert bool(jnp.all(jnp.isfinite(out)))
    print("KERNEL_OK")
</pallas_src>

<mosaic_0001>
module attributes {stable_mosaic.version = 11 : i64} {
  func.func @_fused_forward_kernel(%arg0: i32, %arg1: memref<1x256x1xi32, #tpu.memory_space<vmem>>, %arg2: memref<1x1x192xi32, #tpu.memory_space<vmem>>, %arg3: memref<1x256x8xf32, #tpu.memory_space<vmem>>, %arg4: memref<208x32xf32, #tpu.memory_space<vmem>>, %arg5: memref<4x32x16xf32, #tpu.memory_space<vmem>>, %arg6: memref<8x128xf32, #tpu.memory_space<vmem>>, %arg7: memref<1x64x8xf32, #tpu.memory_space<vmem>>) attributes {dimension_semantics = [#tpu.dimension_semantics<parallel>], iteration_bounds = array<i64: 2>, scalar_prefetch = 0 : i64, scratch_operands = 0 : i64, tpu.core_type = #tpu.core_type<tc>, window_params = [{transform_indices = @transform_0, window_bounds = array<i64: 1, 256, 1>}, {transform_indices = @transform_1, window_bounds = array<i64: 1, 1, 192>}, {transform_indices = @transform_2, window_bounds = array<i64: 1, 256, 8>}, {pipeline_mode = #tpu.pipeline_mode<synchronous>, transform_indices = @transform_3, window_bounds = array<i64: 208, 32>}, {pipeline_mode = #tpu.pipeline_mode<synchronous>, transform_indices = @transform_4, window_bounds = array<i64: 4, 32, 16>}, {pipeline_mode = #tpu.pipeline_mode<synchronous>, transform_indices = @transform_5, window_bounds = array<i64: 8, 128>}, {transform_indices = @transform_6, window_bounds = array<i64: 1, 64, 8>}]} {
    %c0 = arith.constant 0 : index
    %c0_0 = arith.constant 0 : index
    %c0_1 = arith.constant 0 : index
    %0 = vector.load %arg1[%c0, %c0_0, %c0_1] : memref<1x256x1xi32, #tpu.memory_space<vmem>>, vector<1x256x1xi32>
    %1 = vector.shape_cast %0 : vector<1x256x1xi32> to vector<256x1xi32>
    %2 = vector.extract_strided_slice %1 {offsets = [0, 0], sizes = [64, 1], strides = [1, 1]} : vector<256x1xi32> to vector<64x1xi32>
    %3 = vector.extract_strided_slice %1 {offsets = [64, 0], sizes = [192, 1], strides = [1, 1]} : vector<256x1xi32> to vector<192x1xi32>
    %c0_2 = arith.constant 0 : index
    %c0_3 = arith.constant 0 : index
    %c0_4 = arith.constant 0 : index
    %4 = vector.load %arg2[%c0_2, %c0_3, %c0_4] : memref<1x1x192xi32, #tpu.memory_space<vmem>>, vector<1x1x192xi32>
    %5 = vector.shape_cast %4 : vector<1x1x192xi32> to vector<1x192xi32>
    %c0_5 = arith.constant 0 : index
    %c0_6 = arith.constant 0 : index
    %c0_7 = arith.constant 0 : index
    %6 = vector.load %arg3[%c0_5, %c0_6, %c0_7] : memref<1x256x8xf32, #tpu.memory_space<vmem>>, vector<1x256x8xf32>
    %7 = vector.shape_cast %6 : vector<1x256x8xf32> to vector<256x8xf32>
    %8 = vector.extract_strided_slice %7 {offsets = [0, 0], sizes = [64, 8], strides = [1, 1]} : vector<256x8xf32> to vector<64x8xf32>
    %9 = vector.extract_strided_slice %7 {offsets = [64, 0], sizes = [192, 8], strides = [1, 1]} : vector<256x8xf32> to vector<192x8xf32>
    %c0_8 = arith.constant 0 : index
    %c0_9 = arith.constant 0 : index
    %10 = vector.load %arg6[%c0_8, %c0_9] : memref<8x128xf32, #tpu.memory_space<vmem>>, vector<8x128xf32>
    %11 = vector.extract_strided_slice %10 {offsets = [0, 0], sizes = [1, 128], strides = [1, 1]} : vector<8x128xf32> to vector<1x128xf32>
    %12 = vector.extract_strided_slice %11 {offsets = [0, 0], sizes = [1, 32], strides = [1, 1]} : vector<1x128xf32> to vector<1x32xf32>
    %13 = vector.extract_strided_slice %11 {offsets = [0, 32], sizes = [1, 32], strides = [1, 1]} : vector<1x128xf32> to vector<1x32xf32>
    %14 = vector.extract_strided_slice %11 {offsets = [0, 64], sizes = [1, 32], strides = [1, 1]} : vector<1x128xf32> to vector<1x32xf32>
    %15 = tpu.iota {dimensions = array<i32: 1>} : vector<64x64xi32>
    %16 = vector.broadcast %2 : vector<64x1xi32> to vector<64x64xi32>
    %17 = arith.cmpi eq, %15, %16 : vector<64x64xi32>
    %18 = arith.extui %17 : vector<64x64xi1> to vector<64x64xi32>
    %19 = arith.sitofp %18 : vector<64x64xi32> to vector<64x64xf32>
    %20 = tpu.iota {dimensions = array<i32: 1>} : vector<192x64xi32>
    %21 = vector.broadcast %3 : vector<192x1xi32> to vector<192x64xi32>
    %22 = arith.cmpi eq, %20, %21 : vector<192x64xi32>
    %23 = arith.extui %22 : vector<192x64xi1> to vector<192x64xi32>
    %24 = arith.sitofp %23 : vector<192x64xi32> to vector<192x64xf32>
    %25 = tpu.iota {dimensions = array<i32: 0>} : vector<64x192xi32>
    %26 = vector.broadcast %5 : vector<1x192xi32> to vector<64x192xi32>
    %27 = arith.cmpi eq, %25, %26 : vector<64x192xi32>
    %28 = arith.extui %27 : vector<64x192xi1> to vector<64x192xi32>
    %29 = arith.sitofp %28 : vector<64x192xi32> to vector<64x192xf32>
    %30 = tpu.concatenate %19, %8 in 1 : vector<64x64xf32>, vector<64x8xf32> -> vector<64x72xf32>
    %c0_10 = arith.constant 0 : index
    %c0_11 = arith.constant 0 : index
    %31 = vector.load %arg4[%c0_10, %c0_11] : memref<208x32xf32, #tpu.memory_space<vmem>>, vector<72x32xf32>
    %cst = arith.constant dense<0.000000e+00> : vector<64x32xf32>
    %32 = tpu.matmul %30, %31, %cst {dimension_numbers = #tpu.dot_dimension_numbers<[1], [0], [0], [1], [0, 0, 1, 1], [], []>} : vector<64x72xf32>, vector<72x32xf32>, vector<64x32xf32> -> vector<64x32xf32>
    %33 = vector.broadcast %12 : vector<1x32xf32> to vector<64x32xf32>
    %34 = arith.addf %32, %33 : vector<64x32xf32>
    %35 = vector.extract_strided_slice %10 {offsets = [4, 0], sizes = [1, 128], strides = [1, 1]} : vector<8x128xf32> to vector<1x128xf32>
    %36 = vector.extract_strided_slice %35 {offsets = [0, 0], sizes = [1, 16], strides = [1, 1]} : vector<1x128xf32> to vector<1x16xf32>
    %37 = vector.extract_strided_slice %35 {offsets = [0, 16], sizes = [1, 16], strides = [1, 1]} : vector<1x128xf32> to vector<1x16xf32>
    %38 = vector.extract_strided_slice %35 {offsets = [0, 32], sizes = [1, 1], strides = [1, 1]} : vector<1x128xf32> to vector<1x1xf32>
    %c0_12 = arith.constant 0 : index
    %c0_13 = arith.constant 0 : index
    %c0_14 = arith.constant 0 : index
    %39 = vector.load %arg5[%c0_12, %c0_13, %c0_14] : memref<4x32x16xf32, #tpu.memory_space<vmem>>, vector<1x32x16xf32>
    %40 = vector.shape_cast %39 : vector<1x32x16xf32> to vector<32x16xf32>
    %cst_15 = arith.constant dense<0.000000e+00> : vector<64x16xf32>
    %41 = tpu.matmul %34, %40, %cst_15 {dimension_numbers = #tpu.dot_dimension_numbers<[1], [0], [0], [1], [0, 0, 1, 1], [], []>} : vector<64x32xf32>, vector<32x16xf32>, vector<64x16xf32> -> vector<64x16xf32>
    %42 = vector.broadcast %36 : vector<1x16xf32> to vector<64x16xf32>
    %43 = arith.addf %41, %42 : vector<64x16xf32>
    %cst_16 = arith.constant 0.000000e+00 : f32
    %44 = vector.broadcast %cst_16 : f32 to vector<64x16xf32>
    %45 = arith.cmpf oge, %43, %44 : vector<64x16xf32>
    %cst_17 = arith.constant 2.000000e-01 : f32
    %46 = vector.broadcast %cst_17 : f32 to vector<64x16xf32>
    %47 = arith.mulf %46, %43 : vector<64x16xf32>
    %48 = arith.select %45, %43, %47 : vector<64x16xi1>, vector<64x16xf32>
    %49 = vector.broadcast %37 : vector<1x16xf32> to vector<64x16xf32>
    %50 = arith.mulf %48, %49 : vector<64x16xf32>
    %cst_18 = arith.constant dense<0.000000e+00> : vector<64xf32>
    %51 = vector.multi_reduction <add>, %50, %cst_18 [1] : vector<64x16xf32> to vector<64xf32>
    %52 = vector.shape_cast %51 : vector<64xf32> to vector<64x1xf32>
    %53 = vector.broadcast %38 : vector<1x1xf32> to vector<64x1xf32>
    %54 = arith.addf %52, %53 : vector<64x1xf32>
    %cst_19 = arith.constant 0.000000e+00 : f32
    %55 = vector.broadcast %cst_19 : f32 to vector<64x1xf32>
    %56 = arith.subf %55, %54 : vector<64x1xf32>
    %57 = math.exp %56 : vector<64x1xf32>
    %cst_20 = arith.constant 1.000000e+00 : f32
    %58 = vector.broadcast %cst_20 : f32 to vector<64x1xf32>
    %59 = arith.addf %58, %57 : vector<64x1xf32>
    %cst_21 = arith.constant 1.000000e+00 : f32
    %60 = vector.broadcast %cst_21 : f32 to vector<64x1xf32>
    %61 = arith.divf %60, %59 : vector<64x1xf32>
    %62 = vector.broadcast %61 : vector<64x1xf32> to vector<64x32xf32>
    %63 = arith.mulf %34, %62 : vector<64x32xf32>
    %64 = vector.broadcast %61 : vector<64x1xf32> to vector<64x32xf32>
    %65 = arith.mulf %63, %64 : vector<64x32xf32>
    %c72 = arith.constant 72 : index
    %c0_22 = arith.constant 0 : index
    %66 = vector.load %arg4[%c72, %c0_22] : memref<208x32xf32, #tpu.memory_space<vmem>>, vector<8x32xf32>
    %cst_23 = arith.constant dense<0.000000e+00> : vector<192x32xf32>
    %67 = tpu.matmul %9, %66, %cst_23 {dimension_numbers = #tpu.dot_dimension_numbers<[1], [0], [0], [1], [0, 0, 1, 1], [], []>} : vector<192x8xf32>, vector<8x32xf32>, vector<192x32xf32> -> vector<192x32xf32>
    %68 = vector.broadcast %13 : vector<1x32xf32> to vector<192x32xf32>
    %69 = arith.addf %67, %68 : vector<192x32xf32>
    %cst_24 = arith.constant dense<0.000000e+00> : vector<192x32xf32>
    %70 = tpu.matmul %24, %63, %cst_24 {dimension_numbers = #tpu.dot_dimension_numbers<[1], [0], [0], [1], [0, 0, 1, 1], [], []>} : vector<192x64xf32>, vector<64x32xf32>, vector<192x32xf32> -> vector<192x32xf32>
    %71 = arith.addf %70, %69 : vector<192x32xf32>
    %cst_25 = arith.constant 0.000000e+00 : f32
    %72 = vector.broadcast %cst_25 : f32 to vector<192x32xf32>
    %73 = arith.maximumf %71, %72 : vector<192x32xf32>
    %cst_26 = arith.constant 1.000000e-07 : f32
    %74 = vector.broadcast %cst_26 : f32 to vector<192x32xf32>
    %75 = arith.addf %73, %74 : vector<192x32xf32>
    %cst_27 = arith.constant 1.000000e+00 : f32
    %76 = vector.broadcast %cst_27 : f32 to vector<192x32xf32>
    %77 = arith.mulf %76, %75 : vector<192x32xf32>
    %cst_28 = arith.constant dense<0xFF800000> : vector<32xf32>
    %78 = vector.multi_reduction <maximumf>, %77, %cst_28 [0] : vector<192x32xf32> to vector<32xf32>
    %79 = vector.shape_cast %78 : vector<32xf32> to vector<1x32xf32>
    %80 = vector.broadcast %79 : vector<1x32xf32> to vector<192x32xf32>
    %81 = arith.subf %77, %80 : vector<192x32xf32>
    %82 = math.exp %81 : vector<192x32xf32>
    %83 = arith.mulf %82, %75 : vector<192x32xf32>
    %84 = tpu.concatenate %83, %82 in 1 : vector<192x32xf32>, vector<192x32xf32> -> vector<192x64xf32>
    %cst_29 = arith.constant dense<0.000000e+00> : vector<64x64xf32>
    %85 = tpu.matmul %29, %84, %cst_29 {dimension_numbers = #tpu.dot_dimension_numbers<[1], [0], [0], [1], [0, 0, 1, 1], [], []>} : vector<64x192xf32>, vector<192x64xf32>, vector<64x64xf32> -> vector<64x64xf32>
    %86 = vector.extract_strided_slice %85 {offsets = [0, 0], sizes = [64, 32], strides = [1, 1]} : vector<64x64xf32> to vector<64x32xf32>
    %87 = vector.extract_strided_slice %85 {offsets = [0, 32], sizes = [64, 32], strides = [1, 1]} : vector<64x64xf32> to vector<64x32xf32>
    %cst_30 = arith.constant 0.000000e+00 : f32
    %88 = vector.broadcast %cst_30 : f32 to vector<64x32xf32>
    %89 = arith.cmpf ogt, %87, %88 : vector<64x32xf32>
    %cst_31 = arith.constant 1.000000e-30 : f32
    %90 = vector.broadcast %cst_31 : f32 to vector<64x32xf32>
    %91 = arith.maximumf %87, %90 : vector<64x32xf32>
    %92 = tpu.reciprocal %91 {approx = true} : vector<64x32xf32> -> vector<64x32xf32>
    %93 = arith.mulf %86, %92 : vector<64x32xf32>
    %cst_32 = arith.constant 0.000000e+00 : f32
    %94 = vector.broadcast %cst_32 : f32 to vector<64x32xf32>
    %95 = arith.select %89, %93, %94 : vector<64x32xi1>, vector<64x32xf32>
    %c80 = arith.constant 80 : index
    %c0_33 = arith.constant 0 : index
    %96 = vector.load %arg4[%c80, %c0_33] : memref<208x32xf32, #tpu.memory_space<vmem>>, vector<32x32xf32>
    %97 = vector.extract_strided_slice %10 {offsets = [1, 0], sizes = [1, 32], strides = [1, 1]} : vector<8x128xf32> to vector<1x32xf32>
    %98 = arith.addf %63, %95 : vector<64x32xf32>
    %cst_34 = arith.constant dense<0.000000e+00> : vector<64x32xf32>
    %99 = tpu.matmul %98, %96, %cst_34 {dimension_numbers = #tpu.dot_dimension_numbers<[1], [0], [0], [1], [0, 0, 1, 1], [], []>} : vector<64x32xf32>, vector<32x32xf32>, vector<64x32xf32> -> vector<64x32xf32>
    %100 = vector.broadcast %97 : vector<1x32xf32> to vector<64x32xf32>
    %101 = arith.addf %99, %100 : vector<64x32xf32>
    %cst_35 = arith.constant 0.000000e+00 : f32
    %102 = vector.broadcast %cst_35 : f32 to vector<64x32xf32>
    %103 = arith.maximumf %101, %102 : vector<64x32xf32>
    %104 = arith.addf %103, %65 : vector<64x32xf32>
    %105 = vector.extract_strided_slice %10 {offsets = [5, 0], sizes = [1, 128], strides = [1, 1]} : vector<8x128xf32> to vector<1x128xf32>
    %106 = vector.extract_strided_slice %105 {offsets = [0, 0], sizes = [1, 16], strides = [1, 1]} : vector<1x128xf32> to vector<1x16xf32>
    %107 = vector.extract_strided_slice %105 {offsets = [0, 16], sizes = [1, 16], strides = [1, 1]} : vector<1x128xf32> to vector<1x16xf32>
    %108 = vector.extract_strided_slice %105 {offsets = [0, 32], sizes = [1, 1], strides = [1, 1]} : vector<1x128xf32> to vector<1x1xf32>
    %c1 = arith.constant 1 : index
    %c0_36 = arith.constant 0 : index
    %c0_37 = arith.constant 0 : index
    %109 = vector.load %arg5[%c1, %c0_36, %c0_37] : memref<4x32x16xf32, #tpu.memory_space<vmem>>, vector<1x32x16xf32>
    %110 = vector.shape_cast %109 : vector<1x32x16xf32> to vector<32x16xf32>
    %cst_38 = arith.constant dense<0.000000e+00> : vector<64x16xf32>
    %111 = tpu.matmul %104, %110, %cst_38 {dimension_numbers = #tpu.dot_dimension_numbers<[1], [0], [0], [1], [0, 0, 1, 1], [], []>} : vector<64x32xf32>, vector<32x16xf32>, vector<64x16xf32> -> vector<64x16xf32>
    %112 = vector.broadcast %106 : vector<1x16xf32> to vector<64x16xf32>
    %113 = arith.addf %111, %112 : vector<64x16xf32>
    %cst_39 = arith.constant 0.000000e+00 : f32
    %114 = vector.broadcast %cst_39 : f32 to vector<64x16xf32>
    %115 = arith.cmpf oge, %113, %114 : vector<64x16xf32>
    %cst_40 = arith.constant 2.000000e-01 : f32
    %116 = vector.broadcast %cst_40 : f32 to vector<64x16xf32>
    %117 = arith.mulf %116, %113 : vector<64x16xf32>
    %118 = arith.select %115, %113, %117 : vector<64x16xi1>, vector<64x16xf32>
    %119 = vector.broadcast %107 : vector<1x16xf32> to vector<64x16xf32>
    %120 = arith.mulf %118, %119 : vector<64x16xf32>
    %cst_41 = arith.constant dense<0.000000e+00> : vector<64xf32>
    %121 = vector.multi_reduction <add>, %120, %cst_41 [1] : vector<64x16xf32> to vector<64xf32>
    %122 = vector.shape_cast %121 : vector<64xf32> to vector<64x1xf32>
    %123 = vector.broadcast %108 : vector<1x1xf32> to vector<64x1xf32>
    %124 = arith.addf %122, %123 : vector<64x1xf32>
    %cst_42 = arith.constant 0.000000e+00 : f32
    %125 = vector.broadcast %cst_42 : f32 to vector<64x1xf32>
    %126 = arith.subf %125, %124 : vector<64x1xf32>
    %127 = math.exp %126 : vector<64x1xf32>
    %cst_43 = arith.constant 1.000000e+00 : f32
    %128 = vector.broadcast %cst_43 : f32 to vector<64x1xf32>
    %129 = arith.addf %128, %127 : vector<64x1xf32>
    %cst_44 = arith.constant 1.000000e+00 : f32
    %130 = vector.broadcast %cst_44 : f32 to vector<64x1xf32>
    %131 = arith.divf %130, %129 : vector<64x1xf32>
    %132 = vector.broadcast %131 : vector<64x1xf32> to vector<64x32xf32>
    %133 = arith.mulf %103, %132 : vector<64x32xf32>
    %cst_45 = arith.constant 1.000000e+00 : f32
    %134 = vector.broadcast %cst_45 : f32 to vector<64x1xf32>
    %135 = arith.subf %134, %131 : vector<64x1xf32>
    %136 = vector.broadcast %135 : vector<64x1xf32> to vector<64x32xf32>
    %137 = arith.mulf %65, %136 : vector<64x32xf32>
    %138 = arith.addf %133, %137 : vector<64x32xf32>
    %139 = arith.addf %65, %133 : vector<64x32xf32>
    %cst_46 = arith.constant dense<0.000000e+00> : vector<192x32xf32>
    %140 = tpu.matmul %24, %138, %cst_46 {dimension_numbers = #tpu.dot_dimension_numbers<[1], [0], [0], [1], [0, 0, 1, 1], [], []>} : vector<192x64xf32>, vector<64x32xf32>, vector<192x32xf32> -> vector<192x32xf32>
    %141 = arith.addf %140, %69 : vector<192x32xf32>
    %cst_47 = arith.constant 0.000000e+00 : f32
    %142 = vector.broadcast %cst_47 : f32 to vector<192x32xf32>
    %143 = arith.maximumf %141, %142 : vector<192x32xf32>
    %cst_48 = arith.constant 1.000000e-07 : f32
    %144 = vector.broadcast %cst_48 : f32 to vector<192x32xf32>
    %145 = arith.addf %143, %144 : vector<192x32xf32>
    %cst_49 = arith.constant 1.000000e+00 : f32
    %146 = vector.broadcast %cst_49 : f32 to vector<192x32xf32>
    %147 = arith.mulf %146, %145 : vector<192x32xf32>
    %cst_50 = arith.constant dense<0xFF800000> : vector<32xf32>
    %148 = vector.multi_reduction <maximumf>, %147, %cst_50 [0] : vector<192x32xf32> to vector<32xf32>
    %149 = vector.shape_cast %148 : vector<32xf32> to vector<1x32xf32>
    %150 = vector.broadcast %149 : vector<1x32xf32> to vector<192x32xf32>
    %151 = arith.subf %147, %150 : vector<192x32xf32>
    %152 = math.exp %151 : vector<192x32xf32>
    %153 = arith.mulf %152, %145 : vector<192x32xf32>
    %154 = tpu.concatenate %153, %152 in 1 : vector<192x32xf32>, vector<192x32xf32> -> vector<192x64xf32>
    %cst_51 = arith.constant dense<0.000000e+00> : vector<64x64xf32>
    %155 = tpu.matmul %29, %154, %cst_51 {dimension_numbers = #tpu.dot_dimension_numbers<[1], [0], [0], [1], [0, 0, 1, 1], [], []>} : vector<64x192xf32>, vector<192x64xf32>, vector<64x64xf32> -> vector<64x64xf32>
    %156 = vector.extract_strided_slice %155 {offsets = [0, 0], sizes = [64, 32], strides = [1, 1]} : vector<64x64xf32> to vector<64x32xf32>
    %157 = vector.extract_strided_slice %155 {offsets = [0, 32], sizes = [64, 32], strides = [1, 1]} : vector<64x64xf32> to vector<64x32xf32>
    %cst_52 = arith.constant 0.000000e+00 : f32
    %158 = vector.broadcast %cst_52 : f32 to vector<64x32xf32>
    %159 = arith.cmpf ogt, %157, %158 : vector<64x32xf32>
    %cst_53 = arith.constant 1.000000e-30 : f32
    %160 = vector.broadcast %cst_53 : f32 to vector<64x32xf32>
    %161 = arith.maximumf %157, %160 : vector<64x32xf32>
    %162 = tpu.reciprocal %161 {approx = true} : vector<64x32xf32> -> vector<64x32xf32>
    %163 = arith.mulf %156, %162 : vector<64x32xf32>
    %cst_54 = arith.constant 0.000000e+00 : f32
    %164 = vector.broadcast %cst_54 : f32 to vector<64x32xf32>
    %165 = arith.select %159, %163, %164 : vector<64x32xi1>, vector<64x32xf32>
    %c112 = arith.constant 112 : index
    %c0_55 = arith.constant 0 : index
    %166 = vector.load %arg4[%c112, %c0_55] : memref<208x32xf32, #tpu.memory_space<vmem>>, vector<32x32xf32>
    %167 = vector.extract_strided_slice %10 {offsets = [2, 0], sizes = [1, 32], strides = [1, 1]} : vector<8x128xf32> to vector<1x32xf32>
    %168 = arith.addf %138, %165 : vector<64x32xf32>
    %cst_56 = arith.constant dense<0.000000e+00> : vector<64x32xf32>
    %169 = tpu.matmul %168, %166, %cst_56 {dimension_numbers = #tpu.dot_dimension_numbers<[1], [0], [0], [1], [0, 0, 1, 1], [], []>} : vector<64x32xf32>, vector<32x32xf32>, vector<64x32xf32> -> vector<64x32xf32>
    %170 = vector.broadcast %167 : vector<1x32xf32> to vector<64x32xf32>
    %171 = arith.addf %169, %170 : vector<64x32xf32>
    %cst_57 = arith.constant 0.000000e+00 : f32
    %172 = vector.broadcast %cst_57 : f32 to vector<64x32xf32>
    %173 = arith.maximumf %171, %172 : vector<64x32xf32>
    %174 = arith.addf %173, %139 : vector<64x32xf32>
    %175 = vector.extract_strided_slice %10 {offsets = [6, 0], sizes = [1, 128], strides = [1, 1]} : vector<8x128xf32> to vector<1x128xf32>
    %176 = vector.extract_strided_slice %175 {offsets = [0, 0], sizes = [1, 16], strides = [1, 1]} : vector<1x128xf32> to vector<1x16xf32>
    %177 = vector.extract_strided_slice %175 {offsets = [0, 16], sizes = [1, 16], strides = [1, 1]} : vector<1x128xf32> to vector<1x16xf32>
    %178 = vector.extract_strided_slice %175 {offsets = [0, 32], sizes = [1, 1], strides = [1, 1]} : vector<1x128xf32> to vector<1x1xf32>
    %c2 = arith.constant 2 : index
    %c0_58 = arith.constant 0 : index
    %c0_59 = arith.constant 0 : index
    %179 = vector.load %arg5[%c2, %c0_58, %c0_59] : memref<4x32x16xf32, #tpu.memory_space<vmem>>, vector<1x32x16xf32>
    %180 = vector.shape_cast %179 : vector<1x32x16xf32> to vector<32x16xf32>
    %cst_60 = arith.constant dense<0.000000e+00> : vector<64x16xf32>
    %181 = tpu.matmul %174, %180, %cst_60 {dimension_numbers = #tpu.dot_dimension_numbers<[1], [0], [0], [1], [0, 0, 1, 1], [], []>} : vector<64x32xf32>, vector<32x16xf32>, vector<64x16xf32> -> vector<64x16xf32>
    %182 = vector.broadcast %176 : vector<1x16xf32> to vector<64x16xf32>
    %183 = arith.addf %181, %182 : vector<64x16xf32>
    %cst_61 = arith.constant 0.000000e+00 : f32
    %184 = vector.broadcast %cst_61 : f32 to vector<64x16xf32>
    %185 = arith.cmpf oge, %183, %184 : vector<64x16xf32>
    %cst_62 = arith.constant 2.000000e-01 : f32
    %186 = vector.broadcast %cst_62 : f32 to vector<64x16xf32>
    %187 = arith.mulf %186, %183 : vector<64x16xf32>
    %188 = arith.select %185, %183, %187 : vector<64x16xi1>, vector<64x16xf32>
    %189 = vector.broadcast %177 : vector<1x16xf32> to vector<64x16xf32>
    %190 = arith.mulf %188, %189 : vector<64x16xf32>
    %cst_63 = arith.constant dense<0.000000e+00> : vector<64xf32>
    %191 = vector.multi_reduction <add>, %190, %cst_63 [1] : vector<64x16xf32> to vector<64xf32>
    %192 = vector.shape_cast %191 : vector<64xf32> to vector<64x1xf32>
    %193 = vector.broadcast %178 : vector<1x1xf32> to vector<64x1xf32>
    %194 = arith.addf %192, %193 : vector<64x1xf32>
    %cst_64 = arith.constant 0.000000e+00 : f32
    %195 = vector.broadcast %cst_64 : f32 to vector<64x1xf32>
    %196 = arith.subf %195, %194 : vector<64x1xf32>
    %197 = math.exp %196 : vector<64x1xf32>
    %cst_65 = arith.constant 1.000000e+00 : f32
    %198 = vector.broadcast %cst_65 : f32 to vector<64x1xf32>
    %199 = arith.addf %198, %197 : vector<64x1xf32>
    %cst_66 = arith.constant 1.000000e+00 : f32
    %200 = vector.broadcast %cst_66 : f32 to vector<64x1xf32>
    %201 = arith.divf %200, %199 : vector<64x1xf32>
    %202 = vector.broadcast %201 : vector<64x1xf32> to vector<64x32xf32>
    %203 = arith.mulf %173, %202 : vector<64x32xf32>
    %cst_67 = arith.constant 1.000000e+00 : f32
    %204 = vector.broadcast %cst_67 : f32 to vector<64x1xf32>
    %205 = arith.subf %204, %201 : vector<64x1xf32>
    %206 = vector.broadcast %205 : vector<64x1xf32> to vector<64x32xf32>
    %207 = arith.mulf %139, %206 : vector<64x32xf32>
    %208 = arith.addf %203, %207 : vector<64x32xf32>
    %209 = arith.addf %139, %203 : vector<64x32xf32>
    %cst_68 = arith.constant dense<0.000000e+00> : vector<192x32xf32>
    %210 = tpu.matmul %24, %208, %cst_68 {dimension_numbers = #tpu.dot_dimension_numbers<[1], [0], [0], [1], [0, 0, 1, 1], [], []>} : vector<192x64xf32>, vector<64x32xf32>, vector<192x32xf32> -> vector<192x32xf32>
    %211 = arith.addf %210, %69 : vector<192x32xf32>
    %cst_69 = arith.constant 0.000000e+00 : f32
    %212 = vector.broadcast %cst_69 : f32 to vector<192x32xf32>
    %213 = arith.maximumf %211, %212 : vector<192x32xf32>
    %cst_70 = arith.constant 1.000000e-07 : f32
    %214 = vector.broadcast %cst_70 : f32 to vector<192x32xf32>
    %215 = arith.addf %213, %214 : vector<192x32xf32>
    %cst_71 = arith.constant 1.000000e+00 : f32
    %216 = vector.broadcast %cst_71 : f32 to vector<192x32xf32>
    %217 = arith.mulf %216, %215 : vector<192x32xf32>
    %cst_72 = arith.constant dense<0xFF800000> : vector<32xf32>
    %218 = vector.multi_reduction <maximumf>, %217, %cst_72 [0] : vector<192x32xf32> to vector<32xf32>
    %219 = vector.shape_cast %218 : vector<32xf32> to vector<1x32xf32>
    %220 = vector.broadcast %219 : vector<1x32xf32> to vector<192x32xf32>
    %221 = arith.subf %217, %220 : vector<192x32xf32>
    %222 = math.exp %221 : vector<192x32xf32>
    %223 = arith.mulf %222, %215 : vector<192x32xf32>
    %224 = tpu.concatenate %223, %222 in 1 : vector<192x32xf32>, vector<192x32xf32> -> vector<192x64xf32>
    %cst_73 = arith.constant dense<0.000000e+00> : vector<64x64xf32>
    %225 = tpu.matmul %29, %224, %cst_73 {dimension_numbers = #tpu.dot_dimension_numbers<[1], [0], [0], [1], [0, 0, 1, 1], [], []>} : vector<64x192xf32>, vector<192x64xf32>, vector<64x64xf32> -> vector<64x64xf32>
    %226 = vector.extract_strided_slice %225 {offsets = [0, 0], sizes = [64, 32], strides = [1, 1]} : vector<64x64xf32> to vector<64x32xf32>
    %227 = vector.extract_strided_slice %225 {offsets = [0, 32], sizes = [64, 32], strides = [1, 1]} : vector<64x64xf32> to vector<64x32xf32>
    %cst_74 = arith.constant 0.000000e+00 : f32
    %228 = vector.broadcast %cst_74 : f32 to vector<64x32xf32>
    %229 = arith.cmpf ogt, %227, %228 : vector<64x32xf32>
    %cst_75 = arith.constant 1.000000e-30 : f32
    %230 = vector.broadcast %cst_75 : f32 to vector<64x32xf32>
    %231 = arith.maximumf %227, %230 : vector<64x32xf32>
    %232 = tpu.reciprocal %231 {approx = true} : vector<64x32xf32> -> vector<64x32xf32>
    %233 = arith.mulf %226, %232 : vector<64x32xf32>
    %cst_76 = arith.constant 0.000000e+00 : f32
    %234 = vector.broadcast %cst_76 : f32 to vector<64x32xf32>
    %235 = arith.select %229, %233, %234 : vector<64x32xi1>, vector<64x32xf32>
    %c144 = arith.constant 144 : index
    %c0_77 = arith.constant 0 : index
    %236 = vector.load %arg4[%c144, %c0_77] : memref<208x32xf32, #tpu.memory_space<vmem>>, vector<32x32xf32>
    %237 = vector.extract_strided_slice %10 {offsets = [3, 0], sizes = [1, 32], strides = [1, 1]} : vector<8x128xf32> to vector<1x32xf32>
    %238 = arith.addf %208, %235 : vector<64x32xf32>
    %cst_78 = arith.constant dense<0.000000e+00> : vector<64x32xf32>
    %239 = tpu.matmul %238, %236, %cst_78 {dimension_numbers = #tpu.dot_dimension_numbers<[1], [0], [0], [1], [0, 0, 1, 1], [], []>} : vector<64x32xf32>, vector<32x32xf32>, vector<64x32xf32> -> vector<64x32xf32>
    %240 = vector.broadcast %237 : vector<1x32xf32> to vector<64x32xf32>
    %241 = arith.addf %239, %240 : vector<64x32xf32>
    %cst_79 = arith.constant 0.000000e+00 : f32
    %242 = vector.broadcast %cst_79 : f32 to vector<64x32xf32>
    %243 = arith.maximumf %241, %242 : vector<64x32xf32>
    %244 = arith.addf %243, %209 : vector<64x32xf32>
    %245 = vector.extract_strided_slice %10 {offsets = [7, 0], sizes = [1, 128], strides = [1, 1]} : vector<8x128xf32> to vector<1x128xf32>
    %246 = vector.extract_strided_slice %245 {offsets = [0, 0], sizes = [1, 16], strides = [1, 1]} : vector<1x128xf32> to vector<1x16xf32>
    %247 = vector.extract_strided_slice %245 {offsets = [0, 16], sizes = [1, 16], strides = [1, 1]} : vector<1x128xf32> to vector<1x16xf32>
    %248 = vector.extract_strided_slice %245 {offsets = [0, 32], sizes = [1, 1], strides = [1, 1]} : vector<1x128xf32> to vector<1x1xf32>
    %c3 = arith.constant 3 : index
    %c0_80 = arith.constant 0 : index
    %c0_81 = arith.constant 0 : index
    %249 = vector.load %arg5[%c3, %c0_80, %c0_81] : memref<4x32x16xf32, #tpu.memory_space<vmem>>, vector<1x32x16xf32>
    %250 = vector.shape_cast %249 : vector<1x32x16xf32> to vector<32x16xf32>
    %cst_82 = arith.constant dense<0.000000e+00> : vector<64x16xf32>
    %251 = tpu.matmul %244, %250, %cst_82 {dimension_numbers = #tpu.dot_dimension_numbers<[1], [0], [0], [1], [0, 0, 1, 1], [], []>} : vector<64x32xf32>, vector<32x16xf32>, vector<64x16xf32> -> vector<64x16xf32>
    %252 = vector.broadcast %246 : vector<1x16xf32> to vector<64x16xf32>
    %253 = arith.addf %251, %252 : vector<64x16xf32>
    %cst_83 = arith.constant 0.000000e+00 : f32
    %254 = vector.broadcast %cst_83 : f32 to vector<64x16xf32>
    %255 = arith.cmpf oge, %253, %254 : vector<64x16xf32>
    %cst_84 = arith.constant 2.000000e-01 : f32
    %256 = vector.broadcast %cst_84 : f32 to vector<64x16xf32>
    %257 = arith.mulf %256, %253 : vector<64x16xf32>
    %258 = arith.select %255, %253, %257 : vector<64x16xi1>, vector<64x16xf32>
    %259 = vector.broadcast %247 : vector<1x16xf32> to vector<64x16xf32>
    %260 = arith.mulf %258, %259 : vector<64x16xf32>
    %cst_85 = arith.constant dense<0.000000e+00> : vector<64xf32>
    %261 = vector.multi_reduction <add>, %260, %cst_85 [1] : vector<64x16xf32> to vector<64xf32>
    %262 = vector.shape_cast %261 : vector<64xf32> to vector<64x1xf32>
    %263 = vector.broadcast %248 : vector<1x1xf32> to vector<64x1xf32>
    %264 = arith.addf %262, %263 : vector<64x1xf32>
    %cst_86 = arith.constant 0.000000e+00 : f32
    %265 = vector.broadcast %cst_86 : f32 to vector<64x1xf32>
    %266 = arith.subf %265, %264 : vector<64x1xf32>
    %267 = math.exp %266 : vector<64x1xf32>
    %cst_87 = arith.constant 1.000000e+00 : f32
    %268 = vector.broadcast %cst_87 : f32 to vector<64x1xf32>
    %269 = arith.addf %268, %267 : vector<64x1xf32>
    %cst_88 = arith.constant 1.000000e+00 : f32
    %270 = vector.broadcast %cst_88 : f32 to vector<64x1xf32>
    %271 = arith.divf %270, %269 : vector<64x1xf32>
    %272 = vector.broadcast %271 : vector<64x1xf32> to vector<64x32xf32>
    %273 = arith.mulf %243, %272 : vector<64x32xf32>
    %274 = arith.addf %209, %273 : vector<64x32xf32>
    %c176 = arith.constant 176 : index
    %c0_89 = arith.constant 0 : index
    %275 = vector.load %arg4[%c176, %c0_89] : memref<208x32xf32, #tpu.memory_space<vmem>>, vector<32x32xf32>
    %cst_90 = arith.constant dense<0.000000e+00> : vector<64x32xf32>
    %276 = tpu.matmul %274, %275, %cst_90 {dimension_numbers = #tpu.dot_dimension_numbers<[1], [0], [0], [1], [0, 0, 1, 1], [], []>} : vector<64x32xf32>, vector<32x32xf32>, vector<64x32xf32> -> vector<64x32xf32>
    %277 = vector.broadcast %14 : vector<1x32xf32> to vector<64x32xf32>
    %278 = arith.addf %276, %277 : vector<64x32xf32>
    %279 = vector.extract_strided_slice %278 {offsets = [0, 0], sizes = [64, 8], strides = [1, 1]} : vector<64x32xf32> to vector<64x8xf32>
    %c0_91 = arith.constant 0 : index
    %c0_92 = arith.constant 0 : index
    %c0_93 = arith.constant 0 : index
    %280 = vector.load %arg7[%c0_91, %c0_92, %c0_93] : memref<1x64x8xf32, #tpu.memory_space<vmem>>, vector<1x64x8xf32>
    %281 = vector.shape_cast %280 : vector<1x64x8xf32> to vector<64x8xf32>
    %282 = vector.shape_cast %279 : vector<64x8xf32> to vector<1x64x8xf32>
    tpu.vector_store %arg7[%c0_91, %c0_92, %c0_93], %282 {strides = array<i32>} : memref<1x64x8xf32, #tpu.memory_space<vmem>>, vector<1x64x8xf32>,
    return
  }
  func.func @transform_0(%arg0: i32) -> (i32, i32, i32) {
    %c0_i32 = arith.constant 0 : i32
    %c0_i32_0 = arith.constant 0 : i32
    %c0_i32_1 = arith.constant 0 : i32
    return %arg0, %c0_i32, %c0_i32_0 : i32, i32, i32
  }
  func.func @transform_1(%arg0: i32) -> (i32, i32, i32) {
    %c0_i32 = arith.constant 0 : i32
    %c0_i32_0 = arith.constant 0 : i32
    %c0_i32_1 = arith.constant 0 : i32
    return %arg0, %c0_i32, %c0_i32_0 : i32, i32, i32
  }
  func.func @transform_2(%arg0: i32) -> (i32, i32, i32) {
    %c0_i32 = arith.constant 0 : i32
    %c0_i32_0 = arith.constant 0 : i32
    %c0_i32_1 = arith.constant 0 : i32
    return %arg0, %c0_i32, %c0_i32_0 : i32, i32, i32
  }
  func.func @transform_3(%arg0: i32) -> (i32, i32) {
    %c0_i32 = arith.constant 0 : i32
    %c0_i32_0 = arith.constant 0 : i32
    %c0_i32_1 = arith.constant 0 : i32
    return %c0_i32, %c0_i32_0 : i32, i32
  }
  func.func @transform_4(%arg0: i32) -> (i32, i32, i32) {
    %c0_i32 = arith.constant 0 : i32
    %c0_i32_0 = arith.constant 0 : i32
    %c0_i32_1 = arith.constant 0 : i32
    %c0_i32_2 = arith.constant 0 : i32
    return %c0_i32, %c0_i32_0, %c0_i32_1 : i32, i32, i32
  }
  func.func @transform_5(%arg0: i32) -> (i32, i32) {
    %c0_i32 = arith.constant 0 : i32
    %c0_i32_0 = arith.constant 0 : i32
    %c0_i32_1 = arith.constant 0 : i32
    return %c0_i32, %c0_i32_0 : i32, i32
  }
  func.func @transform_6(%arg0: i32) -> (i32, i32, i32) {
    %c0_i32 = arith.constant 0 : i32
    %c0_i32_0 = arith.constant 0 : i32
    %c0_i32_1 = arith.constant 0 : i32
    return %arg0, %c0_i32, %c0_i32_0 : i32, i32, i32
  }
}

</mosaic_0001>

<bundles_post_ra>
// kernel: squeeze.2
= control target key start
LH: loop header
LB: loop body
LE: loop exit
PB: predicated region body
PF: predicated region fallthrough
CT: control target
= control target key end

     0   :  { %s7_s6 = smov 3  ;;  %s10_s7 = smov 3  ;;  %vm12_vm0 = vcmask 261120   ;;  %vm4_vm1 = vcmask 392192   ;;  %vm16_vm2 = vcmask 130048   ;;  %vm19_vm3 = vcmask 1048320   ;;  %s89_s0 = inlined_call_operand.vmem [shape: s32[8,48], index: 0, kind: input, shape index: {}]   ;;  %s90_s1 = inlined_call_operand.vmem [shape: s32[2,192], index: 1, kind: output, shape index: {}]  }
   0x1   :  { %v47_v0 = vld [vmem:[%s89_s0 + $0x2] ss:$4 sm:%s7_s6]   ;;  %s29_s12 = smov 3  ;;  %s22_s15 = smov 3  ;;  %vm33_vm4 = vcmask 523392   ;;  %vm26_vm5 = vcmask 785792  }
   0x2   :  { %v48_v1 = vld [vmem:[%s89_s0 + $0x2] ss:$4 sm:%s10_s7]   ;;  %v50_v3 = vld [vmem:[%s89_s0 + $0x3] ss:$4 sm:%s29_s12]   ;;  %s55_s16 = smov 96   ;;  %s56_s17 = smov 16  }
   0x3   :  { %v13_v2 = vsel %vm12_vm0, %v48_v1, %v47_v0  ;;  %31 = vrot.lane.b32.xlu1 %v50_v3, %s56_s17  ;;  %s2_s18 = smov 3  ;;  %v49_v4 = vld [vmem:[%s89_s0 + $0x1] ss:$4 sm:%s22_s15]  }
   0x4   :  { %14 = vrot.lane.b32.xlu0 %v13_v2, %s55_s16  ;;  %v3_v5 = vld [vmem:[%s89_s0] ss:$4 sm:%s2_s18]   ;;  %s57_s0 = smov 48  }
   0x5   :  { %5 = vst.msk [vmem:[#allocation0] sm:$0x3] %vm4_vm1, %v3_v5  }
   0x8   :  { %24 = vrot.lane.b32.xlu0 %v49_v4, %s57_s0 }
  0x75   :  { %v32_v7 = vpop.permute.xlu1 %31  }
  0x76   :  { %v15_v6 = vpop.permute.xlu0 %14  }
  0x77   :  { %18 = vst.msk [vmem:[#allocation0 + $0x8] sm:$0x3] %vm16_vm2, %v15_v6  }
  0x78   :  { %20 = vst.msk [vmem:[#allocation0] sm:$0x3] %vm19_vm3, %v15_v6  }
  0x79   :  { %35 = vst.msk [vmem:[#allocation0 + $0x8] sm:$0x3] %vm33_vm4, %v32_v7  }
  0x7a   :  { %v25_v8 = vpop.permute.xlu0 %24  }
  0x7b   :  { %27 = vst.msk [vmem:[#allocation0] sm:$0x3] %vm26_vm5, %v25_v8  }
  0x80   :  { %v43_v9 = vld [vmem:[#allocation0 + $0x8] sm:$0x3] }
  0x81   :  { %51 = vst [vmem:[%s90_s1 + $0x2] sm:$0x3] %v43_v9 }
  0x82   :  { %v39_v10 = vld [vmem:[#allocation0] sm:$0x3] }
  0x83   :  { %41 = vst [vmem:[%s90_s1] sm:$0x3] %v39_v10 }

// kernel: deep_nosaf_forward.1
= control target key start
LH: loop header
LB: loop body
LE: loop exit
PB: predicated region body
PF: predicated region fallthrough
CT: control target
= control target key end

     0   :  { %s7188_s21 = smov 0   ;;  %s9959_s0 = inlined_call_operand.vmem [shape: s32[2,256,1], index: 0, kind: input, shape index: {}]   ;;  %s9960_s1 = inlined_call_operand.vmem [shape: s32[2,1,192], index: 1, kind: input, shape index: {}]   ;;  %s9961_s2 = inlined_call_operand.vmem [shape: f32[2,256,8], index: 2, kind: input, shape index: {}]   ;;  %s9962_s3 = inlined_call_operand.vmem [shape: f32[208,32], index: 3, kind: input, shape index: {}]   ;;  %s9963_s4 = inlined_call_operand.vmem [shape: f32[4,32,16], index: 4, kind: input, shape index: {}]   ;;  %s9964_s5 = inlined_call_operand.vmem [shape: f32[8,128], index: 5, kind: input, shape index: {}]   ;;  %s9965_s6 = inlined_call_operand.vmem [shape: f32[2,64,8], index: 6, kind: output, shape index: {}]  }
   0x1 LB: > { %s5461_s22 = sadd.s32 4294967295, %s7142_s21   ;;  %p5465_p0 = scmp.ge.s32.totalorder %s7142_s21, 1  ;;  %s7142_s21 = sphi %s7188_s21, %s16_s21  }
   0x2   : > { %p231_p1 = scmp.lt.s32.totalorder %s7142_s21, 3 }
   0x4   : > { %p232_p2 = pnand %p5465_p0, %p231_p1 }
   0x6   : > { %235 = sbr.rel (%p232_p2) target bundleno = 6643 (0x19f3), region = 44 }
   0xd   : > { %p270_p3 = scmp.lt.s32.totalorder %s5461_s22, 1  ;;  %v655_v0 = vld [vmem:[%s9962_s3] sm:$0xff]  ;;  %v656_v1 = vld [vmem:[%s9962_s3 + $0x8] sm:$0xff]  ;;  %v7144_v2 = vmov 0   ;;  %v657_v4 = vld [vmem:[%s9962_s3 + $0x10] sm:$0xff]  ;;  %s7145_s26 = smov 64   ;;  %v355_v35 = vlaneseq }
   0xe   : > { %6626 = vset.pattern.permute.xlu1 %v7144_v2  ;;  %6625 = vset.pattern.permute.xlu0 %v7144_v2  ;;  %v6372_v3 = vpack.c.bf16 %v656_v1, %v655_v0  ;;  %v658_v5 = vld [vmem:[%s9962_s3 + $0x18] sm:$0xff]  ;;  %v659_v12 = vld [vmem:[%s9962_s3 + $0x20] sm:$0xff]  ;;  %v660_v13 = vld [vmem:[%s9962_s3 + $0x28] sm:$0xff]  ;;  %vm646_vm2 = vcmask 523264   ;;  %vm668_vm3 = vcmask 588800   ;;  %v9967_v41 = vmov 0.0  }
   0xf   : > { %s10438_s22 = smov (!%p270_p3, %s5461_s22), 1  ;;  %v6376_v6 = vpack.c.bf16 %v658_v5, %v657_v4  ;;  %v6380_v15 = vpack.c.bf16 %v660_v13, %v659_v12  ;;  %v661_v16 = vld [vmem:[%s9962_s3 + $0x30] sm:$0xff]  ;;  %v662_v17 = vld [vmem:[%s9962_s3 + $0x38] sm:$0xff]  ;;  %v663_v21 = vld [vmem:[%s9962_s3 + $0x40] sm:$0xff]  ;;  %v7268_v38 = vand.u32 127, %v355_v35  ;;  %s7147_s14 = smov 112  }
  0x10   : > { %6373 = vmatprep.subr.bf16.mxu0 %v6372_v3  ;;  %s5751_s27 = sshll.u32 %s10438_s22, 8  ;;  %v6384_v18 = vpack.c.bf16 %v662_v17, %v661_v16  ;;  %v798_v30 = vld [vmem:[%s9963_s4] sm:$0xff]  ;;  %v799_v31 = vld [vmem:[%s9963_s4 + $0x8] sm:$0xff]  ;;  %v800_v5 = vld [vmem:[%s9963_s4 + $0x10] sm:$0xff]  ;;  %vm806_vm10 = vcmask 261120   ;;  %vm972_vm13 = vcmask 130048  }
  0x11   : > { %6375 = vmatpush3.bf16.msra.mxu0 %v6372_v3  ;;  %s7216_s10 = scalar_lea.vmem %s9959_s0, %s5751_s27  ;;  %s7239_s23 = scalar_lea.vmem %s9961_s2, %s5751_s27  ;;  %v6388_v32 = vpack.c.bf16 %v799_v31, %v798_v30 }
  0x12   : > { %v291_v7 = vld [vmem:[%s7216_s10 + $0x10] sm:$0xff]  ;;  %v289_v8 = vld [vmem:[%s7216_s10] sm:$0xff]  ;;  %v292_v9 = vld [vmem:[%s7216_s10 + $0x18] sm:$0xff]  ;;  %6377 = vmatprep.subr.bf16.mxu0 %v6376_v6  ;;  %s7149_s17 = smov 96   ;;  %s5468_s18 = sshll.u32 %s10438_s22, 1 }
  0x13   : > { %364 = vperm.xlu1 %6626, %v291_v7   ;;  %358 = vperm.xlu0 %6625, %v289_v8   ;;  %v290_v10 = vld [vmem:[%s7216_s10 + $0x8] sm:$0xff]  ;;  %v293_v14 = vld [vmem:[%s7216_s10 + $0x20] sm:$0xff]  ;;  %v296_v22 = vld [vmem:[%s7216_s10 + $0x38] sm:$0xff]  ;;  %v7308_v8 = vshrl.u32 %v355_v35, 7 }
  0x14   : > { %v294_v11 = vld [vmem:[%s7216_s10 + $0x28] sm:$0xff]  ;;  %v322_v20 = vld [vmem:[%s7239_s23] sm:$0xff]  ;;  %v295_v23 = vld [vmem:[%s7216_s10 + $0x30] sm:$0xff]  ;;  %6389 = vmatprep.subr.bf16.mxu1 %v6388_v32 }
  0x15   : > { %6379 = vmatpush3.bf16.msra.mxu0 %v6376_v6  ;;  %v323_v19 = vld [vmem:[%s7239_s23 + $0x8] sm:$0xff]  ;;  %v325_v24 = vld [vmem:[%s7239_s23 + $0x18] sm:$0xff]  ;;  %v324_v25 = vld [vmem:[%s7239_s23 + $0x10] sm:$0xff]  ;;  %6391 = vmatpush3.bf16.msra.mxu1 %v6388_v32  ;;  %v9966_v12 = vsub.s32 0, %v7308_v8 }
  0x16   : > { %6381 = vmatprep.subr.bf16.mxu0 %v6380_v15  ;;  %v327_v26 = vld [vmem:[%s7239_s23 + $0x28] sm:$0xff]  ;;  %v326_v27 = vld [vmem:[%s7239_s23 + $0x20] sm:$0xff]  ;;  %v329_v28 = vld [vmem:[%s7239_s23 + $0x38] sm:$0xff] }
  0x17   : > { %367 = vperm.xlu1 %6626, %v292_v9   ;;  %361 = vperm.xlu0 %6625, %v290_v10   ;;  %v328_v29 = vld [vmem:[%s7239_s23 + $0x30] sm:$0xff]  ;;  %v801_v6 = vld [vmem:[%s9963_s4 + $0x18] sm:$0xff]  ;;  %v804_v9 = vsub.s32 4, %v7308_v8  ;;  %v354_v10 = vld [vmem:[%s9964_s5] sm:$0xff] }
  0x18   : > { %v6392_v7 = vpack.c.bf16 %v801_v6, %v800_v5  ;;  %v7321_v13 = vrot.slane %v354_v10, %v9966_v12 }
  0x19   : > { %6383 = vmatpush3.bf16.msra.mxu0 %v6380_v15 }
  0x1a   : > { %6385 = vmatprep.subr.bf16.mxu0 %v6384_v18  ;;  %6393 = vmatprep.subr.bf16.mxu1 %v6392_v7  ;;  %10146 = vst [vmem:[#allocation2_spill] sm:$0xff] %v7321_v13 }
  0x1b   : > { %373 = vperm.xlu1 %6626, %v294_v11   ;;  %370 = vperm.xlu0 %6625, %v293_v14   ;;  %v7314_v11 = vrot.slane %v354_v10, %v804_v9 }
  0x1c   : > { %6395 = vmatpush3.bf16.msra.mxu1 %v6392_v7 }
  0x1d   : > { %6387 = vmatpush3.bf16.msra.mxu0 %v6384_v18 }
  0x1e   : > { %6004 = vmatprep.subr.mxu0 %v663_v21 }
  0x1f   : > { %624 = vrot.lane.b32.xlu1 %v323_v19, %s7145_s26  ;;  %622 = vrot.lane.b32.xlu0 %v322_v20, %s7145_s26 }
  0x21   : > { %6005 = vmatpush3.msra.mxu0 %v663_v21 }
  0x23   : > { %379 = vperm.xlu1 %6626, %v296_v22   ;;  %376 = vperm.xlu0 %6625, %v295_v23  }
  0x27   : > { %628 = vrot.lane.b32.xlu1 %v325_v24, %s7145_s26  ;;  %626 = vrot.lane.b32.xlu0 %v324_v25, %s7145_s26 }
  0x2b   : > { %632 = vrot.lane.b32.xlu1 %v327_v26, %s7145_s26  ;;  %630 = vrot.lane.b32.xlu0 %v326_v27, %s7145_s26 }
  0x2f   : > { %636 = vrot.lane.b32.xlu1 %v329_v28, %s7145_s26  ;;  %634 = vrot.lane.b32.xlu0 %v328_v29, %s7145_s26 }
  0x33   : > { %961 = vrot.lane.b32.xlu0 %v7314_v11, %s7147_s14 }
  0x92   : > { %v365_v33 = vpop.permute.xlu1 %364  ;;  %v359_v34 = vpop.permute.xlu0 %358 }
  0x93   : > { %vm381_vm0 = vcmp.eq.s32.totalorder %v7268_v38, %v359_v34  ;;  %vm383_vm4 = vcmp.eq.s32.totalorder %v7268_v38, %v365_v33 }
  0x94   : > { %v5473_v45 = vsel %vm381_vm0, 1.0, %v9967_v41  ;;  %v5475_v50 = vsel %vm383_vm4, 1.0, %v9967_v41 }
  0x96   : > { %v368_v36 = vpop.permute.xlu1 %367  ;;  %v362_v37 = vpop.permute.xlu0 %361 }
  0x97   : > { %vm382_vm1 = vcmp.eq.s32.totalorder %v7268_v38, %v362_v37  ;;  %vm384_vm5 = vcmp.eq.s32.totalorder %v7268_v38, %v368_v36 }
  0x98   : > { %v5474_v42 = vsel %vm382_vm1, 1.0, %v9967_v41  ;;  %v5476_v51 = vsel %vm384_vm5, 1.0, %v9967_v41  ;;  %vm1114_vm5 = vcmask 64512  }
  0x9a   : > { %v374_v39 = vpop.permute.xlu1 %373  ;;  %v371_v40 = vpop.permute.xlu0 %370 }
  0x9b   : > { %vm386_vm6 = vcmp.eq.s32.totalorder %v7268_v38, %v374_v39  ;;  %vm385_vm7 = vcmp.eq.s32.totalorder %v7268_v38, %v371_v40 }
  0x9c   : > { %v5478_v56 = vsel %vm386_vm6, 1.0, %v9967_v41  ;;  %v5477_v57 = vsel %vm385_vm7, 1.0, %v9967_v41 }
  0x9e   : > { %v625_v43 = vpop.permute.xlu1 %624  ;;  %v623_v44 = vpop.permute.xlu0 %622 }
  0x9f   : > { %v648_v46 = vsel %vm646_vm2, %v5474_v42, %v625_v43  ;;  %v647_v47 = vsel %vm646_vm2, %v5473_v45, %v623_v44 }
  0xa0   : > { %6006 = vmatprep.mubr.msk.f32.mxu0 %vm668_vm3, %v647_v47 }
  0xa1   : > { %6007 = vmatmul.mubr.msk.f32.vlgmr.msra.gmra.mrb[0].mxu0 %vm668_vm3, %v648_v46 }
  0xa2   : > { %v380_v48 = vpop.permute.xlu1 %379  ;;  %v377_v49 = vpop.permute.xlu0 %376 }
  0xa3   : > { %vm388_vm8 = vcmp.eq.s32.totalorder %v7268_v38, %v380_v48  ;;  %vm387_vm9 = vcmp.eq.s32.totalorder %v7268_v38, %v377_v49 }
  0xa4   : > { %v5480_v62 = vsel %vm388_vm8, 1.0, %v9967_v41  ;;  %v5479_v63 = vsel %vm387_vm9, 1.0, %v9967_v41 }
  0xa6   : > { %v629_v52 = vpop.permute.xlu1 %628  ;;  %v627_v53 = vpop.permute.xlu0 %626 }
  0xa7   : > { %v650_v54 = vsel %vm646_vm2, %v5476_v51, %v629_v52  ;;  %v649_v55 = vsel %vm646_vm2, %v5475_v50, %v627_v53 }
  0xa8   : > { %6009 = vmatprep.mubr.msk.f32.mxu0 %vm668_vm3, %v649_v55 }
  0xa9   : > { %6010 = vmatmul.mubr.msk.f32.gmra.mrb[2].mxu0 %vm668_vm3, %v650_v54 }
  0xaa   : > { %v633_v58 = vpop.permute.xlu1 %632  ;;  %v631_v59 = vpop.permute.xlu0 %630 }
  0xab   : > { %v652_v60 = vsel %vm646_vm2, %v5478_v56, %v633_v58  ;;  %v651_v61 = vsel %vm646_vm2, %v5477_v57, %v631_v59 }
  0xac   : > { %6012 = vmatprep.mubr.msk.f32.mxu0 %vm668_vm3, %v651_v61 }
  0xad   : > { %6013 = vmatmul.mubr.msk.f32.gmra.mrb[4].mxu0 %vm668_vm3, %v652_v60 }
  0xae   : > { %v637_v0 = vpop.permute.xlu1 %636  ;;  %v635_v1 = vpop.permute.xlu0 %634 }
  0xaf   : > { %v654_v3 = vsel %vm646_vm2, %v5480_v62, %v637_v0  ;;  %v653_v4 = vsel %vm646_vm2, %v5479_v63, %v635_v1 }
  0xb0   : > { %6015 = vmatprep.mubr.msk.f32.mxu0 %vm668_vm3, %v653_v4 }
  0xb1   : > { %6016 = vmatmul.mubr.msk.f32.gmra.mrb[6].mxu0 %vm668_vm3, %v654_v3 }
  0xb2   : > { %v962_v35 = vpop.permute.xlu0 %961 }
 0x174   : > { %v6008_v14 = vpop.f32.mrb[0].mxu0 }
 0x175   : > { %v759_v15 = vpop.f32.mrb[1].mxu0  ;;  %v7327_v17 = vadd.f32 %v6008_v14, %v7321_v13 }
 0x176   : > { %v7324_v16 = vadd.f32 %v759_v15, %v7321_v13 }
 0x178   : > { %6026 = vmatprep.mubr.msk.f32.mxu1 %vm806_vm10, %v7324_v16 }
 0x179   : > { %6027 = vmatmul.mubr.msk.f32.vlgmr.msra.gmra.mrb[0].mxu1 %vm806_vm10, %v7327_v17 }
 0x17c   : > { %v6011_v18 = vpop.f32.mrb[2].mxu0 }
 0x17d   : > { %v769_v19 = vpop.f32.mrb[3].mxu0  ;;  %v7337_v21 = vadd.f32 %v6011_v18, %v7321_v13 }
 0x17e   : > { %v7334_v20 = vadd.f32 %v769_v19, %v7321_v13 }
 0x180   : > { %v6014_v22 = vpop.f32.mrb[4].mxu0  ;;  %6029 = vmatprep.mubr.msk.f32.mxu1 %vm806_vm10, %v7334_v20 }
 0x181   : > { %v779_v23 = vpop.f32.mrb[5].mxu0  ;;  %6030 = vmatmul.mubr.msk.f32.gmra.mrb[2].mxu1 %vm806_vm10, %v7337_v21  ;;  %v7347_v25 = vadd.f32 %v6014_v22, %v7321_v13 }
 0x182   : > { %v7344_v24 = vadd.f32 %v779_v23, %v7321_v13 }
 0x184   : > { %v6017_v26 = vpop.f32.mrb[6].mxu0  ;;  %6032 = vmatprep.mubr.msk.f32.mxu1 %vm806_vm10, %v7344_v24 }
 0x185   : > { %v789_v27 = vpop.f32.mrb[7].mxu0  ;;  %6033 = vmatmul.mubr.msk.f32.gmra.mrb[4].mxu1 %vm806_vm10, %v7347_v25  ;;  %v7357_v29 = vadd.f32 %v6017_v26, %v7321_v13 }
 0x186   : > { %v7354_v28 = vadd.f32 %v789_v27, %v7321_v13 }
 0x188   : > { %6035 = vmatprep.mubr.msk.f32.mxu1 %vm806_vm10, %v7354_v28 }
 0x189   : > { %6036 = vmatmul.mubr.msk.f32.gmra.mrb[6].mxu1 %vm806_vm10, %v7357_v29 }
 0x24c   : > { %v6028_v30 = vpop.f32.mrb[0].mxu1 }
 0x24d   : > { %v903_v31 = vadd.f32 %v6028_v30, %v7314_v11  ;;  %v897_v32 = vpop.f32.mrb[1].mxu1  ;;  %v7148_v30 = vmov 32  }
 0x24e   : > { %v898_v33 = vadd.f32 %v897_v32, %v7314_v11  ;;  %6628 = vset.pattern.permute.xlu1 %v7148_v30  ;;  %6627 = vset.pattern.permute.xlu0 %v7148_v30 }
 0x24f   : > { %vm937_vm11 = vcmp.ge.f32.partialorder %v903_v31, 0.0  ;;  %v945_v34 = vmul.f32 0.2, %v903_v31 }
 0x250   : > { %vm936_vm12 = vcmp.ge.f32.partialorder %v898_v33, 0.0  ;;  %v944_v36 = vmul.f32 0.2, %v898_v33 }
 0x251   : > { %v953_v37 = vsel %vm937_vm11, %v903_v31, %v945_v34 }
 0x252   : > { %v965_v39 = vmul.f32 %v962_v35, %v953_v37  ;;  %v952_v40 = vsel %vm936_vm12, %v898_v33, %v944_v36 }
 0x253   : > { %v964_v42 = vmul.f32 %v962_v35, %v952_v40 }
 0x254   : > { %v6031_v43 = vpop.f32.mrb[2].mxu1  ;;  %v976_v44 = vsel %vm972_vm13, %v965_v39, 0.0 }
 0x255   : > { %v913_v45 = vadd.f32 %v6031_v43, %v7314_v11  ;;  %v907_v46 = vpop.f32.mrb[3].mxu1  ;;  %977 = vadd.xlane.f32.xlu0 %v976_v44  ;;  %v973_v47 = vsel %vm972_vm13, %v964_v42, 0.0 }
 0x256   : > { %v908_v48 = vadd.f32 %v907_v46, %v7314_v11  ;;  %974 = vadd.xlane.f32.xlu1 %v973_v47 }
 0x257   : > { %vm939_vm14 = vcmp.ge.f32.partialorder %v913_v45, 0.0  ;;  %v947_v49 = vmul.f32 0.2, %v913_v45 }
 0x258   : > { %vm938_vm15 = vcmp.ge.f32.partialorder %v908_v48, 0.0  ;;  %v946_v50 = vmul.f32 0.2, %v908_v48  ;;  %v6034_v51 = vpop.f32.mrb[4].mxu1 }
 0x259   : > { %v923_v52 = vadd.f32 %v6034_v51, %v7314_v11  ;;  %v917_v53 = vpop.f32.mrb[5].mxu1  ;;  %v955_v54 = vsel %vm939_vm14, %v913_v45, %v947_v49 }
 0x25a   : > { %v918_v55 = vadd.f32 %v917_v53, %v7314_v11  ;;  %v967_v56 = vmul.f32 %v962_v35, %v955_v54  ;;  %v954_v57 = vsel %vm938_vm15, %v908_v48, %v946_v50 }
 0x25b   : > { %vm941_vm0 = vcmp.ge.f32.partialorder %v923_v52, 0.0  ;;  %v949_v58 = vmul.f32 0.2, %v923_v52  ;;  %v966_v59 = vmul.f32 %v962_v35, %v954_v57 }
 0x25c   : > { %vm940_vm1 = vcmp.ge.f32.partialorder %v918_v55, 0.0  ;;  %v948_v60 = vmul.f32 0.2, %v918_v55  ;;  %v6037_v61 = vpop.f32.mrb[6].mxu1  ;;  %v982_v62 = vsel %vm972_vm13, %v967_v56, 0.0 }
 0x25d   : > { %v933_v63 = vadd.f32 %v6037_v61, %v7314_v11  ;;  %v927_v0 = vpop.f32.mrb[7].mxu1  ;;  %983 = vadd.xlane.f32.xlu1 %v982_v62  ;;  %v979_v1 = vsel %vm972_vm13, %v966_v59, 0.0  ;;  %v957_v3 = vsel %vm941_vm0, %v923_v52, %v949_v58 }
 0x25e   : > { %v928_v4 = vadd.f32 %v927_v0, %v7314_v11  ;;  %980 = vadd.xlane.f32.xlu0 %v979_v1  ;;  %v969_v5 = vmul.f32 %v962_v35, %v957_v3  ;;  %v956_v6 = vsel %vm940_vm1, %v918_v55, %v948_v60 }
 0x25f   : > { %vm943_vm3 = vcmp.ge.f32.partialorder %v933_v63, 0.0  ;;  %v951_v7 = vmul.f32 0.2, %v933_v63  ;;  %v968_v9 = vmul.f32 %v962_v35, %v956_v6 }
 0x260   : > { %vm942_vm4 = vcmp.ge.f32.partialorder %v928_v4, 0.0  ;;  %v950_v10 = vmul.f32 0.2, %v928_v4  ;;  %v988_v14 = vsel %vm972_vm13, %v969_v5, 0.0 }
 0x261   : > { %989 = vadd.xlane.f32.xlu1 %v988_v14  ;;  %v985_v15 = vsel %vm972_vm13, %v968_v9, 0.0  ;;  %v959_v18 = vsel %vm943_vm3, %v933_v63, %v951_v7 }
 0x262   : > { %986 = vadd.xlane.f32.xlu0 %v985_v15  ;;  %v971_v19 = vmul.f32 %v962_v35, %v959_v18  ;;  %v958_v22 = vsel %vm942_vm4, %v928_v4, %v950_v10 }
 0x263   : > { %v970_v23 = vmul.f32 %v962_v35, %v958_v22  ;;  %v298_v22 = vld [vmem:[%s7216_s10 + $0x48] sm:$0xff] }
 0x264   : > { %v994_v26 = vsel %vm972_vm13, %v971_v19, 0.0 }
 0x265   : > { %995 = vadd.xlane.f32.xlu1 %v994_v26  ;;  %v991_v27 = vsel %vm972_vm13, %v970_v23, 0.0 }
 0x266   : > { %992 = vadd.xlane.f32.xlu0 %v991_v27 }
 0x2e2   : > { %v978_v31 = vpop.xlane.xlu0 %977 }
 0x2e3   : > { %v998_v32 = vadd.f32 %v978_v31, %v7314_v11  ;;  %v975_v33 = vpop.xlane.xlu1 %974  ;;  %v301_v31 = vld [vmem:[%s7216_s10 + $0x60] sm:$0xff] }
 0x2e4   : > { %v997_v34 = vadd.f32 %v975_v33, %v7314_v11 }
 0x2e5   : > { %v1006_v36 = vsub.f32 0.0, %v998_v32 }
 0x2e6   : > { %v1005_v37 = vsub.f32 0.0, %v997_v34 }
 0x2e7   : > { %v1015_v35 = vmul.f32 1.442695, %v1006_v36  ;;  %v303_v36 = vld [vmem:[%s7216_s10 + $0x70] sm:$0xff] }
 0x2e8   : > { %v1013_v39 = vmul.f32 1.442695, %v1005_v37 }
 0x2e9   : > { %6813 = vpow2.f32 %v1015_v35 }
 0x2ea   : > { %6815 = vpow2.f32 %v1013_v39  ;;  %v984_v40 = vpop.xlane.xlu1 %983  ;;  %v305_v39 = vld [vmem:[%s7216_s10 + $0x80] sm:$0xff] }
 0x2eb   : > { %v1000_v42 = vadd.f32 %v984_v40, %v7314_v11  ;;  %v981_v43 = vpop.xlane.xlu0 %980 }
 0x2ec   : > { %v999_v44 = vadd.f32 %v981_v43, %v7314_v11 }
 0x2ed   : > { %v1008_v45 = vsub.f32 0.0, %v1000_v42  ;;  %v307_v42 = vld [vmem:[%s7216_s10 + $0x90] sm:$0xff] }
 0x2ee   : > { %v1007_v46 = vsub.f32 0.0, %v999_v44  ;;  %v990_v47 = vpop.xlane.xlu1 %989  ;;  %v309_v44 = vld [vmem:[%s7216_s10 + $0xa0] sm:$0xff] }
 0x2ef   : > { %v1019_v48 = vmul.f32 1.442695, %v1008_v45  ;;  %v1002_v49 = vadd.f32 %v990_v47, %v7314_v11  ;;  %v987_v50 = vpop.xlane.xlu0 %986  ;;  %v1109_v45 = vld [vmem:[%s9962_s3 + $0x48] sm:$0xff]  ;;  %v311_v47 = vld [vmem:[%s7216_s10 + $0xb0] sm:$0xff] }
 0x2f0   : > { %v1017_v51 = vmul.f32 1.442695, %v1007_v46  ;;  %v1001_v52 = vadd.f32 %v987_v50, %v7314_v11  ;;  %6038 = vmatprep.subr.mxu1 %v1109_v45  ;;  %v331_v50 = vld [vmem:[%s7239_s23 + $0x48] sm:$0xff] }
 0x2f1   : > { %6817 = vpow2.f32 %v1019_v48  ;;  %v1010_v53 = vsub.f32 0.0, %v1002_v49  ;;  %6039 = vmatpush3.msra.mxu1 %v1109_v45  ;;  %v330_v48 = vld [vmem:[%s7239_s23 + $0x40] sm:$0xff] }
 0x2f2   : > { %6819 = vpow2.f32 %v1017_v51  ;;  %v1009_v54 = vsub.f32 0.0, %v1001_v52  ;;  %v996_v55 = vpop.xlane.xlu1 %995  ;;  %v297_v49 = vld [vmem:[%s7216_s10 + $0x40] sm:$0xff]  ;;  %6040 = vmatprep.mubr.msk.f32.mxu1 %vm1114_vm5, %v330_v48  ;;  %v332_v52 = vld [vmem:[%s7239_s23 + $0x50] sm:$0xff] }
 0x2f3   : > { %v6814_v56 = vpop.eup %6813  ;;  %v1023_v57 = vmul.f32 1.442695, %v1010_v53  ;;  %v1004_v58 = vadd.f32 %v996_v55, %v7314_v11  ;;  %v993_v59 = vpop.xlane.xlu0 %992  ;;  %v313_v51 = vld [vmem:[%s7216_s10 + $0xc0] sm:$0xff]  ;;  %6041 = vmatmul.mubr.msk.f32.vlgmr.msra.gmra.mrb[8].mxu1 %vm1114_vm5, %v331_v50  ;;  %v299_v53 = vld [vmem:[%s7216_s10 + $0x50] sm:$0xff] }
 0x2f4   : > { %v6816_v60 = vpop.eup %6815  ;;  %v1030_v61 = vadd.f32 1.0, %v6814_v56  ;;  %v1021_v62 = vmul.f32 1.442695, %v1009_v54  ;;  %v1003_v1 = vadd.f32 %v993_v59, %v7314_v11  ;;  %6043 = vmatprep.mubr.msk.f32.mxu1 %vm1114_vm5, %v332_v52  ;;  %v333_v54 = vld [vmem:[%s7239_s23 + $0x58] sm:$0xff]  ;;  %v315_v55 = vld [vmem:[%s7216_s10 + $0xd0] sm:$0xff]  ;;  %v334_v56 = vld [vmem:[%s7239_s23 + $0x60] sm:$0xff] }
 0x2f5   : > { %v1029_v63 = vadd.f32 1.0, %v6816_v60  ;;  %6821 = vpow2.f32 %v1023_v57  ;;  %v1012_v0 = vsub.f32 0.0, %v1004_v58  ;;  %v335_v57 = vld [vmem:[%s7239_s23 + $0x68] sm:$0xff]  ;;  %v317_v58 = vld [vmem:[%s7216_s10 + $0xe0] sm:$0xff]  ;;  %v336_v59 = vld [vmem:[%s7239_s23 + $0x70] sm:$0xff] }
 0x2f6   : > { %6823 = vrcp.f32 %v1030_v61  ;;  %v1011_v4 = vsub.f32 0.0, %v1003_v1  ;;  %v302_v60 = vld [vmem:[%s7216_s10 + $0x68] sm:$0xff]  ;;  %v337_v61 = vld [vmem:[%s7239_s23 + $0x78] sm:$0xff] }
 0x2f7   : > { %6825 = vrcp.f32 %v1029_v63  ;;  %v1027_v3 = vmul.f32 1.442695, %v1012_v0  ;;  %6044 = vmatmul.mubr.msk.f32.gmra.mrb[10].mxu1 %vm1114_vm5, %v333_v54  ;;  %v338_v63 = vld [vmem:[%s7239_s23 + $0x80] sm:$0xff]  ;;  %v304_v0 = vld [vmem:[%s7216_s10 + $0x78] sm:$0xff]  ;;  %v339_v1 = vld [vmem:[%s7239_s23 + $0x88] sm:$0xff] }
 0x2f8   : > { %6827 = vpow2.f32 %v1021_v62  ;;  %v1025_v9 = vmul.f32 1.442695, %v1011_v4  ;;  %6046 = vmatprep.mubr.msk.f32.mxu1 %vm1114_vm5, %v334_v56  ;;  %v319_v62 = vld [vmem:[%s7216_s10 + $0xf0] sm:$0xff]  ;;  %v306_v4 = vld [vmem:[%s7216_s10 + $0x88] sm:$0xff] }
 0x2f9   : > { %6829 = vpow2.f32 %v1027_v3  ;;  %v340_v3 = vld [vmem:[%s7239_s23 + $0x90] sm:$0xff] }
 0x2fb   : > { %v6818_v5 = vpop.eup %6817  ;;  %6047 = vmatmul.mubr.msk.f32.gmra.mrb[12].mxu1 %vm1114_vm5, %v335_v57 }
 0x2fc   : > { %v6820_v6 = vpop.eup %6819  ;;  %v1032_v7 = vadd.f32 1.0, %v6818_v5  ;;  %6049 = vmatprep.mubr.msk.f32.mxu1 %vm1114_vm5, %v336_v59  ;;  %v341_v5 = vld [vmem:[%s7239_s23 + $0x98] sm:$0xff] }
 0x2fd   : > { %v1031_v10 = vadd.f32 1.0, %v6820_v6  ;;  %v342_v6 = vld [vmem:[%s7239_s23 + $0xa0] sm:$0xff] }
 0x2fe   : > { %6831 = vrcp.f32 %v1032_v7  ;;  %v308_v7 = vld [vmem:[%s7216_s10 + $0x98] sm:$0xff] }
 0x2ff   : > { %v6822_v14 = vpop.eup %6821  ;;  %6833 = vpow2.f32 %v1025_v9  ;;  %6050 = vmatmul.mubr.msk.f32.gmra.mrb[14].mxu1 %vm1114_vm5, %v337_v61  ;;  %v343_v9 = vld [vmem:[%s7239_s23 + $0xa8] sm:$0xff] }
 0x300   : > { %v6824_v15 = vpop.eup %6823  ;;  %6835 = vrcp.f32 %v1031_v10  ;;  %v1034_v11 = vadd.f32 1.0, %v6822_v14  ;;  %6052 = vmatprep.mubr.msk.f32.mxu1 %vm1114_vm5, %v338_v63  ;;  %v344_v10 = vld [vmem:[%s7239_s23 + $0xb0] sm:$0xff]  ;;  %v310_v14 = vld [vmem:[%s7216_s10 + $0xa8] sm:$0xff] }
 0x301   : > { %v6826_v18 = vpop.eup %6825  ;;  %1060 = vperm.xlu1 %6628, %v6824_v15   ;;  %v345_v15 = vld [vmem:[%s7239_s23 + $0xb8] sm:$0xff] }
 0x302   : > { %1055 = vperm.xlu0 %6627, %v6826_v18   ;;  %v6828_v19 = vpop.eup %6827  ;;  %6837 = vrcp.f32 %v1034_v11  ;;  %v346_v18 = vld [vmem:[%s7239_s23 + $0xc0] sm:$0xff]  ;;  %v312_v11 = vld [vmem:[%s7216_s10 + $0xb8] sm:$0xff] }
 0x303   : > { %v1033_v23 = vadd.f32 1.0, %v6828_v19  ;;  %v6830_v26 = vpop.eup %6829  ;;  %6053 = vmatmul.mubr.msk.f32.gmra.mrb[16].mxu1 %vm1114_vm5, %v339_v1  ;;  %v347_v19 = vld [vmem:[%s7239_s23 + $0xc8] sm:$0xff] }
 0x304   : > { %v1036_v32 = vadd.f32 1.0, %v6830_v26  ;;  %6055 = vmatprep.mubr.msk.f32.mxu1 %vm1114_vm5, %v340_v3  ;;  %v349_v26 = vld [vmem:[%s7239_s23 + $0xd8] sm:$0xff] }
 0x305   : > { %6839 = vrcp.f32 %v1033_v23  ;;  %v314_v23 = vld [vmem:[%s7216_s10 + $0xc8] sm:$0xff] }
 0x306   : > { %6630 = vset.pattern.permute.xlu0 %v7144_v2  ;;  %6841 = vrcp.f32 %v1036_v32  ;;  %v351_v32 = vld [vmem:[%s7239_s23 + $0xe8] sm:$0xff] }
 0x307   : > { %409 = vperm.xlu0 %6630, %v298_v22   ;;  %6056 = vmatmul.mubr.msk.f32.gmra.mrb[18].mxu1 %vm1114_vm5, %v341_v5  ;;  %v348_v22 = vld [vmem:[%s7239_s23 + $0xd0] sm:$0xff] }
 0x308   : > { %v6832_v27 = vpop.eup %6831  ;;  %6058 = vmatprep.mubr.msk.f32.mxu1 %vm1114_vm5, %v342_v6 }
 0x309   : > { %1070 = vperm.xlu1 %6628, %v6832_v27   ;;  %v6834_v33 = vpop.eup %6833  ;;  %v350_v27 = vld [vmem:[%s7239_s23 + $0xe0] sm:$0xff] }
 0x30a   : > { %v6836_v34 = vpop.eup %6835  ;;  %v1035_v37 = vadd.f32 1.0, %v6834_v33  ;;  %v352_v33 = vld [vmem:[%s7239_s23 + $0xf0] sm:$0xff] }
 0x30b   : > { %418 = vperm.xlu0 %6630, %v301_v31   ;;  %6059 = vmatmul.mubr.msk.f32.gmra.mrb[20].mxu1 %vm1114_vm5, %v343_v9  ;;  %v316_v31 = vld [vmem:[%s7216_s10 + $0xd8] sm:$0xff] }
 0x30c   : > { %v6838_v35 = vpop.eup %6837  ;;  %6843 = vrcp.f32 %v1035_v37  ;;  %6061 = vmatprep.mubr.msk.f32.mxu1 %vm1114_vm5, %v344_v10  ;;  %v320_v37 = vld [vmem:[%s7216_s10 + $0xf8] sm:$0xff] }
 0x30d   : > { %1065 = vperm.xlu1 %6628, %v6836_v34   ;;  %v318_v34 = vld [vmem:[%s7216_s10 + $0xe8] sm:$0xff] }
 0x30f   : > { %424 = vperm.xlu0 %6630, %v303_v36   ;;  %v6840_v40 = vpop.eup %6839  ;;  %6062 = vmatmul.mubr.msk.f32.gmra.mrb[22].mxu1 %vm1114_vm5, %v345_v15  ;;  %v353_v36 = vld [vmem:[%s7239_s23 + $0xf8] sm:$0xff]  ;;  %s278_s23 = scalar_lea.vmem %s9960_s1, %s5468_s18 }
 0x310   : > { %v6842_v43 = vpop.eup %6841  ;;  %6064 = vmatprep.mubr.msk.f32.mxu1 %vm1114_vm5, %v346_v18 }
 0x311   : > { %1080 = vperm.xlu1 %6628, %v6838_v35  }
 0x313   : > { %430 = vperm.xlu0 %6630, %v305_v39   ;;  %6065 = vmatmul.mubr.msk.f32.gmra.mrb[24].mxu1 %vm1114_vm5, %v347_v19 }
 0x314   : > { %6067 = vmatprep.mubr.msk.f32.mxu1 %vm1114_vm5, %v348_v22 }
 0x315   : > { %1075 = vperm.xlu1 %6628, %v6840_v40  }
 0x316   : > { %v6844_v46 = vpop.eup %6843 }
 0x317   : > { %436 = vperm.xlu0 %6630, %v307_v42   ;;  %6068 = vmatmul.mubr.msk.f32.gmra.mrb[26].mxu1 %vm1114_vm5, %v349_v26 }
 0x318   : > { %6070 = vmatprep.mubr.msk.f32.mxu1 %vm1114_vm5, %v350_v27 }
 0x319   : > { %1090 = vperm.xlu1 %6628, %v6842_v43  }
 0x31b   : > { %442 = vperm.xlu0 %6630, %v309_v44   ;;  %6071 = vmatmul.mubr.msk.f32.gmra.mrb[28].mxu1 %vm1114_vm5, %v351_v32 }
 0x31c   : > { %6073 = vmatprep.mubr.msk.f32.mxu1 %vm1114_vm5, %v352_v33 }
 0x31d   : > { %1085 = vperm.xlu1 %6628, %v6844_v46  }
 0x31f   : > { %448 = vperm.xlu0 %6630, %v311_v47   ;;  %6074 = vmatmul.mubr.msk.f32.gmra.mrb[30].mxu1 %vm1114_vm5, %v353_v36 }
 0x321   : > { %6629 = vset.pattern.permute.xlu1 %v7144_v2  ;;  %v300_v2 = vld [vmem:[%s7216_s10 + $0x58] sm:$0xff]  ;;  %s7151_s10 = smov 32  }
 0x322   : > { %406 = vperm.xlu1 %6629, %v297_v49  }
 0x323   : > { %454 = vperm.xlu0 %6630, %v313_v51  }
 0x326   : > { %412 = vperm.xlu1 %6629, %v299_v53  }
 0x327   : > { %460 = vperm.xlu0 %6630, %v315_v55  }
 0x32a   : > { %415 = vperm.xlu1 %6629, %v300_v2  }
 0x32b   : > { %466 = vperm.xlu0 %6630, %v317_v58  }
 0x32e   : > { %421 = vperm.xlu1 %6629, %v302_v60  }
 0x32f   : > { %472 = vperm.xlu0 %6630, %v319_v62  }
 0x332   : > { %427 = vperm.xlu1 %6629, %v304_v0  }
 0x333   : > { %6691 = vset.pattern.permute.xlu0 %v7148_v30 }
 0x334   : > { %1111 = vrot.lane.b32.xlu0 %v7321_v13, %s7149_s17 }
 0x336   : > { %433 = vperm.xlu1 %6629, %v306_v4  }
 0x33a   : > { %439 = vperm.xlu1 %6629, %v308_v7  }
 0x33e   : > { %445 = vperm.xlu1 %6629, %v310_v14  }
 0x342   : > { %451 = vperm.xlu1 %6629, %v312_v11  }
 0x346   : > { %457 = vperm.xlu1 %6629, %v314_v23  }
 0x34a   : > { %463 = vperm.xlu1 %6629, %v316_v31  }
 0x34e   : > { %469 = vperm.xlu1 %6629, %v318_v34  }
 0x352   : > { %475 = vperm.xlu1 %6629, %v320_v37  }
 0x356   : > { %6692 = vset.pattern.permute.xlu1 %v7148_v30 }
 0x380   : > { %v7470_v35 = vpop.permute.xlu1 %1060 }
 0x381   : > { %10147 = vst [vmem:[#allocation3_spill] sm:$0xff] %v7470_v35  ;;  %v7474_v39 = vmul.f32 %v7470_v35, %v7327_v17  ;;  %v7476_v40 = vpop.permute.xlu0 %1055 }
 0x382   : > { %10148 = vst [vmem:[#allocation4_spill] sm:$0xff] %v7476_v40  ;;  %v7480_v42 = vmul.f32 %v7476_v40, %v7324_v16 }
 0x384   : > { %v6396_v43 = vpack.c.bf16 %v7474_v39, %v7480_v42 }
 0x386   : > { %6397 = vmatprep.subr.bf16.mxu0 %v6396_v43  ;;  %v410_v46 = vpop.permute.xlu0 %409 }
 0x387   : > { %6399 = vmatpush3.bf16.msra.mxu0 %v6396_v43  ;;  %vm478_vm6 = vcmp.eq.s32.totalorder %v7268_v38, %v410_v46 }
 0x388   : > { %v7484_v44 = vpop.permute.xlu1 %1070  ;;  %v7528_v2 = vsel %vm478_vm6, 1.0, %v9967_v41 }
 0x389   : > { %10149 = vst [vmem:[#allocation5_spill] sm:$0xff] %v7484_v44  ;;  %v7490_v45 = vmul.f32 %v7484_v44, %v7337_v21  ;;  %10157 = vst [vmem:[#allocation13_spill] sm:$0xff] %v7528_v2 }
 0x38a   : > { %v419_v48 = vpop.permute.xlu0 %418 }
 0x38b   : > { %vm481_vm9 = vcmp.eq.s32.totalorder %v7268_v38, %v419_v48 }
 0x38c   : > { %v7486_v30 = vpop.permute.xlu1 %1065  ;;  %v7550_v61 = vsel %vm481_vm9, 1.0, %v9967_v41 }
 0x38d   : > { %10150 = vst [vmem:[#allocation6_spill] sm:$0xff] %v7486_v30  ;;  %v7494_v17 = vmul.f32 %v7486_v30, %v7334_v20  ;;  %10161 = vst [vmem:[#allocation17_spill] sm:$0xff] %v7550_v61 }
 0x38e   : > { %v425_v52 = vpop.permute.xlu0 %424 }
 0x38f   : > { %v6400_v16 = vpack.c.bf16 %v7490_v45, %v7494_v17  ;;  %vm483_vm12 = vcmp.eq.s32.totalorder %v7268_v38, %v425_v52 }
 0x390   : > { %v7498_v47 = vpop.permute.xlu1 %1080  ;;  %v7562_v1 = vsel %vm483_vm12, 1.0, %v9967_v41 }
 0x391   : > { %10151 = vst [vmem:[#allocation7_spill] sm:$0xff] %v7498_v47  ;;  %6401 = vmatprep.subr.bf16.mxu0 %v6400_v16  ;;  %v7504_v50 = vmul.f32 %v7498_v47, %v7347_v25  ;;  %10163 = vst [vmem:[#allocation19_spill] sm:$0xff] %v7562_v1 }
 0x392   : > { %6403 = vmatpush3.bf16.msra.mxu0 %v6400_v16  ;;  %v431_v55 = vpop.permute.xlu0 %430 }
 0x393   : > { %vm485_vm15 = vcmp.eq.s32.totalorder %v7268_v38, %v431_v55 }
 0x394   : > { %v7500_v49 = vpop.permute.xlu1 %1075  ;;  %v7574_v6 = vsel %vm485_vm15, 1.0, %v9967_v41 }
 0x395   : > { %10152 = vst [vmem:[#allocation8_spill] sm:$0xff] %v7500_v49  ;;  %v7508_v21 = vmul.f32 %v7500_v49, %v7344_v24  ;;  %10165 = vst [vmem:[#allocation21_spill] sm:$0xff] %v7574_v6 }
 0x396   : > { %v437_v57 = vpop.permute.xlu0 %436 }
 0x397   : > { %v6404_v20 = vpack.c.bf16 %v7504_v50, %v7508_v21  ;;  %vm487_vm1 = vcmp.eq.s32.totalorder %v7268_v38, %v437_v57 }
 0x398   : > { %v7512_v51 = vpop.permute.xlu1 %1090  ;;  %v7586_v10 = vsel %vm487_vm1, 1.0, %v9967_v41 }
 0x399   : > { %10153 = vst [vmem:[#allocation9_spill] sm:$0xff] %v7512_v51  ;;  %6405 = vmatprep.subr.bf16.mxu0 %v6404_v20  ;;  %v7518_v54 = vmul.f32 %v7512_v51, %v7357_v29  ;;  %10167 = vst [vmem:[#allocation23_spill] sm:$0xff] %v7586_v10 }
 0x39a   : > { %6407 = vmatpush3.bf16.msra.mxu0 %v6404_v20  ;;  %v443_v62 = vpop.permute.xlu0 %442 }
 0x39b   : > { %10155 = vst [vmem:[#allocation11_spill] sm:$0xff] %v7518_v54  ;;  %vm489_vm4 = vcmp.eq.s32.totalorder %v7268_v38, %v443_v62 }
 0x39c   : > { %v7514_v53 = vpop.permute.xlu1 %1085  ;;  %v7598_v11 = vsel %vm489_vm4, 1.0, %v9967_v41 }
 0x39d   : > { %10154 = vst [vmem:[#allocation10_spill] sm:$0xff] %v7514_v53  ;;  %v7522_v25 = vmul.f32 %v7514_v53, %v7354_v28  ;;  %10169 = vst [vmem:[#allocation25_spill] sm:$0xff] %v7598_v11 }
 0x39e   : > { %v449_v4 = vpop.permute.xlu0 %448 }
 0x39f   : > { %10156 = vst [vmem:[#allocation12_spill] sm:$0xff] %v7522_v25  ;;  %v6408_v24 = vpack.c.bf16 %v7518_v54, %v7522_v25 }
 0x3a1   : > { %6409 = vmatprep.subr.bf16.mxu0 %v6408_v24  ;;  %v407_v56 = vpop.permute.xlu1 %406 }
 0x3a2   : > { %vm477_vm7 = vcmp.eq.s32.totalorder %v7268_v38, %v407_v56  ;;  %6411 = vmatpush3.bf16.msra.mxu0 %v6408_v24  ;;  %v455_v14 = vpop.permute.xlu0 %454 }
 0x3a3   : > { %v7532_v29 = vsel %vm477_vm7, 1.0, %v9967_v41  ;;  %vm491_vm7 = vcmp.eq.s32.totalorder %v7268_v38, %v449_v4  ;;  %vm493_vm9 = vcmp.eq.s32.totalorder %v7268_v38, %v455_v14 }
 0x3a4   : > { %10158 = vst [vmem:[#allocation14_spill] sm:$0xff] %v7532_v29  ;;  %6092 = vmatprep.mubr.msk.f32.mxu0 %vm646_vm2, %v7532_v29  ;;  %v7610_v26 = vsel %vm491_vm7, 1.0, %v9967_v41  ;;  %v7622_v32 = vsel %vm493_vm9, 1.0, %v9967_v41 }
 0x3a5   : > { %v413_v28 = vpop.permute.xlu1 %412  ;;  %6093 = vmatmul.mubr.msk.f32.vlgmr.msra.gmra.mrb[8].mxu0 %vm646_vm2, %v7528_v2  ;;  %10171 = vst [vmem:[#allocation27_spill] sm:$0xff] %v7610_v26  ;;  %10173 = vst [vmem:[#allocation29_spill] sm:$0xff] %v7622_v32 }
 0x3a6   : > { %vm479_vm8 = vcmp.eq.s32.totalorder %v7268_v38, %v413_v28  ;;  %v461_v22 = vpop.permute.xlu0 %460 }
 0x3a7   : > { %v7540_v58 = vsel %vm479_vm8, 1.0, %v9967_v41  ;;  %vm495_vm12 = vcmp.eq.s32.totalorder %v7268_v38, %v461_v22 }
 0x3a8   : > { %10159 = vst [vmem:[#allocation15_spill] sm:$0xff] %v7540_v58  ;;  %6095 = vmatprep.mubr.msk.f32.mxu0 %vm646_vm2, %v7540_v58  ;;  %v7634_v37 = vsel %vm495_vm12, 1.0, %v9967_v41 }
 0x3a9   : > { %v416_v59 = vpop.permute.xlu1 %415  ;;  %10175 = vst [vmem:[#allocation31_spill] sm:$0xff] %v7634_v37 }
 0x3aa   : > { %vm480_vm11 = vcmp.eq.s32.totalorder %v7268_v38, %v416_v59  ;;  %v467_v33 = vpop.permute.xlu0 %466 }
 0x3ab   : > { %v7547_v60 = vsel %vm480_vm11, 1.0, %v9967_v41  ;;  %vm497_vm15 = vcmp.eq.s32.totalorder %v7268_v38, %v467_v33 }
 0x3ac   : > { %10160 = vst [vmem:[#allocation16_spill] sm:$0xff] %v7547_v60  ;;  %6096 = vmatmul.mubr.msk.f32.gmra.mrb[10].mxu0 %vm646_vm2, %v7547_v60  ;;  %v7646_v48 = vsel %vm497_vm15, 1.0, %v9967_v41 }
 0x3ad   : > { %6098 = vmatprep.mubr.msk.f32.mxu0 %vm646_vm2, %v7550_v61  ;;  %v422_v63 = vpop.permute.xlu1 %421  ;;  %10177 = vst [vmem:[#allocation33_spill] sm:$0xff] %v7646_v48 }
 0x3ae   : > { %vm482_vm14 = vcmp.eq.s32.totalorder %v7268_v38, %v422_v63  ;;  %v473_v46 = vpop.permute.xlu0 %472 }
 0x3af   : > { %v7559_v0 = vsel %vm482_vm14, 1.0, %v9967_v41  ;;  %vm499_vm1 = vcmp.eq.s32.totalorder %v7268_v38, %v473_v46 }
 0x3b0   : > { %10162 = vst [vmem:[#allocation18_spill] sm:$0xff] %v7559_v0  ;;  %6099 = vmatmul.mubr.msk.f32.gmra.mrb[12].mxu0 %vm646_vm2, %v7559_v0  ;;  %v7658_v24 = vsel %vm499_vm1, 1.0, %v9967_v41 }
 0x3b1   : > { %6101 = vmatprep.mubr.msk.f32.mxu0 %vm646_vm2, %v7562_v1  ;;  %v428_v3 = vpop.permute.xlu1 %427  ;;  %10179 = vst [vmem:[#allocation35_spill] sm:$0xff] %v7658_v24 }
 0x3b2   : > { %vm484_vm0 = vcmp.eq.s32.totalorder %v7268_v38, %v428_v3 }
 0x3b3   : > { %v7571_v5 = vsel %vm484_vm0, 1.0, %v9967_v41 }
 0x3b4   : > { %10164 = vst [vmem:[#allocation20_spill] sm:$0xff] %v7571_v5  ;;  %6102 = vmatmul.mubr.msk.f32.gmra.mrb[14].mxu0 %vm646_vm2, %v7571_v5 }
 0x3b5   : > { %6104 = vmatprep.mubr.msk.f32.mxu0 %vm646_vm2, %v7574_v6  ;;  %v434_v7 = vpop.permute.xlu1 %433 }
 0x3b6   : > { %vm486_vm3 = vcmp.eq.s32.totalorder %v7268_v38, %v434_v7 }
 0x3b7   : > { %v7583_v9 = vsel %vm486_vm3, 1.0, %v9967_v41 }
 0x3b8   : > { %10166 = vst [vmem:[#allocation22_spill] sm:$0xff] %v7583_v9  ;;  %6105 = vmatmul.mubr.msk.f32.gmra.mrb[16].mxu0 %vm646_vm2, %v7583_v9 }
 0x3b9   : > { %6107 = vmatprep.mubr.msk.f32.mxu0 %vm646_vm2, %v7586_v10  ;;  %v440_v15 = vpop.permute.xlu1 %439 }
 0x3ba   : > { %vm488_vm6 = vcmp.eq.s32.totalorder %v7268_v38, %v440_v15 }
 0x3bb   : > { %v7595_v18 = vsel %vm488_vm6, 1.0, %v9967_v41 }
 0x3bc   : > { %10168 = vst [vmem:[#allocation24_spill] sm:$0xff] %v7595_v18  ;;  %6108 = vmatmul.mubr.msk.f32.gmra.mrb[18].mxu0 %vm646_vm2, %v7595_v18 }
 0x3bd   : > { %6110 = vmatprep.mubr.msk.f32.mxu0 %vm646_vm2, %v7598_v11  ;;  %v446_v19 = vpop.permute.xlu1 %445 }
 0x3be   : > { %vm490_vm8 = vcmp.eq.s32.totalorder %v7268_v38, %v446_v19 }
 0x3bf   : > { %v7607_v23 = vsel %vm490_vm8, 1.0, %v9967_v41 }
 0x3c0   : > { %10170 = vst [vmem:[#allocation26_spill] sm:$0xff] %v7607_v23  ;;  %6111 = vmatmul.mubr.msk.f32.gmra.mrb[20].mxu0 %vm646_vm2, %v7607_v23 }
 0x3c1   : > { %6113 = vmatprep.mubr.msk.f32.mxu0 %vm646_vm2, %v7610_v26  ;;  %v452_v27 = vpop.permute.xlu1 %451 }
 0x3c2   : > { %vm492_vm11 = vcmp.eq.s32.totalorder %v7268_v38, %v452_v27 }
 0x3c3   : > { %v7619_v31 = vsel %vm492_vm11, 1.0, %v9967_v41 }
 0x3c4   : > { %10172 = vst [vmem:[#allocation28_spill] sm:$0xff] %v7619_v31  ;;  %6114 = vmatmul.mubr.msk.f32.gmra.mrb[22].mxu0 %vm646_vm2, %v7619_v31 }
 0x3c5   : > { %6116 = vmatprep.mubr.msk.f32.mxu0 %vm646_vm2, %v7622_v32  ;;  %v458_v34 = vpop.permute.xlu1 %457  ;;  %v1112_v32 = vpop.permute.xlu0 %1111 }
 0x3c6   : > { %vm494_vm14 = vcmp.eq.s32.totalorder %v7268_v38, %v458_v34  ;;  %v6042_v28 = vpop.f32.mrb[8].mxu1 }
 0x3c7   : > { %v7631_v36 = vsel %vm494_vm14, 1.0, %v9967_v41  ;;  %v1253_v57 = vpop.f32.mrb[9].mxu1  ;;  %v7672_v26 = vadd.f32 %v6042_v28, %v1112_v32 }
 0x3c8   : > { %10174 = vst [vmem:[#allocation30_spill] sm:$0xff] %v7631_v36  ;;  %6117 = vmatmul.mubr.msk.f32.gmra.mrb[24].mxu0 %vm646_vm2, %v7631_v36  ;;  %v7674_v23 = vadd.f32 %v1253_v57, %v1112_v32 }
 0x3c9   : > { %6119 = vmatprep.mubr.msk.f32.mxu0 %vm646_vm2, %v7634_v37  ;;  %v464_v43 = vpop.permute.xlu1 %463  ;;  %10181 = vst [vmem:[#allocation37_spill] sm:$0xff] %v7672_v26 }
 0x3ca   : > { %vm496_vm0 = vcmp.eq.s32.totalorder %v7268_v38, %v464_v43  ;;  %v6045_v59 = vpop.f32.mrb[10].mxu1  ;;  %10182 = vst [vmem:[#allocation38_spill] sm:$0xff] %v7674_v23 }
 0x3cb   : > { %v7643_v16 = vsel %vm496_vm0, 1.0, %v9967_v41  ;;  %v1263_v62 = vpop.f32.mrb[11].mxu1  ;;  %v7676_v18 = vadd.f32 %v6045_v59, %v1112_v32 }
 0x3cc   : > { %10176 = vst [vmem:[#allocation32_spill] sm:$0xff] %v7643_v16  ;;  %6120 = vmatmul.mubr.msk.f32.gmra.mrb[26].mxu0 %vm646_vm2, %v7643_v16  ;;  %v7678_v10 = vadd.f32 %v1263_v62, %v1112_v32 }
 0x3cd   : > { %6122 = vmatprep.mubr.msk.f32.mxu0 %vm646_vm2, %v7646_v48  ;;  %v470_v20 = vpop.permute.xlu1 %469  ;;  %10183 = vst [vmem:[#allocation39_spill] sm:$0xff] %v7676_v18 }
 0x3ce   : > { %vm498_vm3 = vcmp.eq.s32.totalorder %v7268_v38, %v470_v20  ;;  %v6048_v63 = vpop.f32.mrb[12].mxu1  ;;  %10184 = vst [vmem:[#allocation40_spill] sm:$0xff] %v7678_v10 }
 0x3cf   : > { %v7655_v52 = vsel %vm498_vm3, 1.0, %v9967_v41  ;;  %v1273_v3 = vpop.f32.mrb[13].mxu1  ;;  %v7680_v9 = vadd.f32 %v6048_v63, %v1112_v32 }
 0x3d0   : > { %10178 = vst [vmem:[#allocation34_spill] sm:$0xff] %v7655_v52  ;;  %6123 = vmatmul.mubr.msk.f32.gmra.mrb[28].mxu0 %vm646_vm2, %v7655_v52  ;;  %v7682_v6 = vadd.f32 %v1273_v3, %v1112_v32 }
 0x3d1   : > { %6125 = vmatprep.mubr.msk.f32.mxu0 %vm646_vm2, %v7658_v24  ;;  %v476_v55 = vpop.permute.xlu1 %475  ;;  %10185 = vst [vmem:[#allocation41_spill] sm:$0xff] %v7680_v9 }
 0x3d2   : > { %vm500_vm4 = vcmp.eq.s32.totalorder %v7268_v38, %v476_v55  ;;  %v6051_v4 = vpop.f32.mrb[14].mxu1  ;;  %10186 = vst [vmem:[#allocation42_spill] sm:$0xff] %v7682_v6 }
 0x3d3   : > { %v7666_v56 = vsel %vm500_vm4, 1.0, %v9967_v41  ;;  %v1283_v7 = vpop.f32.mrb[15].mxu1  ;;  %v7684_v5 = vadd.f32 %v6051_v4, %v1112_v32 }
 0x3d4   : > { %10180 = vst [vmem:[#allocation36_spill] sm:$0xff] %v7666_v56  ;;  %6126 = vmatmul.mubr.msk.f32.gmra.mrb[30].mxu0 %vm646_vm2, %v7666_v56  ;;  %v7689_v60 = vadd.f32 %v1283_v7, %v1112_v32 }
 0x3d5   : > { %10187 = vst [vmem:[#allocation43_spill] sm:$0xff] %v7684_v5 }
 0x3d6   : > { %v6054_v14 = vpop.f32.mrb[16].mxu1  ;;  %10188 = vst [vmem:[#allocation44_spill] sm:$0xff] %v7689_v60 }
 0x3d7   : > { %v1293_v15 = vpop.f32.mrb[17].mxu1  ;;  %v7691_v59 = vadd.f32 %v6054_v14, %v1112_v32 }
 0x3d8   : > { %v7695_v3 = vadd.f32 %v1293_v15, %v1112_v32 }
 0x3d9   : > { %10189 = vst [vmem:[#allocation45_spill] sm:$0xff] %v7691_v59 }
 0x3da   : > { %v6057_v19 = vpop.f32.mrb[18].mxu1  ;;  %10190 = vst [vmem:[#allocation46_spill] sm:$0xff] %v7695_v3 }
 0x3db   : > { %v1303_v22 = vpop.f32.mrb[19].mxu1  ;;  %v7697_v4 = vadd.f32 %v6057_v19, %v1112_v32 }
 0x3dd   : > { %10191 = vst [vmem:[#allocation47_spill] sm:$0xff] %v7697_v4 }
 0x3de   : > { %v6060_v27 = vpop.f32.mrb[20].mxu1 }
 0x3df   : > { %v1313_v38 = vpop.f32.mrb[21].mxu1 }
 0x3e2   : > { %v6063_v33 = vpop.f32.mrb[22].mxu1 }
 0x3e3   : > { %v1323_v34 = vpop.f32.mrb[23].mxu1 }
 0x3e4   : > { %v7709_v15 = vadd.f32 %v1323_v34, %v1112_v32 }
 0x3e6   : > { %v6066_v43 = vpop.f32.mrb[24].mxu1  ;;  %10196 = vst [vmem:[#allocation52_spill] sm:$0xff] %v7709_v15 }
 0x3e7   : > { %v1333_v46 = vpop.f32.mrb[25].mxu1  ;;  %v7711_v19 = vadd.f32 %v6066_v43, %v1112_v32 }
 0x3e9   : > { %10197 = vst [vmem:[#allocation53_spill] sm:$0xff] %v7711_v19 }
 0x3ea   : > { %v6069_v20 = vpop.f32.mrb[26].mxu1 }
 0x3eb   : > { %v1343_v55 = vpop.f32.mrb[27].mxu1 }
 0x3ee   : > { %v6072_v12 = vpop.f32.mrb[28].mxu1 }
 0x3ef   : > { %v1353_v41 = vpop.f32.mrb[29].mxu1 }
 0x3f2   : > { %v6075_v13 = vpop.f32.mrb[30].mxu1 }
 0x3f3   : > { %v7670_v56 = vpop.f32.mrb[31].mxu1 }
 0x478   : > { %v6094_v24 = vpop.f32.mrb[8].mxu0 }
 0x479   : > { %v1510_v52 = vpop.f32.mrb[9].mxu0  ;;  %v1516_v0 = vadd.f32 %v6094_v24, %v7672_v26  ;;  %v7705_v26 = vadd.f32 %v1313_v38, %v1112_v32 }
 0x47a   : > { %v1511_v61 = vadd.f32 %v1510_v52, %v7674_v23  ;;  %v7701_v52 = vadd.f32 %v1303_v22, %v1112_v32 }
 0x47b   : > { %v1630_v7 = vmax.f32 %v1516_v0, 0.0  ;;  %10194 = vst [vmem:[#allocation50_spill] sm:$0xff] %v7705_v26 }
 0x47c   : > { %10192 = vst [vmem:[#allocation48_spill] sm:$0xff] %v7701_v52  ;;  %v1629_v14 = vmax.f32 %v1511_v61, 0.0 }
 0x47e   : > { %v7723_v34 = vadd.f32 1e-07, %v1629_v14 }
 0x47f   : > { %v6097_v48 = vpop.f32.mrb[10].mxu0 }
 0x480   : > { %v1520_v16 = vpop.f32.mrb[11].mxu0  ;;  %v1526_v57 = vadd.f32 %v6097_v48, %v7676_v18  ;;  %v7703_v48 = vadd.f32 %v6060_v27, %v1112_v32  ;;  %v7716_v27 = vadd.f32 %v6069_v20, %v1112_v32  ;;  %v7733_v20 = vadd.f32 %v6075_v13, %v1112_v32 }
 0x481   : > { %v1521_v62 = vadd.f32 %v1520_v16, %v7678_v10  ;;  %v7707_v16 = vadd.f32 %v6063_v33, %v1112_v32  ;;  %v7719_v33 = vadd.f32 %v1343_v55, %v1112_v32  ;;  %v1677_v13 = vsel %vm806_vm10, %v7723_v34, -inf }
 0x482   : > { %10193 = vst [vmem:[#allocation49_spill] sm:$0xff] %v7703_v48  ;;  %10199 = vst [vmem:[#allocation55_spill] sm:$0xff] %v7716_v27 }
 0x483   : > { %v6100_v37 = vpop.f32.mrb[12].mxu0  ;;  %10195 = vst [vmem:[#allocation51_spill] sm:$0xff] %v7707_v16  ;;  %10200 = vst [vmem:[#allocation56_spill] sm:$0xff] %v7719_v33 }
 0x484   : > { %v1530_v36 = vpop.f32.mrb[13].mxu0  ;;  %v1536_v63 = vadd.f32 %v6100_v37, %v7680_v9  ;;  %v1632_v37 = vmax.f32 %v1526_v57, 0.0  ;;  %v7721_v57 = vadd.f32 1e-07, %v1630_v7  ;;  %10203 = vst [vmem:[#allocation59_spill] sm:$0xff] %v7733_v20 }
 0x485   : > { %v1531_v58 = vadd.f32 %v1530_v36, %v7682_v6  ;;  %v7713_v36 = vadd.f32 %v1333_v46, %v1112_v32 }
 0x486   : > { %v1634_v22 = vmax.f32 %v1536_v63, 0.0  ;;  %v7728_v63 = vadd.f32 1e-07, %v1632_v37 }
 0x487   : > { %v6103_v31 = vpop.f32.mrb[14].mxu0  ;;  %10198 = vst [vmem:[#allocation54_spill] sm:$0xff] %v7713_v36  ;;  %v1633_v0 = vmax.f32 %v1531_v58, 0.0  ;;  %v7731_v58 = vadd.f32 %v1353_v41, %v1112_v32  ;;  %v1678_v41 = vsel %vm806_vm10, %v7721_v57, -inf }
 0x488   : > { %v1540_v11 = vpop.f32.mrb[15].mxu0  ;;  %v1546_v24 = vadd.f32 %v6103_v31, %v7684_v5  ;;  %v1631_v31 = vmax.f32 %v1521_v62, 0.0  ;;  %v7726_v62 = vadd.f32 %v6072_v12, %v1112_v32  ;;  %v7737_v55 = vadd.f32 1e-07, %v1634_v22 }
 0x489   : > { %v1541_v5 = vadd.f32 %v1540_v11, %v7689_v60  ;;  %10202 = vst [vmem:[#allocation58_spill] sm:$0xff] %v7731_v58  ;;  %v7740_v14 = vadd.f32 1e-07, %v1633_v0 }
 0x48a   : > { %v1636_v61 = vmax.f32 %v1546_v24, 0.0  ;;  %10201 = vst [vmem:[#allocation57_spill] sm:$0xff] %v7726_v62 }
 0x48b   : > { %v6106_v1 = vpop.f32.mrb[16].mxu0  ;;  %v1635_v24 = vmax.f32 %v1541_v5, 0.0 }
 0x48c   : > { %v1550_v28 = vpop.f32.mrb[17].mxu0  ;;  %v1556_v38 = vadd.f32 %v6106_v1, %v7691_v59  ;;  %v7735_v1 = vadd.f32 1e-07, %v1631_v31 }
 0x48d   : > { %v1551_v43 = vadd.f32 %v1550_v28, %v7695_v3  ;;  %v7742_v28 = vadd.f32 1e-07, %v1636_v61  ;;  %v7745_v3 = vadd.f32 %v7670_v56, %v1112_v32  ;;  %v1683_v61 = vsel %vm806_vm10, %v7737_v55, -inf }
 0x48e   : > { %v1638_v12 = vmax.f32 %v1556_v38, 0.0  ;;  %v1679_v56 = vsel %vm806_vm10, %v7735_v1, -inf  ;;  %v7762_v38 = vadd.f32 1e-07, %v1635_v24 }
 0x48f   : > { %v6109_v23 = vpop.f32.mrb[18].mxu0  ;;  %10204 = vst [vmem:[#allocation60_spill] sm:$0xff] %v7745_v3 }
 0x490   : > { %v1560_v18 = vpop.f32.mrb[19].mxu0  ;;  %v1566_v22 = vadd.f32 %v6109_v23, %v7697_v4  ;;  %v7770_v23 = vadd.f32 1e-07, %v1638_v12  ;;  %v1685_v12 = vsel %vm806_vm10, %v7762_v38, -inf }
 0x491   : > { %v1561_v11 = vadd.f32 %v1560_v18, %v7701_v52  ;;  %v1637_v18 = vmax.f32 %v1551_v43, 0.0 }
 0x492   : > { %v1640_v59 = vmax.f32 %v1566_v22, 0.0 }
 0x493   : > { %v6112_v6 = vpop.f32.mrb[20].mxu0  ;;  %v1639_v0 = vmax.f32 %v1561_v11, 0.0 }
 0x494   : > { %v1570_v46 = vpop.f32.mrb[21].mxu0  ;;  %v1576_v7 = vadd.f32 %v6112_v6, %v7703_v48  ;;  %v7754_v6 = vsel %vm806_vm10, %v7728_v63, -inf }
 0x495   : > { %v1571_v5 = vadd.f32 %v1570_v46, %v7705_v26  ;;  %v1681_v46 = vsel %vm806_vm10, %v7740_v14, -inf  ;;  %v7768_v26 = vsel %vm806_vm10, %v7742_v28, -inf  ;;  %v7776_v60 = vadd.f32 1e-07, %v1639_v0 }
 0x496   : > { %v1642_v43 = vmax.f32 %v1576_v7, 0.0  ;;  %v1684_v7 = vmax.f32 %v1678_v41, %v1683_v61  ;;  %v1682_v10 = vmax.f32 %v1677_v13, %v1681_v46  ;;  %v1686_v46 = vmax.f32 %v1679_v56, %v1685_v12 }
 0x497   : > { %v6115_v37 = vpop.f32.mrb[22].mxu0  ;;  %v1641_v4 = vmax.f32 %v1571_v5, 0.0  ;;  %v1688_v5 = vmax.f32 %v7754_v6, %v7768_v26  ;;  %v1693_v26 = vsel %vm806_vm10, %v7776_v60, -inf }
 0x498   : > { %v1580_v31 = vpop.f32.mrb[23].mxu0  ;;  %v1586_v48 = vadd.f32 %v6115_v37, %v7707_v16  ;;  %v1691_v37 = vsel %vm806_vm10, %v7770_v23, -inf  ;;  %v1694_v12 = vmax.f32 %v1686_v46, %v1693_v26 }
 0x499   : > { %v1581_v32 = vadd.f32 %v1580_v31, %v7709_v15  ;;  %v7772_v15 = vadd.f32 1e-07, %v1637_v18  ;;  %v7791_v13 = vadd.f32 1e-07, %v1641_v4 }
 0x49a   : > { %v1644_v0 = vmax.f32 %v1586_v48, 0.0 }
 0x49b   : > { %v1643_v11 = vmax.f32 %v1581_v32, 0.0  ;;  %v6118_v31 = vpop.f32.mrb[24].mxu0  ;;  %v7781_v32 = vadd.f32 1e-07, %v1642_v43 }
 0x49c   : > { %v1596_v24 = vadd.f32 %v6118_v31, %v7711_v19  ;;  %v1590_v52 = vpop.f32.mrb[25].mxu0 }
 0x49d   : > { %v1591_v9 = vadd.f32 %v1590_v52, %v7713_v36  ;;  %v7787_v31 = vadd.f32 1e-07, %v1643_v11  ;;  %v1689_v52 = vsel %vm806_vm10, %v7772_v15, -inf  ;;  %v1692_v11 = vmax.f32 %v1684_v7, %v1691_v37 }
 0x49e   : > { %v1646_v18 = vmax.f32 %v1596_v24, 0.0  ;;  %v7794_v24 = vadd.f32 1e-07, %v1640_v59  ;;  %v1690_v19 = vmax.f32 %v1682_v10, %v1689_v52 }
 0x49f   : > { %v1645_v41 = vmax.f32 %v1591_v9, 0.0  ;;  %v6121_v22 = vpop.f32.mrb[26].mxu0  ;;  %v1699_v9 = vsel %vm806_vm10, %v7781_v32, -inf  ;;  %v1701_v48 = vsel %vm806_vm10, %v7787_v31, -inf }
 0x4a0   : > { %v1606_v61 = vadd.f32 %v6121_v22, %v7716_v27  ;;  %v1600_v43 = vpop.f32.mrb[27].mxu0  ;;  %v7801_v36 = vadd.f32 1e-07, %v1646_v18  ;;  %v1697_v27 = vsel %vm806_vm10, %v7791_v13, -inf  ;;  %v1695_v18 = vsel %vm806_vm10, %v7794_v24, -inf }
 0x4a1   : > { %v1601_v6 = vadd.f32 %v1600_v43, %v7719_v33  ;;  %v7805_v22 = vadd.f32 1e-07, %v1645_v41  ;;  %v7809_v43 = vadd.f32 1e-07, %v1644_v0  ;;  %v1700_v10 = vmax.f32 %v1692_v11, %v1699_v9 }
 0x4a2   : > { %v1648_v4 = vmax.f32 %v1606_v61, 0.0  ;;  %v1702_v61 = vmax.f32 %v1694_v12, %v1701_v48  ;;  %v1707_v46 = vsel %vm806_vm10, %v7801_v36, -inf  ;;  %v1698_v0 = vmax.f32 %v1690_v19, %v1697_v27 }
 0x4a3   : > { %v1647_v59 = vmax.f32 %v1601_v6, 0.0  ;;  %v6124_v56 = vpop.f32.mrb[28].mxu0  ;;  %v1703_v9 = vsel %vm806_vm10, %v7809_v43, -inf }
 0x4a4   : > { %v1616_v7 = vadd.f32 %v6124_v56, %v7726_v62  ;;  %v1610_v37 = vpop.f32.mrb[29].mxu0  ;;  %v7819_v26 = vadd.f32 1e-07, %v1648_v4  ;;  %v1705_v56 = vsel %vm806_vm10, %v7805_v22, -inf }
 0x4a5   : > { %v7814_v52 = vadd.f32 1e-07, %v1647_v59  ;;  %v1611_v41 = vadd.f32 %v1610_v37, %v7731_v58  ;;  %v1696_v37 = vmax.f32 %v1688_v5, %v1695_v18  ;;  %v1706_v58 = vmax.f32 %v1698_v0, %v1705_v56 }
 0x4a6   : > { %v1650_v6 = vmax.f32 %v1616_v7, 0.0  ;;  %v1708_v7 = vmax.f32 %v1700_v10, %v1707_v46 }
 0x4a7   : > { %v1709_v62 = vsel %vm806_vm10, %v7814_v52, -inf  ;;  %v1649_v33 = vmax.f32 %v1611_v41, 0.0  ;;  %v6127_v11 = vpop.f32.mrb[30].mxu0  ;;  %v1711_v41 = vsel %vm806_vm10, %v7819_v26, -inf }
 0x4a8   : > { %v1710_v59 = vmax.f32 %v1702_v61, %v1709_v62  ;;  %v7827_v48 = vadd.f32 1e-07, %v1650_v6  ;;  %v1626_v12 = vadd.f32 %v6127_v11, %v7733_v20  ;;  %v1620_v4 = vpop.f32.mrb[31].mxu0  ;;  %v1704_v62 = vmax.f32 %v1696_v37, %v1703_v9 }
 0x4a9   : > { %v7830_v19 = vadd.f32 1e-07, %v1649_v33  ;;  %v1621_v27 = vadd.f32 %v1620_v4, %v7745_v3 }
 0x4aa   : > { %v1715_v16 = vsel %vm806_vm10, %v7827_v48, -inf  ;;  %v1652_v2 = vmax.f32 %v1626_v12, 0.0  ;;  %v1712_v33 = vmax.f32 %v1704_v62, %v1711_v41 }
 0x4ab   : > { %v1716_v61 = vmax.f32 %v1708_v7, %v1715_v16  ;;  %v1713_v6 = vsel %vm806_vm10, %v7830_v19, -inf  ;;  %v1651_v11 = vmax.f32 %v1621_v27, 0.0 }
 0x4ac   : > { %v1714_v5 = vmax.f32 %v1706_v58, %v1713_v6  ;;  %v7839_v18 = vadd.f32 1e-07, %v1652_v2 }
 0x4ad   : > { %v7841_v10 = vadd.f32 1e-07, %v1651_v11 }
 0x4ae   : > { %v1721_v46 = vmax.f32 %v1714_v5, %v1716_v61  ;;  %v1719_v0 = vsel %vm806_vm10, %v7839_v18, -inf }
 0x4af   : > { %v1720_v56 = vmax.f32 %v1712_v33, %v1719_v0  ;;  %v1717_v12 = vsel %vm806_vm10, %v7841_v10, -inf }
 0x4b0   : > { %v1718_v9 = vmax.f32 %v1710_v59, %v1717_v12 }
 0x4b2   : > { %v1722_v16 = vmax.f32 %v1718_v9, %v1720_v56 }
 0x4b4   : > { %v1723_v4 = vmax.f32 %v1721_v46, %v1722_v16 }
 0x4b6   : > { %v1724_v37 = vrot.slane %v1723_v4, 4 }
 0x4b8   : > { %v1725_v7 = vmax.f32 %v1723_v4, %v1724_v37 }
 0x4ba   : > { %v1726_v27 = vrot.slane %v1725_v7, 2 }
 0x4bc   : > { %v1727_v58 = vmax.f32 %v1725_v7, %v1726_v27 }
 0x4be   : > { %v1728_v2 = vrot.slane %v1727_v58, 1 }
 0x4c0   : > { %v7847_v6 = vmax.f32 %v1727_v58, %v1728_v2 }
 0x4c2   : > { %v1752_v41 = vsub.f32 %v7841_v10, %v7847_v6  ;;  %v1732_v62 = vsub.f32 %v7735_v1, %v7847_v6  ;;  %v1733_v61 = vsub.f32 %v7728_v63, %v7847_v6  ;;  %v1730_v59 = vsub.f32 %v7723_v34, %v7847_v6 }
 0x4c3   : > { %v1731_v11 = vsub.f32 %v7721_v57, %v7847_v6  ;;  %v1736_v5 = vsub.f32 %v7762_v38, %v7847_v6  ;;  %v1737_v56 = vsub.f32 %v7742_v28, %v7847_v6  ;;  %v1734_v9 = vsub.f32 %v7740_v14, %v7847_v6 }
 0x4c4   : > { %v1798_v33 = vmul.f32 1.442695, %v1752_v41  ;;  %v1758_v46 = vmul.f32 1.442695, %v1732_v62  ;;  %v1760_v0 = vmul.f32 1.442695, %v1733_v61  ;;  %v1735_v4 = vsub.f32 %v7737_v55, %v7847_v6 }
 0x4c5   : > { %v1754_v12 = vmul.f32 1.442695, %v1730_v59  ;;  %v1756_v16 = vmul.f32 1.442695, %v1731_v11  ;;  %v1766_v37 = vmul.f32 1.442695, %v1736_v5  ;;  %v1740_v7 = vsub.f32 %v7776_v60, %v7847_v6 }
 0x4c6   : > { %6845 = vpow2.f32 %v1798_v33  ;;  %v1768_v27 = vmul.f32 1.442695, %v1737_v56  ;;  %v1741_v58 = vsub.f32 %v7794_v24, %v7847_v6  ;;  %v1744_v2 = vsub.f32 %v7787_v31, %v7847_v6 }
 0x4c7   : > { %6847 = vpow2.f32 %v1758_v46  ;;  %v1762_v41 = vmul.f32 1.442695, %v1734_v9  ;;  %v1738_v62 = vsub.f32 %v7772_v15, %v7847_v6  ;;  %v1764_v61 = vmul.f32 1.442695, %v1735_v4 }
 0x4c8   : > { %6849 = vpow2.f32 %v1760_v0  ;;  %v1739_v59 = vsub.f32 %v7770_v23, %v7847_v6  ;;  %v1774_v11 = vmul.f32 1.442695, %v1740_v7  ;;  %v1748_v5 = vsub.f32 %v7814_v52, %v7847_v6 }
 0x4c9   : > { %6851 = vpow2.f32 %v1754_v12  ;;  %v1776_v33 = vmul.f32 1.442695, %v1741_v58  ;;  %v1745_v46 = vsub.f32 %v7809_v43, %v7847_v6  ;;  %v1749_v0 = vsub.f32 %v7819_v26, %v7847_v6 }
 0x4ca   : > { %6853 = vpow2.f32 %v1756_v16  ;;  %v1770_v56 = vmul.f32 1.442695, %v1738_v62  ;;  %v1742_v12 = vsub.f32 %v7791_v13, %v7847_v6  ;;  %v1753_v9 = vsub.f32 %v7839_v18, %v7847_v6 }
 0x4cb   : > { %6855 = vpow2.f32 %v1766_v37  ;;  %v1772_v16 = vmul.f32 1.442695, %v1739_v59  ;;  %v1743_v4 = vsub.f32 %v7781_v32, %v7847_v6  ;;  %v1782_v37 = vmul.f32 1.442695, %v1744_v2 }
 0x4cc   : > { %6857 = vpow2.f32 %v1768_v27  ;;  %v1750_v7 = vsub.f32 %v7830_v19, %v7847_v6  ;;  %v1751_v27 = vsub.f32 %v7827_v48, %v7847_v6  ;;  %v1778_v59 = vmul.f32 1.442695, %v1742_v12 }
 0x4cd   : > { %6859 = vpow2.f32 %v1762_v41  ;;  %v1784_v41 = vmul.f32 1.442695, %v1745_v46  ;;  %v1746_v2 = vsub.f32 %v7805_v22, %v7847_v6  ;;  %v1780_v20 = vmul.f32 1.442695, %v1743_v4 }
 0x4ce   : > { %6861 = vpow2.f32 %v1764_v61  ;;  %v1792_v51 = vmul.f32 1.442695, %v1749_v0  ;;  %v1800_v0 = vmul.f32 1.442695, %v1753_v9 }
 0x4cf   : > { %6863 = vpow2.f32 %v1774_v11  ;;  %v10066_v11 = vmov 0.0|0.0  }
 0x4d0   : > { %v7893_v58 = vpop.eup %6845  ;;  %6865 = vpow2.f32 %v1776_v33  ;;  %6412 = vmatprep.subr.bf16.mxu1 %v10066_v11  ;;  %v1747_v33 = vsub.f32 %v7801_v36, %v7847_v6  ;;  %v1786_v6 = vmul.f32 1.442695, %v1746_v2 }
 0x4d1   : > { %v7895_v62 = vpop.eup %6847  ;;  %v7899_v61 = vmul.f32 %v7893_v58, %v7841_v10  ;;  %6867 = vpow2.f32 %v1770_v56  ;;  %v1790_v56 = vmul.f32 1.442695, %v1748_v5 }
 0x4d2   : > { %v7904_v3 = vpop.eup %6849  ;;  %6869 = vpow2.f32 %v1772_v16  ;;  %v1788_v11 = vmul.f32 1.442695, %v1747_v33 }
 0x4d3   : > { %v7908_v46 = vpop.eup %6851  ;;  %v6636_v10 = vpack.i.bf16 %v7904_v3, %v7895_v62  ;;  %6871 = vpow2.f32 %v1782_v37 }
 0x4d4   : > { %v7912_v12 = vpop.eup %6853  ;;  %6873 = vpow2.f32 %v1784_v41  ;;  %v1802_v35 = vmul.f32 %v7908_v46, %v7723_v34 }
 0x4d5   : > { %v7914_v53 = vpop.eup %6855  ;;  %6637 = vrot.lane.b32.xlu0 %v6636_v10, %s7151_s10  ;;  %v6631_v16 = vpack.i.bf16 %v7912_v12, %v7908_v46  ;;  %6875 = vpow2.f32 %v1778_v59  ;;  %v1794_v10 = vmul.f32 1.442695, %v1750_v7  ;;  %v1796_v59 = vmul.f32 1.442695, %v1751_v27 }
 0x4d6   : > { %v7919_v4 = vpop.eup %6857  ;;  %6877 = vpow2.f32 %v1780_v20 }
 0x4d7   : > { %v7921_v37 = vpop.eup %6859  ;;  %6632 = vrot.lane.b32.xlu1 %v6631_v16, %s7151_s10  ;;  %v6646_v5 = vpack.i.bf16 %v7919_v4, %v7914_v53  ;;  %6879 = vpow2.f32 %v1790_v56 }
 0x4d8   : > { %v7926_v41 = vpop.eup %6861  ;;  %6881 = vpow2.f32 %v1792_v51  ;;  %v1806_v46 = vmul.f32 %v7921_v37, %v7740_v14 }
 0x4d9   : > { %v7928_v47 = vpop.eup %6863  ;;  %6647 = vrot.lane.b32.xlu0 %v6646_v5, %s7151_s10  ;;  %v6641_v20 = vpack.i.bf16 %v7926_v41, %v7921_v37  ;;  %6883 = vpow2.f32 %v1786_v6 }
 0x4da   : > { %v7933_v2 = vpop.eup %6865  ;;  %6885 = vpow2.f32 %v1788_v11 }
 0x4db   : > { %v7935_v33 = vpop.eup %6867  ;;  %6642 = vrot.lane.b32.xlu1 %v6641_v20, %s7151_s10  ;;  %v6656_v51 = vpack.i.bf16 %v7933_v2, %v7928_v47  ;;  %6887 = vpow2.f32 %v1800_v0 }
 0x4dc   : > { %v7940_v9 = vpop.eup %6869  ;;  %6889 = vpow2.f32 %v1794_v10 }
 0x4dd   : > { %v6872_v7 = vpop.eup %6871  ;;  %6657 = vrot.lane.b32.xlu0 %v6656_v51, %s7151_s10  ;;  %v6651_v27 = vpack.i.bf16 %v7940_v9, %v7935_v33  ;;  %6891 = vpow2.f32 %v1796_v59 }
 0x4de   : > { %v7945_v56 = vpop.eup %6873  ;;  %v7948_v11 = vmul.f32 %v6872_v7, %v7787_v31 }
 0x4df   : > { %v7950_v16 = vpop.eup %6875  ;;  %6652 = vrot.lane.b32.xlu1 %v6651_v27, %s7151_s10  ;;  %v6666_v6 = vpack.i.bf16 %v7945_v56, %v6872_v7 }
 0x4e0   : > { %v7954_v5 = vpop.eup %6877 }
 0x4e1   : > { %v6880_v0 = vpop.eup %6879  ;;  %6667 = vrot.lane.b32.xlu0 %v6666_v6, %s7151_s10  ;;  %v6661_v10 = vpack.i.bf16 %v7954_v5, %v7950_v16 }
 0x4e2   : > { %v6882_v20 = vpop.eup %6881  ;;  %v7960_v59 = vmul.f32 %v6880_v0, %v7814_v52 }
 0x4e3   : > { %v7962_v31 = vpop.eup %6883  ;;  %6662 = vrot.lane.b32.xlu1 %v6661_v10, %s7151_s10  ;;  %v6676_v51 = vpack.i.bf16 %v6882_v20, %v6880_v0  ;;  %v7966_v7 = vmul.f32 %v6882_v20, %v7819_v26 }
 0x4e4   : > { %v7968_v27 = vpop.eup %6885 }
 0x4e5   : > { %v6888_v49 = vpop.eup %6887  ;;  %6677 = vrot.lane.b32.xlu0 %v6676_v51, %s7151_s10  ;;  %v6671_v6 = vpack.i.bf16 %v7968_v27, %v7962_v31  ;;  %v1805_v51 = vmul.f32 %v7904_v3, %v7728_v63  ;;  %v1808_v3 = vmul.f32 %v7914_v53, %v7762_v38  ;;  %v1809_v63 = vmul.f32 %v7919_v4, %v7742_v28 }
 0x4e6   : > { %v6890_v44 = vpop.eup %6889  ;;  %v6686_v52 = vpack.i.bf16 %v6888_v49, %v7893_v58  ;;  %v7975_v30 = vmul.f32 %v6888_v49, %v7839_v18  ;;  %v10072_v58 = vsub.s32 1, %v7308_v8  ;;  %v7991_v49 = vld [vmem:[%s278_s23] sm:$0x3] }
 0x4e7   : > { %v6892_v10 = vpop.eup %6891  ;;  %6672 = vrot.lane.b32.xlu1 %v6671_v6, %s7151_s10  ;;  %v7979_v26 = vmul.f32 %v6890_v44, %v7830_v19 }
 0x4e8   : > { %v6681_v0 = vpack.i.bf16 %v6892_v10, %v6890_v44  ;;  %v7982_v20 = vmul.f32 %v6892_v10, %v7827_v48  ;;  %v7996_v44 = vrot.slane %v7991_v49, %v10072_v58  ;;  %v10205_v48 = vmov 0.0  }
 0x4e9   : > { %6687 = vrot.lane.b32.xlu0 %v6686_v52, %s7151_s10  ;;  %v1804_v10 = vmul.f32 %v7895_v62, %v7735_v1 }
 0x4ea   : > { %vm567_vm6 = vcmp.eq.s32.totalorder %v7308_v8, %v7996_v44 }
 0x4eb   : > { %6682 = vrot.lane.b32.xlu1 %v6681_v0, %s7151_s10  ;;  %v8001_v19 = vsel %vm567_vm6, 1.0, %v10205_v48  ;;  %v1803_v0 = vmul.f32 %v7912_v12, %v7721_v57 }
 0x4ec   : > { %10206 = vst [vmem:[#allocation61_spill] sm:$0xff] %v8001_v19  ;;  %5585 = vmatprep.mubr.msk.f32.mxu1 %vm646_vm2, %v8001_v19 }
 0x547   : > { %v6638_v18 = vpop.permute.xlu0 %6637 }
 0x548   : > { %v6640_v6 = vunpack.i.h.bf16 %v6638_v18  ;;  %v6639_v52 = vunpack.i.l.bf16 %v6638_v18 }
 0x549   : > { %v6633_v58 = vpop.permute.xlu1 %6632 }
 0x54a   : > { %v1925_v40 = vsel %vm806_vm10, %v1805_v51, %v6640_v6  ;;  %v1924_v19 = vsel %vm806_vm10, %v1804_v10, %v6639_v52  ;;  %v6635_v54 = vunpack.i.h.bf16 %v6633_v58  ;;  %v6634_v25 = vunpack.i.l.bf16 %v6633_v58 }
 0x54b   : > { %v6648_v1 = vpop.permute.xlu0 %6647  ;;  %v6416_v62 = vpack.c.bf16 %v1925_v40, %v1924_v19  ;;  %v1807_v58 = vmul.f32 %v7926_v41, %v7737_v55  ;;  %v10207_v19 = vmov 0.0|0.0   ;;  %v1810_v52 = vmul.f32 %v7935_v33, %v7772_v15 }
 0x54c   : > { %v1923_v57 = vsel %vm806_vm10, %v1803_v0, %v6635_v54  ;;  %v1922_v12 = vsel %vm806_vm10, %v1802_v35, %v6634_v25  ;;  %v6650_v18 = vunpack.i.h.bf16 %v6648_v1  ;;  %v6649_v34 = vunpack.i.l.bf16 %v6648_v1 }
 0x54d   : > { %v6643_v51 = vpop.permute.xlu1 %6642  ;;  %v6413_v6 = vpack.c.bf16 %v1923_v57, %v1922_v12  ;;  %v1812_v35 = vmul.f32 %v7928_v47, %v7776_v60  ;;  %v1813_v54 = vmul.f32 %v7933_v2, %v7794_v24  ;;  %v1811_v10 = vmul.f32 %v7940_v9, %v7770_v23 }
 0x54e   : > { %v1929_v53 = vsel %vm806_vm10, %v1809_v63, %v6650_v18  ;;  %v1928_v28 = vsel %vm806_vm10, %v1808_v3, %v6649_v34  ;;  %v6645_v38 = vunpack.i.h.bf16 %v6643_v51  ;;  %v6644_v40 = vunpack.i.l.bf16 %v6643_v51 }
 0x54f   : > { %6414 = vmatpush1.bf16.msra.mxu1 %v6413_v6  ;;  %v6658_v25 = vpop.permute.xlu0 %6657  ;;  %v6422_v14 = vpack.c.bf16 %v1929_v53, %v1928_v28  ;;  %v1817_v63 = vmul.f32 %v7945_v56, %v7809_v43  ;;  %v1814_v9 = vmul.f32 %v7950_v16, %v7791_v13  ;;  %v1815_v18 = vmul.f32 %v7954_v5, %v7781_v32 }
 0x550   : > { %v1927_v4 = vsel %vm806_vm10, %v1807_v58, %v6645_v38  ;;  %v1926_v55 = vsel %vm806_vm10, %v1806_v46, %v6644_v40  ;;  %v6660_v37 = vunpack.i.h.bf16 %v6658_v25  ;;  %v6659_v41 = vunpack.i.l.bf16 %v6658_v25  ;;  %6415 = vmatprep.subr.bf16.mxu1 %v10207_v19 }
 0x551   : > { %v6653_v47 = vpop.permute.xlu1 %6652  ;;  %v6419_v60 = vpack.c.bf16 %v1927_v4, %v1926_v55  ;;  %v1818_v32 = vmul.f32 %v7962_v31, %v7805_v22  ;;  %v1819_v5 = vmul.f32 %v7968_v27, %v7801_v36 }
 0x552   : > { %v1933_v24 = vsel %vm806_vm10, %v1813_v54, %v6660_v37  ;;  %v1932_v2 = vsel %vm806_vm10, %v1812_v35, %v6659_v41  ;;  %v6655_v0 = vunpack.i.h.bf16 %v6653_v47  ;;  %v6654_v3 = vunpack.i.l.bf16 %v6653_v47 }
 0x553   : > { %6417 = vmatpush1.bf16.msra.mxu1 %v6416_v62  ;;  %v6668_v1 = vpop.permute.xlu0 %6667  ;;  %v6428_v57 = vpack.c.bf16 %v1933_v24, %v1932_v2 }
 0x554   : > { %v1931_v12 = vsel %vm806_vm10, %v1811_v10, %v6655_v0  ;;  %v1930_v15 = vsel %vm806_vm10, %v1810_v52, %v6654_v3  ;;  %v6670_v33 = vunpack.i.h.bf16 %v6668_v1  ;;  %v6669_v23 = vunpack.i.l.bf16 %v6668_v1  ;;  %6418 = vmatprep.subr.bf16.mxu1 %v10207_v19 }
 0x555   : > { %v6663_v62 = vpop.permute.xlu1 %6662  ;;  %v6425_v34 = vpack.c.bf16 %v1931_v12, %v1930_v15  ;;  %v10081_v0 = vmov 1.0   ;;  %v8150_v15 = vadd.s32 48, %v7308_v8 }
 0x556   : > { %v1937_v43 = vsel %vm806_vm10, %v1817_v63, %v6670_v33  ;;  %v1936_v56 = vsel %vm806_vm10, %v7948_v11, %v6669_v23  ;;  %v6665_v46 = vunpack.i.h.bf16 %v6663_v62  ;;  %v6664_v58 = vunpack.i.l.bf16 %v6663_v62 }
 0x557   : > { %6420 = vmatpush1.bf16.msra.mxu1 %v6419_v60  ;;  %v6678_v51 = vpop.permute.xlu0 %6677  ;;  %v6434_v6 = vpack.c.bf16 %v1937_v43, %v1936_v56  ;;  %v8118_v63 = vadd.s32 32, %v7308_v8  ;;  %10212 = vst [vmem:[#allocation65_spill] sm:$0xff] %v8150_v15  ;;  %vm579_vm4 = vcmp.eq.s32.totalorder %v8150_v15, %v7996_v44  ;;  %v8166_v23 = vadd.s32 56, %v7308_v8 }
 0x558   : > { %v1935_v53 = vsel %vm806_vm10, %v1815_v18, %v6665_v46  ;;  %v1934_v28 = vsel %vm806_vm10, %v1814_v9, %v6664_v58  ;;  %v6680_v13 = vunpack.i.h.bf16 %v6678_v51  ;;  %v6679_v16 = vunpack.i.l.bf16 %v6678_v51  ;;  %6421 = vmatprep.subr.bf16.mxu1 %v10207_v19 }
 0x559   : > { %v6673_v11 = vpop.permute.xlu1 %6672  ;;  %v6431_v38 = vpack.c.bf16 %v1935_v53, %v1934_v28  ;;  %10209 = vst [vmem:[#allocation62_spill] sm:$0xff] %v8118_v63  ;;  %vm575_vm15 = vcmp.eq.s32.totalorder %v8118_v63, %v7996_v44  ;;  %10214 = vst [vmem:[#allocation67_spill] sm:$0xff] %v8166_v23  ;;  %v8177_v9 = vsel %vm579_vm4, 1.0, %v10205_v48 }
 0x55a   : > { %v1941_v40 = vsel %vm806_vm10, %v7966_v7, %v6680_v13  ;;  %v1940_v35 = vsel %vm806_vm10, %v7960_v59, %v6679_v16  ;;  %v6675_v54 = vunpack.i.h.bf16 %v6673_v11  ;;  %v6674_v25 = vunpack.i.l.bf16 %v6673_v11  ;;  %10215 = vst [vmem:[#allocation68_spill] sm:$0xff] %v8177_v9 }
 0x55b   : > { %6423 = vmatpush1.bf16.msra.mxu1 %v6422_v14  ;;  %v6688_v4 = vpop.permute.xlu0 %6687  ;;  %v6440_v55 = vpack.c.bf16 %v1941_v40, %v1940_v35  ;;  %v8145_v12 = vsel %vm575_vm15, 1.0, %v10205_v48 }
 0x55c   : > { %v1939_v37 = vsel %vm806_vm10, %v1819_v5, %v6675_v54  ;;  %v1938_v22 = vsel %vm806_vm10, %v1818_v32, %v6674_v25  ;;  %v6690_v31 = vunpack.i.h.bf16 %v6688_v4  ;;  %v6689_v41 = vunpack.i.l.bf16 %v6688_v4  ;;  %6424 = vmatprep.subr.bf16.mxu1 %v10207_v19  ;;  %10211 = vst [vmem:[#allocation64_spill] sm:$0xff] %v8145_v12 }
 0x55d   : > { %v6683_v36 = vpop.permute.xlu1 %6682  ;;  %v6437_v27 = vpack.c.bf16 %v1939_v37, %v1938_v22 }
 0x55e   : > { %v1945_v7 = vsel %vm806_vm10, %v7975_v30, %v6690_v31  ;;  %v1944_v59 = vsel %vm806_vm10, %v7899_v61, %v6689_v41  ;;  %v6685_v52 = vunpack.i.h.bf16 %v6683_v36  ;;  %v6684_v14 = vunpack.i.l.bf16 %v6683_v36 }
 0x55f   : > { %6426 = vmatpush1.bf16.msra.mxu1 %v6425_v34  ;;  %v6446_v10 = vpack.c.bf16 %v1945_v7, %v1944_v59  ;;  %v8081_v30 = vadd.s32 8, %v7308_v8  ;;  %v10208_v61 = vsub.s32 0, %v7308_v8 }
 0x560   : > { %v1943_v47 = vsel %vm806_vm10, %v7982_v20, %v6685_v52  ;;  %v1942_v60 = vsel %vm806_vm10, %v7979_v26, %v6684_v14  ;;  %6427 = vmatprep.subr.bf16.mxu1 %v10207_v19  ;;  %v8092_v20 = vadd.s32 16, %v7308_v8 }
 0x561   : > { %v6443_v24 = vpack.c.bf16 %v1943_v47, %v1942_v60  ;;  %v8086_v26 = vrot.slane %v7991_v49, %v10208_v61  ;;  %vm569_vm7 = vcmp.eq.s32.totalorder %v8081_v30, %v7996_v44  ;;  %v8102_v49 = vadd.s32 24, %v7308_v8 }
 0x562   : > { %v8097_v2 = vsel %vm569_vm7, 1.0, %v10205_v48  ;;  %vm571_vm9 = vcmp.eq.s32.totalorder %v8092_v20, %v7996_v44  ;;  %vm581_vm7 = vcmp.eq.s32.totalorder %v8166_v23, %v7996_v44 }
 0x563   : > { %6429 = vmatpush1.bf16.msra.mxu1 %v6428_v57  ;;  %vm566_vm8 = vcmp.eq.s32.totalorder %v7308_v8, %v8086_v26  ;;  %vm568_vm11 = vcmp.eq.s32.totalorder %v8081_v30, %v8086_v26  ;;  %v8113_v3 = vsel %vm571_vm9, 1.0, %v10205_v48  ;;  %vm573_vm12 = vcmp.eq.s32.totalorder %v8102_v49, %v7996_v44 }
 0x564   : > { %6430 = vmatprep.subr.bf16.mxu1 %v10207_v19  ;;  %vm570_vm14 = vcmp.eq.s32.totalorder %v8092_v20, %v8086_v26  ;;  %v8129_v1 = vsel %vm573_vm12, 1.0, %v10205_v48  ;;  %v8134_v57 = vadd.s32 40, %v7308_v8  ;;  %vm572_vm0 = vcmp.eq.s32.totalorder %v8102_v49, %v8086_v26 }
 0x565   : > { %vm574_vm3 = vcmp.eq.s32.totalorder %v8118_v63, %v8086_v26  ;;  %vm578_vm9 = vcmp.eq.s32.totalorder %v8150_v15, %v8086_v26  ;;  %v8190_v18 = vsel %vm581_vm7, 1.0, %v10205_v48  ;;  %vm580_vm12 = vcmp.eq.s32.totalorder %v8166_v23, %v8086_v26 }
 0x566   : > { %10210 = vst [vmem:[#allocation63_spill] sm:$0xff] %v8134_v57  ;;  %vm577_vm1 = vcmp.eq.s32.totalorder %v8134_v57, %v7996_v44  ;;  %vm576_vm6 = vcmp.eq.s32.totalorder %v8134_v57, %v8086_v26  ;;  %10216 = vst [vmem:[#allocation69_spill] sm:$0xff] %v8190_v18 }
 0x567   : > { %6432 = vmatpush1.bf16.msra.mxu1 %v6431_v38  ;;  %v8161_v33 = vsel %vm577_vm1, 1.0, %v10205_v48 }
 0x568   : > { %6433 = vmatprep.subr.bf16.mxu1 %v10207_v19  ;;  %10213 = vst [vmem:[#allocation66_spill] sm:$0xff] %v8161_v33 }
 0x56b   : > { %6435 = vmatpush1.bf16.msra.mxu1 %v6434_v6 }
 0x56c   : > { %6436 = vmatprep.subr.bf16.mxu1 %v10207_v19 }
 0x56f   : > { %6438 = vmatpush1.bf16.msra.mxu1 %v6437_v27 }
 0x570   : > { %6439 = vmatprep.subr.bf16.mxu1 %v10207_v19 }
 0x573   : > { %6441 = vmatpush1.bf16.msra.mxu1 %v6440_v55 }
 0x574   : > { %6442 = vmatprep.subr.bf16.mxu1 %v10207_v19 }
 0x577   : > { %6444 = vmatpush1.bf16.msra.mxu1 %v6443_v24 }
 0x578   : > { %6445 = vmatprep.subr.bf16.mxu1 %v10207_v19 }
 0x57b   : > { %6447 = vmatpush1.bf16.msra.mxu1 %v6446_v10 }
 0x57e   : > { %5586 = vmatmul.mubr.msk.f32.vlgmr.msra.gmra.mrb[32].mxu1 %vm566_vm8, %v10081_v0 }
 0x57f   : > { %5587 = vmatprep.mubr.msk.f32.mxu1 %vm646_vm2, %v8097_v2 }
 0x582   : > { %5588 = vmatmul.mubr.msk.f32.gmra.mrb[34].mxu1 %vm568_vm11, %v10081_v0 }
 0x583   : > { %5589 = vmatprep.mubr.msk.f32.mxu1 %vm646_vm2, %v8113_v3 }
 0x586   : > { %5590 = vmatmul.mubr.msk.f32.gmra.mrb[36].mxu1 %vm570_vm14, %v10081_v0 }
 0x587   : > { %5591 = vmatprep.mubr.msk.f32.mxu1 %vm646_vm2, %v8129_v1 }
 0x58a   : > { %5592 = vmatmul.mubr.msk.f32.gmra.mrb[38].mxu1 %vm572_vm0, %v10081_v0 }
 0x58b   : > { %5593 = vmatprep.mubr.msk.f32.mxu1 %vm646_vm2, %v8145_v12 }
 0x58e   : > { %5594 = vmatmul.mubr.msk.f32.gmra.mrb[40].mxu1 %vm574_vm3, %v10081_v0 }
 0x58f   : > { %5595 = vmatprep.mubr.msk.f32.mxu1 %vm646_vm2, %v8161_v33 }
 0x592   : > { %5596 = vmatmul.mubr.msk.f32.gmra.mrb[42].mxu1 %vm576_vm6, %v10081_v0 }
 0x593   : > { %5597 = vmatprep.mubr.msk.f32.mxu1 %vm646_vm2, %v8177_v9 }
 0x596   : > { %5598 = vmatmul.mubr.msk.f32.gmra.mrb[44].mxu1 %vm578_vm9, %v10081_v0 }
 0x597   : > { %5599 = vmatprep.mubr.msk.f32.mxu1 %vm646_vm2, %v8190_v18 }
 0x59a   : > { %5600 = vmatmul.mubr.msk.f32.gmra.mrb[46].mxu1 %vm580_vm12, %v10081_v0  ;;  %v10273_v0 = vld [vmem:[#allocation34_spill] sm:$0xff] }
 0x59b   : > { %6184 = vmatprep.mubr.msk.f32.mxu1 %vm646_vm2, %v7532_v29 }
 0x651   : > { %v8206_v44 = vpop.f32.mrb[32].mxu1 }
 0x652   : > { %v2083_v48 = vmax.f32 %v8206_v44, 1e-30  ;;  %v2038_v62 = vpop.f32.mrb[33].mxu1  ;;  %vm2075_vm15 = vcmp.gt.f32.partialorder %v8206_v44, 0.0 }
 0x654   : > { %6893 = vrcp.f32 %v2083_v48 }
 0x655   : > { %v8209_v34 = vpop.f32.mrb[34].mxu1 }
 0x656   : > { %v2084_v43 = vmax.f32 %v8209_v34, 1e-30  ;;  %v2043_v56 = vpop.f32.mrb[35].mxu1  ;;  %vm2076_vm1 = vcmp.gt.f32.partialorder %v8209_v34, 0.0 }
 0x657   : > { %v2179_v56 = vld [vmem:[%s9962_s3 + $0x50] sm:$0xff] }
 0x658   : > { %6895 = vrcp.f32 %v2084_v43 }
 0x659   : > { %v8212_v46 = vpop.f32.mrb[36].mxu1 }
 0x65a   : > { %v2085_v58 = vmax.f32 %v8212_v46, 1e-30  ;;  %v2048_v51 = vpop.f32.mrb[37].mxu1  ;;  %vm2077_vm4 = vcmp.gt.f32.partialorder %v8212_v46, 0.0 }
 0x65b   : > { %v2181_v51 = vld [vmem:[%s9962_s3 + $0x60] sm:$0xff] }
 0x65c   : > { %6897 = vrcp.f32 %v2085_v58  ;;  %v2180_v58 = vld [vmem:[%s9962_s3 + $0x58] sm:$0xff] }
 0x65d   : > { %v8215_v6 = vpop.f32.mrb[38].mxu1 }
 0x65e   : > { %v6894_v53 = vpop.eup %6893  ;;  %v2086_v28 = vmax.f32 %v8215_v6, 1e-30  ;;  %v2053_v13 = vpop.f32.mrb[39].mxu1  ;;  %vm2078_vm7 = vcmp.gt.f32.partialorder %v8215_v6, 0.0 }
 0x65f   : > { %2107 = vrot.lane.b32.xlu1 %v6894_v53, %s7149_s17  ;;  %v2182_v13 = vld [vmem:[%s9962_s3 + $0x68] sm:$0xff] }
 0x660   : > { %6899 = vrcp.f32 %v2086_v28  ;;  %v6448_v28 = vpack.c.bf16 %v2180_v58, %v2179_v56 }
 0x661   : > { %v8219_v16 = vpop.f32.mrb[40].mxu1 }
 0x662   : > { %v6896_v32 = vpop.eup %6895  ;;  %v2087_v5 = vmax.f32 %v8219_v16, 1e-30  ;;  %v2058_v11 = vpop.f32.mrb[41].mxu1  ;;  %6449 = vmatprep.subr.bf16.mxu0 %v6448_v28 }
 0x663   : > { %2109 = vrot.lane.b32.xlu0 %v6896_v32, %s7149_s17  ;;  %6451 = vmatpush3.bf16.msra.mxu0 %v6448_v28 }
 0x664   : > { %6901 = vrcp.f32 %v2087_v5  ;;  %v6452_v5 = vpack.c.bf16 %v2182_v13, %v2181_v51 }
 0x665   : > { %v8223_v38 = vpop.f32.mrb[42].mxu1 }
 0x666   : > { %v6898_v40 = vpop.eup %6897  ;;  %v2088_v35 = vmax.f32 %v8223_v38, 1e-30  ;;  %v2063_v54 = vpop.f32.mrb[43].mxu1  ;;  %6453 = vmatprep.subr.bf16.mxu0 %v6452_v5 }
 0x667   : > { %2111 = vrot.lane.b32.xlu1 %v6898_v40, %s7149_s17  ;;  %6455 = vmatpush3.bf16.msra.mxu0 %v6452_v5 }
 0x668   : > { %6903 = vrcp.f32 %v2088_v35 }
 0x669   : > { %v8227_v25 = vpop.f32.mrb[44].mxu1 }
 0x66a   : > { %v6900_v4 = vpop.eup %6899  ;;  %v2089_v55 = vmax.f32 %v8227_v25, 1e-30  ;;  %v2068_v37 = vpop.f32.mrb[45].mxu1 }
 0x66b   : > { %2113 = vrot.lane.b32.xlu0 %v6900_v4, %s7149_s17 }
 0x66c   : > { %6905 = vrcp.f32 %v2089_v55 }
 0x66d   : > { %v8231_v22 = vpop.f32.mrb[46].mxu1 }
 0x66e   : > { %v6902_v31 = vpop.eup %6901  ;;  %v2090_v41 = vmax.f32 %v8231_v22, 1e-30  ;;  %v2073_v36 = vpop.f32.mrb[47].mxu1 }
 0x66f   : > { %2115 = vrot.lane.b32.xlu1 %v6902_v31, %s7149_s17 }
 0x670   : > { %6907 = vrcp.f32 %v2090_v41 }
 0x672   : > { %v6904_v27 = vpop.eup %6903 }
 0x673   : > { %2117 = vrot.lane.b32.xlu0 %v6904_v27, %s7149_s17 }
 0x676   : > { %v6906_v7 = vpop.eup %6905 }
 0x677   : > { %2119 = vrot.lane.b32.xlu1 %v6906_v7, %s7149_s17 }
 0x67a   : > { %v6908_v59 = vpop.eup %6907 }
 0x67b   : > { %2121 = vrot.lane.b32.xlu0 %v6908_v59, %s7149_s17 }
 0x6d1   : > { %v2108_v52 = vpop.permute.xlu1 %2107 }
 0x6d2   : > { %v2131_v14 = vmul.f32 %v2108_v52, %v8206_v44 }
 0x6d4   : > { %2147 = vrot.lane.b32.xlu1 %v2131_v14, %s7151_s10 }
 0x6d5   : > { %v2110_v10 = vpop.permute.xlu0 %2109 }
 0x6d6   : > { %v2132_v47 = vmul.f32 %v2110_v10, %v8209_v34  ;;  %v5609_v34 = vld [vmem:[%s9963_s4 + $0x20] sm:$0xff]  ;;  %v2379_v10 = vsub.s32 5, %v7308_v8 }
 0x6d8   : > { %2149 = vrot.lane.b32.xlu0 %v2132_v47, %s7151_s10 }
 0x6d9   : > { %v2112_v60 = vpop.permute.xlu1 %2111 }
 0x6da   : > { %v2133_v24 = vmul.f32 %v2112_v60, %v8212_v46  ;;  %v5610_v46 = vld [vmem:[%s9963_s4 + $0x28] sm:$0xff]  ;;  %v7133_v60 = vld [vmem:[%s9964_s5] sm:$0xff] }
 0x6dc   : > { %2151 = vrot.lane.b32.xlu1 %v2133_v24, %s7151_s10  ;;  %v8289_v24 = vrot.slane %v7133_v60, %v2379_v10 }
 0x6dd   : > { %v2114_v61 = vpop.permute.xlu0 %2113 }
 0x6de   : > { %v2134_v48 = vmul.f32 %v2114_v61, %v8215_v6  ;;  %v6456_v6 = vpack.c.bf16 %v5610_v46, %v5609_v34  ;;  %v10220_v46 = vld [vmem:[#allocation4_spill] sm:$0xff] }
 0x6e0   : > { %2153 = vrot.lane.b32.xlu0 %v2134_v48, %s7151_s10  ;;  %6457 = vmatprep.subr.bf16.mxu0 %v6456_v6 }
 0x6e1   : > { %v2116_v62 = vpop.permute.xlu1 %2115 }
 0x6e2   : > { %v2135_v43 = vmul.f32 %v2116_v62, %v8219_v16 }
 0x6e4   : > { %2155 = vrot.lane.b32.xlu1 %v2135_v43, %s7151_s10 }
 0x6e5   : > { %v2118_v53 = vpop.permute.xlu0 %2117 }
 0x6e6   : > { %v2136_v32 = vmul.f32 %v2118_v53, %v8223_v38 }
 0x6e8   : > { %2157 = vrot.lane.b32.xlu0 %v2136_v32, %s7151_s10 }
 0x6e9   : > { %v2120_v11 = vpop.permute.xlu1 %2119 }
 0x6ea   : > { %v2137_v40 = vmul.f32 %v2120_v11, %v8227_v25  ;;  %v10217_v11 = vld [vmem:[#allocation12_spill] sm:$0xff] }
 0x6ec   : > { %2159 = vrot.lane.b32.xlu1 %v2137_v40, %s7151_s10 }
 0x6ed   : > { %v2122_v35 = vpop.permute.xlu0 %2121 }
 0x6ee   : > { %v2138_v54 = vmul.f32 %v2122_v35, %v8231_v22 }
 0x6f0   : > { %2161 = vrot.lane.b32.xlu0 %v2138_v54, %s7151_s10  ;;  %v10218_v54 = vld [vmem:[#allocation11_spill] sm:$0xff] }
 0x746   : > { %v2148_v4 = vpop.permute.xlu1 %2147 }
 0x747   : > { %v2171_v55 = vsel %vm2075_vm15, %v2148_v4, 0.0  ;;  %vm2079_vm15 = vcmp.gt.f32.partialorder %v8219_v16, 0.0 }
 0x748   : > { %2191 = vrot.lane.b32.xlu1 %v2171_v55, %s7149_s17  ;;  %v5611_v55 = vld [vmem:[%s9963_s4 + $0x30] sm:$0xff] }
 0x74a   : > { %v2150_v37 = vpop.permute.xlu0 %2149 }
 0x74b   : > { %v2172_v31 = vsel %vm2076_vm1, %v2150_v37, 0.0  ;;  %vm2080_vm1 = vcmp.gt.f32.partialorder %v8223_v38, 0.0  ;;  %v5612_v37 = vld [vmem:[%s9963_s4 + $0x38] sm:$0xff] }
 0x74c   : > { %2193 = vrot.lane.b32.xlu0 %v2172_v31, %s7149_s17  ;;  %v6460_v31 = vpack.c.bf16 %v5612_v37, %v5611_v55 }
 0x74e   : > { %v2152_v41 = vpop.permute.xlu1 %2151 }
 0x74f   : > { %v2173_v36 = vsel %vm2077_vm4, %v2152_v41, 0.0  ;;  %vm2081_vm4 = vcmp.gt.f32.partialorder %v8227_v25, 0.0  ;;  %v10219_v41 = vsub.s32 1, %v7308_v8 }
 0x750   : > { %2195 = vrot.lane.b32.xlu1 %v2173_v36, %s7149_s17 }
 0x751   : > { %v2226_v36 = vrot.slane %v7133_v60, %v10219_v41 }
 0x752   : > { %v2154_v27 = vpop.permute.xlu0 %2153 }
 0x753   : > { %v2174_v7 = vsel %vm2078_vm7, %v2154_v27, 0.0  ;;  %vm2082_vm7 = vcmp.gt.f32.partialorder %v8231_v22, 0.0 }
 0x754   : > { %2197 = vrot.lane.b32.xlu0 %v2174_v7, %s7149_s17 }
 0x756   : > { %v2156_v44 = vpop.permute.xlu1 %2155 }
 0x757   : > { %v2175_v59 = vsel %vm2079_vm15, %v2156_v44, 0.0 }
 0x758   : > { %2199 = vrot.lane.b32.xlu1 %v2175_v59, %s7149_s17 }
 0x75a   : > { %v2158_v52 = vpop.permute.xlu0 %2157 }
 0x75b   : > { %v2176_v14 = vsel %vm2080_vm1, %v2158_v52, 0.0  ;;  %v8328_v52 = vmul.f32 %v7480_v42, %v10220_v46 }
 0x75c   : > { %2201 = vrot.lane.b32.xlu0 %v2176_v14, %s7149_s17  ;;  %v10222_v14 = vld [vmem:[#allocation3_spill] sm:$0xff] }
 0x75d   : > { %10221 = vst [vmem:[#allocation12_spill] sm:$0xff] %v8328_v52  ;;  %v8333_v10 = vmul.f32 %v7474_v39, %v10222_v14  ;;  %v10234_v14 = vld [vmem:[#allocation9_spill] sm:$0xff] }
 0x75e   : > { %v2160_v16 = vpop.permute.xlu1 %2159 }
 0x75f   : > { %v2177_v47 = vsel %vm2081_vm4, %v2160_v16, 0.0  ;;  %10223 = vst [vmem:[#allocation11_spill] sm:$0xff] %v8333_v10 }
 0x760   : > { %2203 = vrot.lane.b32.xlu1 %v2177_v47, %s7149_s17 }
 0x762   : > { %v2162_v38 = vpop.permute.xlu0 %2161 }
 0x763   : > { %v2178_v61 = vsel %vm2082_vm7, %v2162_v38, 0.0 }
 0x764   : > { %2205 = vrot.lane.b32.xlu0 %v2178_v61, %s7149_s17  ;;  %2535 = vrot.lane.b32.xlu1 %v8289_v24, %s7147_s14 }
 0x7ba   : > { %v2192_v48 = vpop.permute.xlu1 %2191 }
 0x7bb   : > { %v2215_v25 = vadd.f32 %v2192_v48, %v7480_v42  ;;  %v10224_v48 = vld [vmem:[#allocation6_spill] sm:$0xff] }
 0x7bd   : > { %6136 = vmatprep.mubr.msk.f32.mxu0 %vm806_vm10, %v2215_v25  ;;  %v8350_v25 = vmul.f32 %v7494_v17, %v10224_v48 }
 0x7be   : > { %v2194_v62 = vpop.permute.xlu0 %2193 }
 0x7bf   : > { %v2216_v43 = vadd.f32 %v2194_v62, %v7474_v39  ;;  %10225 = vst [vmem:[#allocation4_spill] sm:$0xff] %v8350_v25 }
 0x7c1   : > { %6137 = vmatmul.mubr.msk.f32.vlgmr.msra.gmra.mrb[32].mxu0 %vm806_vm10, %v2216_v43  ;;  %v10226_v43 = vld [vmem:[#allocation5_spill] sm:$0xff] }
 0x7c2   : > { %v2196_v56 = vpop.permute.xlu1 %2195  ;;  %6459 = vmatpush3.bf16.msra.mxu0 %v6456_v6 }
 0x7c3   : > { %v2217_v22 = vadd.f32 %v2196_v56, %v7494_v17  ;;  %6461 = vmatprep.subr.bf16.mxu0 %v6460_v31  ;;  %v8355_v56 = vmul.f32 %v7490_v45, %v10226_v43 }
 0x7c5   : > { %6139 = vmatprep.mubr.msk.f32.mxu0 %vm806_vm10, %v2217_v22  ;;  %10227 = vst [vmem:[#allocation3_spill] sm:$0xff] %v8355_v56 }
 0x7c6   : > { %v2198_v58 = vpop.permute.xlu0 %2197  ;;  %6463 = vmatpush3.bf16.msra.mxu0 %v6460_v31 }
 0x7c7   : > { %v2218_v51 = vadd.f32 %v2198_v58, %v7490_v45  ;;  %6480 = vmatprep.subr.bf16.mxu0 %v10207_v19 }
 0x7c9   : > { %6140 = vmatmul.mubr.msk.f32.gmra.mrb[34].mxu0 %vm806_vm10, %v2218_v51 }
 0x7ca   : > { %v2200_v53 = vpop.permute.xlu1 %2199 }
 0x7cb   : > { %v2219_v28 = vadd.f32 %v2200_v53, %v7508_v21 }
 0x7cd   : > { %6142 = vmatprep.mubr.msk.f32.mxu0 %vm806_vm10, %v2219_v28 }
 0x7ce   : > { %v2202_v13 = vpop.permute.xlu0 %2201 }
 0x7cf   : > { %v2220_v32 = vadd.f32 %v2202_v13, %v7504_v50  ;;  %v10228_v13 = vld [vmem:[#allocation8_spill] sm:$0xff] }
 0x7d1   : > { %6143 = vmatmul.mubr.msk.f32.gmra.mrb[36].mxu0 %vm806_vm10, %v2220_v32  ;;  %v8372_v32 = vmul.f32 %v7508_v21, %v10228_v13 }
 0x7d2   : > { %v2204_v5 = vpop.permute.xlu1 %2203 }
 0x7d3   : > { %v2221_v40 = vadd.f32 %v2204_v5, %v10217_v11  ;;  %10229 = vst [vmem:[#allocation6_spill] sm:$0xff] %v8372_v32 }
 0x7d5   : > { %6145 = vmatprep.mubr.msk.f32.mxu0 %vm806_vm10, %v2221_v40  ;;  %v10230_v40 = vld [vmem:[#allocation7_spill] sm:$0xff] }
 0x7d6   : > { %v2206_v35 = vpop.permute.xlu0 %2205 }
 0x7d7   : > { %v2222_v4 = vadd.f32 %v2206_v35, %v10218_v54  ;;  %v8377_v35 = vmul.f32 %v7504_v50, %v10230_v40 }
 0x7d9   : > { %6146 = vmatmul.mubr.msk.f32.gmra.mrb[38].mxu0 %vm806_vm10, %v2222_v4  ;;  %10231 = vst [vmem:[#allocation5_spill] sm:$0xff] %v8377_v35 }
 0x894   : > { %v6138_v27 = vpop.f32.mrb[32].mxu0 }
 0x895   : > { %v8321_v7 = vadd.f32 %v6138_v27, %v2226_v36  ;;  %v2317_v44 = vpop.f32.mrb[33].mxu0  ;;  %v10232_v27 = vld [vmem:[#allocation10_spill] sm:$0xff] }
 0x896   : > { %v8323_v59 = vadd.f32 %v2317_v44, %v2226_v36  ;;  %v8394_v44 = vmul.f32 %v10217_v11, %v10232_v27  ;;  %v10236_v11 = vld [vmem:[#allocation61_spill] sm:$0xff] }
 0x897   : > { %v2357_v34 = vmax.f32 %v8321_v7, 0.0 }
 0x898   : > { %v2356_v6 = vmax.f32 %v8323_v59, 0.0  ;;  %10233 = vst [vmem:[#allocation8_spill] sm:$0xff] %v8394_v44 }
 0x899   : > { %v2365_v47 = vadd.f32 %v2357_v34, %v8333_v10 }
 0x89a   : > { %v2364_v16 = vadd.f32 %v2356_v6, %v8328_v52 }
 0x89c   : > { %v6141_v60 = vpop.f32.mrb[34].mxu0  ;;  %6156 = vmatprep.mubr.msk.f32.mxu0 %vm806_vm10, %v2364_v16  ;;  %v8399_v16 = vmul.f32 %v10218_v54, %v10234_v14 }
 0x89d   : > { %v8342_v38 = vadd.f32 %v6141_v60, %v2226_v36  ;;  %v2327_v42 = vpop.f32.mrb[35].mxu0  ;;  %6157 = vmatmul.mubr.msk.f32.vlgmr.msra.gmra.mrb[40].mxu0 %vm806_vm10, %v2365_v47 }
 0x89e   : > { %v8345_v61 = vadd.f32 %v2327_v42, %v2226_v36  ;;  %10235 = vst [vmem:[#allocation7_spill] sm:$0xff] %v8399_v16 }
 0x89f   : > { %v2359_v39 = vmax.f32 %v8342_v38, 0.0 }
 0x8a0   : > { %v2358_v62 = vmax.f32 %v8345_v61, 0.0 }
 0x8a1   : > { %v2367_v58 = vadd.f32 %v2359_v39, %v8355_v56 }
 0x8a2   : > { %v2366_v22 = vadd.f32 %v2358_v62, %v8350_v25 }
 0x8a4   : > { %v6144_v51 = vpop.f32.mrb[36].mxu0  ;;  %6159 = vmatprep.mubr.msk.f32.mxu0 %vm806_vm10, %v2366_v22  ;;  %v2536_v22 = vpop.permute.xlu1 %2535 }
 0x8a5   : > { %v8364_v53 = vadd.f32 %v6144_v51, %v2226_v36  ;;  %v2337_v17 = vpop.f32.mrb[37].mxu0  ;;  %6160 = vmatmul.mubr.msk.f32.gmra.mrb[42].mxu0 %vm806_vm10, %v2367_v58 }
 0x8a6   : > { %v8367_v28 = vadd.f32 %v2337_v17, %v2226_v36 }
 0x8a7   : > { %v2361_v45 = vmax.f32 %v8364_v53, 0.0 }
 0x8a8   : > { %v2360_v5 = vmax.f32 %v8367_v28, 0.0 }
 0x8a9   : > { %v2369_v55 = vadd.f32 %v2361_v45, %v8377_v35 }
 0x8aa   : > { %v2368_v4 = vadd.f32 %v2360_v5, %v8372_v32 }
 0x8ac   : > { %v6147_v37 = vpop.f32.mrb[38].mxu0  ;;  %6162 = vmatprep.mubr.msk.f32.mxu0 %vm806_vm10, %v2368_v4 }
 0x8ad   : > { %v8386_v31 = vadd.f32 %v6147_v37, %v2226_v36  ;;  %v2347_v21 = vpop.f32.mrb[39].mxu0  ;;  %6163 = vmatmul.mubr.msk.f32.gmra.mrb[44].mxu0 %vm806_vm10, %v2369_v55 }
 0x8ae   : > { %v8389_v41 = vadd.f32 %v2347_v21, %v2226_v36 }
 0x8af   : > { %v2363_v50 = vmax.f32 %v8386_v31, 0.0  ;;  %v10253_v31 = vld [vmem:[#allocation13_spill] sm:$0xff] }
 0x8b0   : > { %v2362_v46 = vmax.f32 %v8389_v41, 0.0  ;;  %v10255_v41 = vld [vmem:[#allocation16_spill] sm:$0xff] }
 0x8b1   : > { %v2371_v36 = vadd.f32 %v2363_v50, %v8399_v16 }
 0x8b2   : > { %v2370_v47 = vadd.f32 %v2362_v46, %v8394_v44 }
 0x8b4   : > { %6165 = vmatprep.mubr.msk.f32.mxu0 %vm806_vm10, %v2370_v47 }
 0x8b5   : > { %6166 = vmatmul.mubr.msk.f32.gmra.mrb[46].mxu0 %vm806_vm10, %v2371_v36 }
 0x8b6   : > { %5645 = vmatprep.mubr.msk.f32.mxu0 %vm646_vm2, %v10236_v11 }
 0x970   : > { %v6158_v60 = vpop.f32.mrb[40].mxu0 }
 0x971   : > { %v2477_v42 = vadd.f32 %v6158_v60, %v8289_v24  ;;  %v2471_v54 = vpop.f32.mrb[41].mxu0 }
 0x972   : > { %v2472_v48 = vadd.f32 %v2471_v54, %v8289_v24 }
 0x973   : > { %vm2511_vm15 = vcmp.ge.f32.partialorder %v2477_v42, 0.0  ;;  %v2519_v43 = vmul.f32 0.2, %v2477_v42 }
 0x974   : > { %vm2510_vm1 = vcmp.ge.f32.partialorder %v2472_v48, 0.0  ;;  %v2518_v58 = vmul.f32 0.2, %v2472_v48 }
 0x975   : > { %v2527_v51 = vsel %vm2511_vm15, %v2477_v42, %v2519_v43 }
 0x976   : > { %v2539_v17 = vmul.f32 %v2536_v22, %v2527_v51  ;;  %v2526_v13 = vsel %vm2510_vm1, %v2472_v48, %v2518_v58 }
 0x977   : > { %v2538_v40 = vmul.f32 %v2536_v22, %v2526_v13 }
 0x978   : > { %v6161_v4 = vpop.f32.mrb[42].mxu0  ;;  %v2549_v55 = vsel %vm972_vm13, %v2539_v17, 0.0 }
 0x979   : > { %v2487_v37 = vadd.f32 %v6161_v4, %v8289_v24  ;;  %2550 = vadd.xlane.f32.xlu1 %v2549_v55  ;;  %v2481_v21 = vpop.f32.mrb[43].mxu0  ;;  %v2546_v27 = vsel %vm972_vm13, %v2538_v40, 0.0 }
 0x97a   : > { %v2482_v14 = vadd.f32 %v2481_v21, %v8289_v24  ;;  %2547 = vadd.xlane.f32.xlu0 %v2546_v27 }
 0x97b   : > { %vm2513_vm4 = vcmp.ge.f32.partialorder %v2487_v37, 0.0  ;;  %v2521_v47 = vmul.f32 0.2, %v2487_v37 }
 0x97c   : > { %vm2512_vm7 = vcmp.ge.f32.partialorder %v2482_v14, 0.0  ;;  %v2520_v36 = vmul.f32 0.2, %v2482_v14 }
 0x97d   : > { %v2529_v60 = vsel %vm2513_vm4, %v2487_v37, %v2521_v47 }
 0x97e   : > { %v2541_v42 = vmul.f32 %v2536_v22, %v2529_v60  ;;  %v2528_v54 = vsel %vm2512_vm7, %v2482_v14, %v2520_v36 }
 0x97f   : > { %v2540_v58 = vmul.f32 %v2536_v22, %v2528_v54 }
 0x980   : > { %v6164_v48 = vpop.f32.mrb[44].mxu0  ;;  %v2555_v43 = vsel %vm972_vm13, %v2541_v42, 0.0 }
 0x981   : > { %v2497_v51 = vadd.f32 %v6164_v48, %v8289_v24  ;;  %v2491_v17 = vpop.f32.mrb[45].mxu0  ;;  %2556 = vadd.xlane.f32.xlu0 %v2555_v43  ;;  %v2552_v55 = vsel %vm972_vm13, %v2540_v58, 0.0 }
 0x982   : > { %v2492_v13 = vadd.f32 %v2491_v17, %v8289_v24 }
 0x983   : > { %vm2515_vm15 = vcmp.ge.f32.partialorder %v2497_v51, 0.0  ;;  %v2523_v40 = vmul.f32 0.2, %v2497_v51 }
 0x984   : > { %vm2514_vm1 = vcmp.ge.f32.partialorder %v2492_v13, 0.0  ;;  %v2522_v4 = vmul.f32 0.2, %v2492_v13 }
 0x985   : > { %2553 = vadd.xlane.f32.xlu0 %v2552_v55  ;;  %v2531_v37 = vsel %vm2515_vm15, %v2497_v51, %v2523_v40 }
 0x986   : > { %v2543_v21 = vmul.f32 %v2536_v22, %v2531_v37  ;;  %v2530_v27 = vsel %vm2514_vm1, %v2492_v13, %v2522_v4 }
 0x987   : > { %v2542_v14 = vmul.f32 %v2536_v22, %v2530_v27 }
 0x988   : > { %v6167_v47 = vpop.f32.mrb[46].mxu0  ;;  %v2561_v36 = vsel %vm972_vm13, %v2543_v21, 0.0 }
 0x989   : > { %v2507_v60 = vadd.f32 %v6167_v47, %v8289_v24  ;;  %2562 = vadd.xlane.f32.xlu0 %v2561_v36  ;;  %v2501_v42 = vpop.f32.mrb[47].mxu0  ;;  %v2558_v54 = vsel %vm972_vm13, %v2542_v14, 0.0 }
 0x98a   : > { %v2502_v48 = vadd.f32 %v2501_v42, %v8289_v24  ;;  %2559 = vadd.xlane.f32.xlu1 %v2558_v54 }
 0x98b   : > { %vm2517_vm4 = vcmp.ge.f32.partialorder %v2507_v60, 0.0  ;;  %v2525_v43 = vmul.f32 0.2, %v2507_v60 }
 0x98c   : > { %vm2516_vm7 = vcmp.ge.f32.partialorder %v2502_v48, 0.0  ;;  %v2524_v58 = vmul.f32 0.2, %v2502_v48 }
 0x98d   : > { %v2533_v51 = vsel %vm2517_vm4, %v2507_v60, %v2525_v43 }
 0x98e   : > { %v2545_v17 = vmul.f32 %v2536_v22, %v2533_v51  ;;  %v2532_v13 = vsel %vm2516_vm7, %v2502_v48, %v2524_v58 }
 0x98f   : > { %v2544_v40 = vmul.f32 %v2536_v22, %v2532_v13 }
 0x990   : > { %v2567_v4 = vsel %vm972_vm13, %v2545_v17, 0.0 }
 0x991   : > { %2568 = vadd.xlane.f32.xlu0 %v2567_v4  ;;  %v2564_v55 = vsel %vm972_vm13, %v2544_v40, 0.0 }
 0x992   : > { %2565 = vadd.xlane.f32.xlu1 %v2564_v55 }
 0xa06   : > { %v2551_v37 = vpop.xlane.xlu1 %2550 }
 0xa07   : > { %v2571_v21 = vadd.f32 %v2551_v37, %v8289_v24  ;;  %v2548_v27 = vpop.xlane.xlu0 %2547 }
 0xa08   : > { %v2570_v14 = vadd.f32 %v2548_v27, %v8289_v24 }
 0xa09   : > { %v2579_v47 = vsub.f32 0.0, %v2571_v21 }
 0xa0a   : > { %v2578_v36 = vsub.f32 0.0, %v2570_v14 }
 0xa0b   : > { %v2588_v42 = vmul.f32 1.442695, %v2579_v47 }
 0xa0c   : > { %v2586_v54 = vmul.f32 1.442695, %v2578_v36 }
 0xa0d   : > { %6909 = vpow2.f32 %v2588_v42 }
 0xa0e   : > { %6911 = vpow2.f32 %v2586_v54  ;;  %v2557_v60 = vpop.xlane.xlu0 %2556 }
 0xa0f   : > { %v2573_v22 = vadd.f32 %v2557_v60, %v8289_v24 }
 0xa11   : > { %v2581_v48 = vsub.f32 0.0, %v2573_v22 }
 0xa12   : > { %v2554_v43 = vpop.xlane.xlu0 %2553 }
 0xa13   : > { %v2592_v58 = vmul.f32 1.442695, %v2581_v48  ;;  %v2572_v51 = vadd.f32 %v2554_v43, %v8289_v24 }
 0xa15   : > { %v2580_v17 = vsub.f32 0.0, %v2572_v51  ;;  %6913 = vpow2.f32 %v2592_v58 }
 0xa16   : > { %v2563_v13 = vpop.xlane.xlu0 %2562 }
 0xa17   : > { %v6910_v40 = vpop.eup %6909  ;;  %v2590_v4 = vmul.f32 1.442695, %v2580_v17  ;;  %v2575_v55 = vadd.f32 %v2563_v13, %v8289_v24  ;;  %v2560_v37 = vpop.xlane.xlu1 %2559 }
 0xa18   : > { %v6912_v21 = vpop.eup %6911  ;;  %v2603_v27 = vadd.f32 1.0, %v6910_v40  ;;  %v2574_v36 = vadd.f32 %v2560_v37, %v8289_v24 }
 0xa19   : > { %v2602_v14 = vadd.f32 1.0, %v6912_v21  ;;  %6915 = vpow2.f32 %v2590_v4  ;;  %v2583_v47 = vsub.f32 0.0, %v2575_v55 }
 0xa1a   : > { %6917 = vrcp.f32 %v2603_v27  ;;  %v2582_v54 = vsub.f32 0.0, %v2574_v36 }
 0xa1b   : > { %6919 = vrcp.f32 %v2602_v14  ;;  %v2596_v42 = vmul.f32 1.442695, %v2583_v47 }
 0xa1c   : > { %v2594_v51 = vmul.f32 1.442695, %v2582_v54 }
 0xa1d   : > { %6921 = vpow2.f32 %v2596_v42 }
 0xa1e   : > { %v2569_v60 = vpop.xlane.xlu0 %2568 }
 0xa1f   : > { %v2577_v22 = vadd.f32 %v2569_v60, %v8289_v24  ;;  %v2566_v48 = vpop.xlane.xlu1 %2565  ;;  %v6914_v43 = vpop.eup %6913 }
 0xa20   : > { %v2576_v17 = vadd.f32 %v2566_v48, %v8289_v24  ;;  %v2605_v40 = vadd.f32 1.0, %v6914_v43 }
 0xa21   : > { %v2585_v58 = vsub.f32 0.0, %v2577_v22 }
 0xa22   : > { %v2584_v37 = vsub.f32 0.0, %v2576_v17 }
 0xa23   : > { %v6916_v13 = vpop.eup %6915  ;;  %v2600_v4 = vmul.f32 1.442695, %v2585_v58 }
 0xa24   : > { %v6918_v55 = vpop.eup %6917  ;;  %v2604_v14 = vadd.f32 1.0, %v6916_v13  ;;  %v2598_v42 = vmul.f32 1.442695, %v2584_v37 }
 0xa25   : > { %v6920_v21 = vpop.eup %6919  ;;  %6923 = vpow2.f32 %v2600_v4  ;;  %2633 = vperm.xlu0 %6691, %v6918_v55   ;;  %v2675_v36 = vsub.f32 1.0, %v6918_v55 }
 0xa26   : > { %6925 = vpow2.f32 %v2594_v51  ;;  %2628 = vperm.xlu1 %6692, %v6920_v21   ;;  %v2674_v24 = vsub.f32 1.0, %v6920_v21 }
 0xa27   : > { %v6922_v27 = vpop.eup %6921  ;;  %6927 = vrcp.f32 %v2605_v40 }
 0xa28   : > { %v2607_v47 = vadd.f32 1.0, %v6922_v27 }
 0xa2a   : > { %6929 = vrcp.f32 %v2607_v47  ;;  %2689 = vperm.xlu1 %6692, %v2675_v36  }
 0xa2b   : > { %6931 = vrcp.f32 %v2604_v14 }
 0xa2c   : > { %6933 = vpow2.f32 %v2598_v42 }
 0xa2e   : > { %2684 = vperm.xlu1 %6692, %v2674_v24  }
 0xa2f   : > { %v6924_v54 = vpop.eup %6923 }
 0xa30   : > { %v6926_v60 = vpop.eup %6925  ;;  %v2609_v22 = vadd.f32 1.0, %v6924_v54 }
 0xa31   : > { %v6928_v48 = vpop.eup %6927  ;;  %v2606_v43 = vadd.f32 1.0, %v6926_v60 }
 0xa32   : > { %6935 = vrcp.f32 %v2609_v22  ;;  %2643 = vperm.xlu1 %6692, %v6928_v48   ;;  %v2677_v40 = vsub.f32 1.0, %v6928_v48 }
 0xa33   : > { %6937 = vrcp.f32 %v2606_v43 }
 0xa34   : > { %v6930_v58 = vpop.eup %6929 }
 0xa35   : > { %v6932_v51 = vpop.eup %6931  ;;  %2653 = vperm.xlu0 %6691, %v6930_v58   ;;  %v2679_v17 = vsub.f32 1.0, %v6930_v58 }
 0xa36   : > { %2638 = vperm.xlu1 %6692, %v6932_v51   ;;  %v6934_v13 = vpop.eup %6933  ;;  %v2676_v21 = vsub.f32 1.0, %v6932_v51 }
 0xa37   : > { %v2608_v4 = vadd.f32 1.0, %v6934_v13 }
 0xa39   : > { %2709 = vperm.xlu0 %6691, %v2679_v17   ;;  %6939 = vrcp.f32 %v2608_v4 }
 0xa3a   : > { %2699 = vperm.xlu1 %6692, %v2677_v40  }
 0xa3c   : > { %v6936_v55 = vpop.eup %6935 }
 0xa3d   : > { %2663 = vperm.xlu0 %6691, %v6936_v55   ;;  %v2681_v37 = vsub.f32 1.0, %v6936_v55  ;;  %v6938_v27 = vpop.eup %6937 }
 0xa3e   : > { %2694 = vperm.xlu1 %6692, %v2676_v21   ;;  %v2678_v14 = vsub.f32 1.0, %v6938_v27 }
 0xa41   : > { %2719 = vperm.xlu0 %6691, %v2681_v37  }
 0xa42   : > { %2648 = vperm.xlu1 %6692, %v6938_v27  }
 0xa43   : > { %v6940_v47 = vpop.eup %6939 }
 0xa44   : > { %v2680_v36 = vsub.f32 1.0, %v6940_v47 }
 0xa46   : > { %2704 = vperm.xlu1 %6692, %v2678_v14  }
 0xa4a   : > { %2658 = vperm.xlu1 %6692, %v6940_v47  }
 0xa4e   : > { %2714 = vperm.xlu1 %6692, %v2680_v36  }
 0xaa4   : > { %v2634_v54 = vpop.permute.xlu0 %2633 }
 0xaa5   : > { %v2629_v42 = vpop.permute.xlu1 %2628  ;;  %v8438_v48 = vmul.f32 %v2634_v54, %v2357_v34 }
 0xaa6   : > { %v8442_v43 = vmul.f32 %v2629_v42, %v2356_v6 }
 0xaa7   : > { %10237 = vst [vmem:[#allocation10_spill] sm:$0xff] %v8438_v48 }
 0xaa8   : > { %10238 = vst [vmem:[#allocation9_spill] sm:$0xff] %v8442_v43 }
 0xaa9   : > { %v2690_v24 = vpop.permute.xlu1 %2689 }
 0xaaa   : > { %v2723_v60 = vmul.f32 %v2690_v24, %v8333_v10 }
 0xaac   : > { %v8446_v51 = vadd.f32 %v2723_v60, %v8438_v48 }
 0xaad   : > { %v2685_v22 = vpop.permute.xlu1 %2684 }
 0xaae   : > { %v2722_v58 = vmul.f32 %v2685_v22, %v8328_v52  ;;  %10239 = vst [vmem:[#allocation70_spill] sm:$0xff] %v8446_v51 }
 0xab0   : > { %v8449_v17 = vadd.f32 %v2722_v58, %v8442_v43  ;;  %v10293_v43 = vld [vmem:[#allocation54_spill] sm:$0xff] }
 0xab1   : > { %v2644_v13 = vpop.permute.xlu1 %2643 }
 0xab2   : > { %10240 = vst [vmem:[#allocation71_spill] sm:$0xff] %v8449_v17  ;;  %v6464_v40 = vpack.c.bf16 %v8446_v51, %v8449_v17  ;;  %v8456_v21 = vmul.f32 %v2644_v13, %v2359_v39 }
 0xab4   : > { %6465 = vmatprep.subr.bf16.mxu1 %v6464_v40  ;;  %v2654_v34 = vpop.permute.xlu0 %2653  ;;  %10241 = vst [vmem:[#allocation72_spill] sm:$0xff] %v8456_v21 }
 0xab5   : > { %6467 = vmatpush3.bf16.msra.mxu1 %v6464_v40  ;;  %v2639_v7 = vpop.permute.xlu1 %2638  ;;  %v8474_v39 = vmul.f32 %v2654_v34, %v2361_v45 }
 0xab6   : > { %v8460_v37 = vmul.f32 %v2639_v7, %v2358_v62 }
 0xab7   : > { %10245 = vst [vmem:[#allocation76_spill] sm:$0xff] %v8474_v39 }
 0xab8   : > { %v2710_v6 = vpop.permute.xlu0 %2709  ;;  %10242 = vst [vmem:[#allocation73_spill] sm:$0xff] %v8460_v37 }
 0xab9   : > { %v2700_v4 = vpop.permute.xlu1 %2699  ;;  %v2727_v38 = vmul.f32 %v2710_v6, %v8377_v35  ;;  %v10257_v6 = vld [vmem:[#allocation18_spill] sm:$0xff] }
 0xaba   : > { %v2725_v59 = vmul.f32 %v2700_v4, %v8355_v56 }
 0xabb   : > { %v8482_v60 = vadd.f32 %v2727_v38, %v8474_v39  ;;  %v10263_v38 = vld [vmem:[#allocation24_spill] sm:$0xff] }
 0xabc   : > { %v8464_v14 = vadd.f32 %v2725_v59, %v8456_v21  ;;  %v2664_v24 = vpop.permute.xlu0 %2663 }
 0xabd   : > { %v2695_v55 = vpop.permute.xlu1 %2694  ;;  %10247 = vst [vmem:[#allocation78_spill] sm:$0xff] %v8482_v60  ;;  %v8492_v45 = vmul.f32 %v2664_v24, %v2363_v50  ;;  %v10254_v50 = vld [vmem:[#allocation15_spill] sm:$0xff] }
 0xabe   : > { %v2724_v27 = vmul.f32 %v2695_v55, %v8350_v25  ;;  %10243 = vst [vmem:[#allocation74_spill] sm:$0xff] %v8464_v14  ;;  %v10258_v55 = vld [vmem:[#allocation19_spill] sm:$0xff] }
 0xabf   : > { %10249 = vst [vmem:[#allocation80_spill] sm:$0xff] %v8492_v45  ;;  %v10262_v24 = vld [vmem:[#allocation23_spill] sm:$0xff] }
 0xac0   : > { %v8467_v47 = vadd.f32 %v2724_v27, %v8460_v37  ;;  %v2720_v58 = vpop.permute.xlu0 %2719  ;;  %v10259_v27 = vld [vmem:[#allocation20_spill] sm:$0xff]  ;;  %v10292_v37 = vld [vmem:[#allocation53_spill] sm:$0xff] }
 0xac1   : > { %v2649_v36 = vpop.permute.xlu1 %2648  ;;  %v2729_v53 = vmul.f32 %v2720_v58, %v8399_v16  ;;  %v10266_v58 = vld [vmem:[#allocation27_spill] sm:$0xff] }
 0xac2   : > { %10244 = vst [vmem:[#allocation75_spill] sm:$0xff] %v8467_v47  ;;  %v6468_v42 = vpack.c.bf16 %v8464_v14, %v8467_v47  ;;  %v8478_v62 = vmul.f32 %v2649_v36, %v2360_v5  ;;  %v10260_v36 = vld [vmem:[#allocation21_spill] sm:$0xff] }
 0xac3   : > { %v8500_v34 = vadd.f32 %v2729_v53, %v8492_v45  ;;  %v10269_v53 = vld [vmem:[#allocation30_spill] sm:$0xff]  ;;  %v10282_v45 = vld [vmem:[#allocation43_spill] sm:$0xff] }
 0xac4   : > { %6469 = vmatprep.subr.bf16.mxu1 %v6468_v42  ;;  %10246 = vst [vmem:[#allocation77_spill] sm:$0xff] %v8478_v62 }
 0xac5   : > { %6471 = vmatpush3.bf16.msra.mxu1 %v6468_v42  ;;  %v2705_v61 = vpop.permute.xlu1 %2704  ;;  %10251 = vst [vmem:[#allocation82_spill] sm:$0xff] %v8500_v34  ;;  %v10261_v42 = vld [vmem:[#allocation22_spill] sm:$0xff] }
 0xac6   : > { %v2726_v54 = vmul.f32 %v2705_v61, %v8372_v32  ;;  %v10264_v61 = vld [vmem:[#allocation25_spill] sm:$0xff] }
 0xac8   : > { %v8485_v22 = vadd.f32 %v2726_v54, %v8478_v62  ;;  %v10265_v54 = vld [vmem:[#allocation26_spill] sm:$0xff] }
 0xac9   : > { %v2659_v13 = vpop.permute.xlu1 %2658 }
 0xaca   : > { %10248 = vst [vmem:[#allocation79_spill] sm:$0xff] %v8485_v22  ;;  %v6472_v40 = vpack.c.bf16 %v8482_v60, %v8485_v22  ;;  %v8496_v5 = vmul.f32 %v2659_v13, %v2362_v46  ;;  %v10256_v46 = vld [vmem:[#allocation17_spill] sm:$0xff]  ;;  %v10267_v13 = vld [vmem:[#allocation28_spill] sm:$0xff] }
 0xacc   : > { %6473 = vmatprep.subr.bf16.mxu1 %v6472_v40  ;;  %10250 = vst [vmem:[#allocation81_spill] sm:$0xff] %v8496_v5 }
 0xacd   : > { %6475 = vmatpush3.bf16.msra.mxu1 %v6472_v40  ;;  %v2715_v28 = vpop.permute.xlu1 %2714  ;;  %v10268_v40 = vld [vmem:[#allocation29_spill] sm:$0xff] }
 0xace   : > { %v2728_v7 = vmul.f32 %v2715_v28, %v8394_v44  ;;  %v10270_v28 = vld [vmem:[#allocation31_spill] sm:$0xff] }
 0xad0   : > { %v8503_v4 = vadd.f32 %v2728_v7, %v8496_v5  ;;  %v10271_v7 = vld [vmem:[#allocation32_spill] sm:$0xff] }
 0xad2   : > { %10252 = vst [vmem:[#allocation83_spill] sm:$0xff] %v8503_v4  ;;  %v6476_v59 = vpack.c.bf16 %v8500_v34, %v8503_v4 }
 0xad4   : > { %6477 = vmatprep.subr.bf16.mxu1 %v6476_v59 }
 0xad5   : > { %6479 = vmatpush3.bf16.msra.mxu1 %v6476_v59  ;;  %v10272_v59 = vld [vmem:[#allocation33_spill] sm:$0xff] }
 0xad8   : > { %6185 = vmatmul.mubr.msk.f32.vlgmr.msra.gmra.mrb[48].mxu1 %vm646_vm2, %v10253_v31  ;;  %v10281_v31 = vld [vmem:[#allocation42_spill] sm:$0xff] }
 0xad9   : > { %6187 = vmatprep.mubr.msk.f32.mxu1 %vm646_vm2, %v10254_v50  ;;  %v10280_v50 = vld [vmem:[#allocation41_spill] sm:$0xff] }
 0xadc   : > { %6188 = vmatmul.mubr.msk.f32.gmra.mrb[50].mxu1 %vm646_vm2, %v10255_v41 }
 0xadd   : > { %6190 = vmatprep.mubr.msk.f32.mxu1 %vm646_vm2, %v10256_v46 }
 0xae0   : > { %6191 = vmatmul.mubr.msk.f32.gmra.mrb[52].mxu1 %vm646_vm2, %v10257_v6  ;;  %v10278_v6 = vld [vmem:[#allocation39_spill] sm:$0xff] }
 0xae1   : > { %6193 = vmatprep.mubr.msk.f32.mxu1 %vm646_vm2, %v10258_v55 }
 0xae4   : > { %6194 = vmatmul.mubr.msk.f32.gmra.mrb[54].mxu1 %vm646_vm2, %v10259_v27  ;;  %v10277_v27 = vld [vmem:[#allocation38_spill] sm:$0xff] }
 0xae5   : > { %6196 = vmatprep.mubr.msk.f32.mxu1 %vm646_vm2, %v10260_v36  ;;  %v10276_v36 = vld [vmem:[#allocation37_spill] sm:$0xff] }
 0xae8   : > { %6197 = vmatmul.mubr.msk.f32.gmra.mrb[56].mxu1 %vm646_vm2, %v10261_v42 }
 0xae9   : > { %6199 = vmatprep.mubr.msk.f32.mxu1 %vm646_vm2, %v10262_v24 }
 0xaec   : > { %6200 = vmatmul.mubr.msk.f32.gmra.mrb[58].mxu1 %vm646_vm2, %v10263_v38 }
 0xaed   : > { %6202 = vmatprep.mubr.msk.f32.mxu1 %vm646_vm2, %v10264_v61 }
 0xaf0   : > { %6203 = vmatmul.mubr.msk.f32.gmra.mrb[60].mxu1 %vm646_vm2, %v10265_v54 }
 0xaf1   : > { %6205 = vmatprep.mubr.msk.f32.mxu1 %vm646_vm2, %v10266_v58  ;;  %v10274_v58 = vld [vmem:[#allocation35_spill] sm:$0xff] }
 0xaf4   : > { %6206 = vmatmul.mubr.msk.f32.gmra.mrb[62].mxu1 %vm646_vm2, %v10267_v13  ;;  %v10275_v13 = vld [vmem:[#allocation36_spill] sm:$0xff] }
 0xaf5   : > { %6208 = vmatprep.mubr.msk.f32.mxu1 %vm646_vm2, %v10268_v40 }
 0xaf8   : > { %6209 = vmatmul.mubr.msk.f32.gmra.mrb[64].mxu1 %vm646_vm2, %v10269_v53 }
 0xaf9   : > { %6211 = vmatprep.mubr.msk.f32.mxu1 %vm646_vm2, %v10270_v28 }
 0xafc   : > { %6212 = vmatmul.mubr.msk.f32.gmra.mrb[66].mxu1 %vm646_vm2, %v10271_v7 }
 0xafd   : > { %6214 = vmatprep.mubr.msk.f32.mxu1 %vm646_vm2, %v10272_v59 }
 0xb00   : > { %6215 = vmatmul.mubr.msk.f32.gmra.mrb[68].mxu1 %vm646_vm2, %v10273_v0 }
 0xb01   : > { %6217 = vmatprep.mubr.msk.f32.mxu1 %vm646_vm2, %v10274_v58  ;;  %v10279_v58 = vld [vmem:[#allocation40_spill] sm:$0xff] }
 0xb04   : > { %6218 = vmatmul.mubr.msk.f32.gmra.mrb[70].mxu1 %vm646_vm2, %v10275_v13 }
 0xbab   : > { %v6186_v40 = vpop.f32.mrb[48].mxu1 }
 0xbac   : > { %v2812_v53 = vpop.f32.mrb[49].mxu1  ;;  %v2818_v59 = vadd.f32 %v6186_v40, %v10276_v36  ;;  %v10283_v36 = vld [vmem:[#allocation44_spill] sm:$0xff] }
 0xbad   : > { %v2813_v55 = vadd.f32 %v2812_v53, %v10277_v27 }
 0xbae   : > { %v2932_v44 = vmax.f32 %v2818_v59, 0.0 }
 0xbaf   : > { %v6189_v54 = vpop.f32.mrb[50].mxu1  ;;  %v2931_v39 = vmax.f32 %v2813_v55, 0.0  ;;  %v10286_v55 = vld [vmem:[#allocation48_spill] sm:$0xff] }
 0xbb0   : > { %v2822_v61 = vpop.f32.mrb[51].mxu1  ;;  %v2828_v46 = vadd.f32 %v6189_v54, %v10278_v6  ;;  %v10284_v54 = vld [vmem:[#allocation45_spill] sm:$0xff] }
 0xbb1   : > { %v2823_v41 = vadd.f32 %v2822_v61, %v10279_v58  ;;  %v8562_v58 = vadd.f32 1e-07, %v2932_v44 }
 0xbb2   : > { %v2934_v62 = vmax.f32 %v2828_v46, 0.0 }
 0xbb3   : > { %v6192_v28 = vpop.f32.mrb[52].mxu1  ;;  %v2933_v32 = vmax.f32 %v2823_v41, 0.0 }
 0xbb4   : > { %v2832_v38 = vpop.f32.mrb[53].mxu1  ;;  %v2838_v13 = vadd.f32 %v6192_v28, %v10280_v50  ;;  %v8564_v28 = vadd.f32 1e-07, %v2931_v39  ;;  %v8567_v59 = vadd.f32 1e-07, %v2934_v62  ;;  %v10291_v50 = vld [vmem:[#allocation51_spill] sm:$0xff] }
 0xbb5   : > { %v2833_v11 = vadd.f32 %v2832_v38, %v10281_v31  ;;  %v10285_v38 = vld [vmem:[#allocation46_spill] sm:$0xff]  ;;  %v8570_v41 = vadd.f32 1e-07, %v2933_v32 }
 0xbb6   : > { %v2936_v40 = vmax.f32 %v2838_v13, 0.0  ;;  %v2979_v62 = vsel %vm806_vm10, %v8564_v28, -inf  ;;  %v10288_v32 = vld [vmem:[#allocation50_spill] sm:$0xff] }
 0xbb7   : > { %v6195_v24 = vpop.f32.mrb[54].mxu1  ;;  %v2935_v27 = vmax.f32 %v2833_v11, 0.0 }
 0xbb8   : > { %v2842_v7 = vpop.f32.mrb[55].mxu1  ;;  %v2848_v16 = vadd.f32 %v6195_v24, %v10282_v45  ;;  %v8572_v13 = vadd.f32 1e-07, %v2936_v40 }
 0xbb9   : > { %v2843_v53 = vadd.f32 %v2842_v7, %v10283_v36 }
 0xbba   : > { %v2938_v21 = vmax.f32 %v2848_v16, 0.0  ;;  %v10287_v16 = vld [vmem:[#allocation49_spill] sm:$0xff]  ;;  %v2985_v36 = vsel %vm806_vm10, %v8572_v13, -inf }
 0xbbb   : > { %v6198_v42 = vpop.f32.mrb[56].mxu1  ;;  %v2937_v11 = vmax.f32 %v2843_v53, 0.0  ;;  %v8586_v53 = vsel %vm806_vm10, %v8567_v59, -inf }
 0xbbc   : > { %v2852_v0 = vpop.f32.mrb[57].mxu1  ;;  %v2858_v6 = vadd.f32 %v6198_v42, %v10284_v54  ;;  %v8575_v42 = vadd.f32 1e-07, %v2935_v27  ;;  %v8577_v44 = vadd.f32 1e-07, %v2938_v21  ;;  %v10289_v27 = vld [vmem:[#allocation47_spill] sm:$0xff] }
 0xbbd   : > { %v2853_v24 = vadd.f32 %v2852_v0, %v10285_v38  ;;  %v2980_v0 = vsel %vm806_vm10, %v8562_v58, -inf  ;;  %v2981_v38 = vsel %vm806_vm10, %v8570_v41, -inf  ;;  %v8594_v31 = vadd.f32 1e-07, %v2937_v11 }
 0xbbe   : > { %v2940_v39 = vmax.f32 %v2858_v6, 0.0 }
 0xbbf   : > { %v6201_v5 = vpop.f32.mrb[58].mxu1 }
 0xbc0   : > { %v2862_v35 = vpop.f32.mrb[59].mxu1 }
 0xbc1   : > { %v2863_v46 = vadd.f32 %v2862_v35, %v10286_v55  ;;  %v2939_v35 = vmax.f32 %v2853_v24, 0.0 }
 0xbc3   : > { %v6204_v61 = vpop.f32.mrb[60].mxu1  ;;  %v2941_v21 = vmax.f32 %v2863_v46, 0.0 }
 0xbc4   : > { %v2872_v45 = vpop.f32.mrb[61].mxu1  ;;  %v2878_v7 = vadd.f32 %v6204_v61, %v10287_v16  ;;  %v2868_v61 = vadd.f32 %v6201_v5, %v10289_v27  ;;  %v10290_v16 = vld [vmem:[#allocation52_spill] sm:$0xff]  ;;  %v8602_v5 = vadd.f32 1e-07, %v2940_v39  ;;  %v2987_v39 = vsel %vm806_vm10, %v8594_v31, -inf }
 0xbc5   : > { %v2873_v55 = vadd.f32 %v2872_v45, %v10288_v32  ;;  %v2983_v45 = vsel %vm806_vm10, %v8575_v42, -inf  ;;  %v8600_v32 = vsel %vm806_vm10, %v8577_v44, -inf  ;;  %v8608_v10 = vadd.f32 1e-07, %v2941_v21  ;;  %v10294_v21 = vld [vmem:[#allocation55_spill] sm:$0xff] }
 0xbc6   : > { %v2944_v24 = vmax.f32 %v2878_v7, 0.0  ;;  %v2986_v7 = vmax.f32 %v2980_v0, %v2985_v36  ;;  %v2942_v48 = vmax.f32 %v2868_v61, 0.0  ;;  %v2984_v34 = vmax.f32 %v2979_v62, %v2983_v45 }
 0xbc7   : > { %v6207_v54 = vpop.f32.mrb[62].mxu1  ;;  %v2943_v27 = vmax.f32 %v2873_v55, 0.0  ;;  %v2990_v55 = vmax.f32 %v8586_v53, %v8600_v32  ;;  %v2995_v32 = vsel %vm806_vm10, %v8608_v10, -inf  ;;  %v10295_v53 = vld [vmem:[#allocation56_spill] sm:$0xff] }
 0xbc8   : > { %v2882_v40 = vpop.f32.mrb[63].mxu1  ;;  %v2888_v56 = vadd.f32 %v6207_v54, %v10291_v50  ;;  %v2993_v54 = vsel %vm806_vm10, %v8602_v5, -inf }
 0xbc9   : > { %v2883_v6 = vadd.f32 %v2882_v40, %v10290_v16  ;;  %v8604_v16 = vadd.f32 1e-07, %v2939_v35  ;;  %v8623_v62 = vadd.f32 1e-07, %v2943_v27 }
 0xbca   : > { %v2946_v61 = vmax.f32 %v2888_v56, 0.0 }
 0xbcb   : > { %v2945_v46 = vmax.f32 %v2883_v6, 0.0  ;;  %v6210_v40 = vpop.f32.mrb[64].mxu1  ;;  %v8613_v6 = vadd.f32 1e-07, %v2944_v24 }
 0xbcc   : > { %v2898_v11 = vadd.f32 %v6210_v40, %v10292_v37  ;;  %v2892_v25 = vpop.f32.mrb[65].mxu1  ;;  %v2994_v37 = vmax.f32 %v2986_v7, %v2993_v54  ;;  %v10296_v7 = vld [vmem:[#allocation57_spill] sm:$0xff] }
 0xbcd   : > { %v2893_v52 = vadd.f32 %v2892_v25, %v10293_v43  ;;  %v8619_v40 = vadd.f32 1e-07, %v2945_v46  ;;  %v2991_v25 = vsel %vm806_vm10, %v8604_v16, -inf  ;;  %v8626_v43 = vadd.f32 1e-07, %v2942_v48 }
 0xbce   : > { %v2948_v35 = vmax.f32 %v2898_v11, 0.0  ;;  %v2988_v11 = vmax.f32 %v2981_v38, %v2987_v39  ;;  %v2992_v4 = vmax.f32 %v2984_v34, %v2991_v25 }
 0xbcf   : > { %v2947_v36 = vmax.f32 %v2893_v52, 0.0  ;;  %v6213_v0 = vpop.f32.mrb[66].mxu1  ;;  %v3001_v52 = vsel %vm806_vm10, %v8613_v6, -inf  ;;  %v3003_v56 = vsel %vm806_vm10, %v8619_v40, -inf }
 0xbd0   : > { %v2908_v24 = vadd.f32 %v6213_v0, %v10294_v21  ;;  %v2902_v45 = vpop.f32.mrb[67].mxu1  ;;  %v8633_v50 = vadd.f32 1e-07, %v2948_v35  ;;  %v2996_v39 = vmax.f32 %v2988_v11, %v2995_v32  ;;  %v2999_v21 = vsel %vm806_vm10, %v8623_v62, -inf }
 0xbd1   : > { %v2903_v46 = vadd.f32 %v2902_v45, %v10295_v53  ;;  %v8637_v0 = vadd.f32 1e-07, %v2947_v36  ;;  %v8641_v45 = vadd.f32 1e-07, %v2946_v61  ;;  %v2997_v35 = vsel %vm806_vm10, %v8626_v43, -inf }
 0xbd2   : > { %v2950_v27 = vmax.f32 %v2908_v24, 0.0  ;;  %v3002_v34 = vmax.f32 %v2994_v37, %v3001_v52  ;;  %v10297_v24 = vld [vmem:[#allocation58_spill] sm:$0xff]  ;;  %v3004_v60 = vmax.f32 %v2996_v39, %v3003_v56  ;;  %v3009_v11 = vsel %vm806_vm10, %v8633_v50, -inf }
 0xbd3   : > { %v2949_v48 = vmax.f32 %v2903_v46, 0.0  ;;  %v6216_v38 = vpop.f32.mrb[68].mxu1  ;;  %v3000_v61 = vmax.f32 %v2992_v4, %v2999_v21  ;;  %v3005_v52 = vsel %vm806_vm10, %v8641_v45, -inf  ;;  %v10299_v21 = vld [vmem:[#allocation60_spill] sm:$0xff] }
 0xbd4   : > { %v2918_v54 = vadd.f32 %v6216_v38, %v10296_v7  ;;  %v2912_v53 = vpop.f32.mrb[69].mxu1  ;;  %v8651_v32 = vadd.f32 1e-07, %v2950_v27  ;;  %v3007_v38 = vsel %vm806_vm10, %v8637_v0, -inf }
 0xbd5   : > { %v8646_v25 = vadd.f32 1e-07, %v2949_v48  ;;  %v2913_v36 = vadd.f32 %v2912_v53, %v10297_v24  ;;  %v10298_v48 = vld [vmem:[#allocation59_spill] sm:$0xff]  ;;  %v2998_v24 = vmax.f32 %v2990_v55, %v2997_v35  ;;  %v3008_v47 = vmax.f32 %v3000_v61, %v3007_v38 }
 0xbd6   : > { %v2952_v46 = vmax.f32 %v2918_v54, 0.0  ;;  %v3010_v54 = vmax.f32 %v3002_v34, %v3009_v11 }
 0xbd7   : > { %v3011_v7 = vsel %vm806_vm10, %v8646_v25, -inf  ;;  %v2951_v22 = vmax.f32 %v2913_v36, 0.0  ;;  %v6219_v37 = vpop.f32.mrb[70].mxu1  ;;  %v3013_v36 = vsel %vm806_vm10, %v8651_v32, -inf }
 0xbd8   : > { %v3012_v53 = vmax.f32 %v3004_v60, %v3011_v7  ;;  %v8659_v56 = vadd.f32 1e-07, %v2952_v46  ;;  %v2928_v39 = vadd.f32 %v6219_v37, %v10298_v48  ;;  %v2922_v27 = vpop.f32.mrb[71].mxu1  ;;  %v3006_v60 = vmax.f32 %v2998_v24, %v3005_v52 }
 0xbd9   : > { %v8662_v4 = vadd.f32 1e-07, %v2951_v22  ;;  %v2923_v14 = vadd.f32 %v2922_v27, %v10299_v21 }
 0xbda   : > { %v3017_v51 = vsel %vm806_vm10, %v8659_v56, -inf  ;;  %v2954_v17 = vmax.f32 %v2928_v39, 0.0  ;;  %v3014_v22 = vmax.f32 %v3006_v60, %v3013_v36 }
 0xbdb   : > { %v3018_v7 = vmax.f32 %v3010_v54, %v3017_v51  ;;  %v3015_v46 = vsel %vm806_vm10, %v8662_v4, -inf  ;;  %v2953_v37 = vmax.f32 %v2923_v14, 0.0 }
 0xbdc   : > { %v3016_v55 = vmax.f32 %v3008_v47, %v3015_v46  ;;  %v8671_v35 = vadd.f32 1e-07, %v2954_v17 }
 0xbdd   : > { %v8673_v34 = vadd.f32 1e-07, %v2953_v37 }
 0xbde   : > { %v3023_v11 = vmax.f32 %v3016_v55, %v3018_v7  ;;  %v3021_v61 = vsel %vm806_vm10, %v8671_v35, -inf }
 0xbdf   : > { %v3022_v38 = vmax.f32 %v3014_v22, %v3021_v61  ;;  %v3019_v39 = vsel %vm806_vm10, %v8673_v34, -inf }
 0xbe0   : > { %v3020_v24 = vmax.f32 %v3012_v53, %v3019_v39 }
 0xbe2   : > { %v3024_v51 = vmax.f32 %v3020_v24, %v3022_v38 }
 0xbe4   : > { %v3025_v52 = vmax.f32 %v3023_v11, %v3024_v51 }
 0xbe6   : > { %v3026_v27 = vrot.slane %v3025_v52, 4 }
 0xbe8   : > { %v3027_v54 = vmax.f32 %v3025_v52, %v3026_v27 }
 0xbea   : > { %v3028_v14 = vrot.slane %v3027_v54, 2 }
 0xbec   : > { %v3029_v47 = vmax.f32 %v3027_v54, %v3028_v14 }
 0xbee   : > { %v3030_v17 = vrot.slane %v3029_v47, 1 }
 0xbf0   : > { %v8679_v46 = vmax.f32 %v3029_v47, %v3030_v17 }
 0xbf2   : > { %v3054_v36 = vsub.f32 %v8673_v34, %v8679_v46  ;;  %v3034_v60 = vsub.f32 %v8570_v41, %v8679_v46  ;;  %v3035_v7 = vsub.f32 %v8567_v59, %v8679_v46  ;;  %v3032_v53 = vsub.f32 %v8564_v28, %v8679_v46 }
 0xbf3   : > { %v3033_v37 = vsub.f32 %v8562_v58, %v8679_v46  ;;  %v3038_v55 = vsub.f32 %v8594_v31, %v8679_v46  ;;  %v3039_v38 = vsub.f32 %v8577_v44, %v8679_v46  ;;  %v3036_v24 = vsub.f32 %v8575_v42, %v8679_v46 }
 0xbf4   : > { %v3100_v22 = vmul.f32 1.442695, %v3054_v36  ;;  %v3060_v11 = vmul.f32 1.442695, %v3034_v60  ;;  %v3062_v61 = vmul.f32 1.442695, %v3035_v7  ;;  %v3037_v52 = vsub.f32 %v8572_v13, %v8679_v46 }
 0xbf5   : > { %v3056_v39 = vmul.f32 1.442695, %v3032_v53  ;;  %v3058_v51 = vmul.f32 1.442695, %v3033_v37  ;;  %v3068_v27 = vmul.f32 1.442695, %v3038_v55  ;;  %v3042_v54 = vsub.f32 %v8608_v10, %v8679_v46 }
 0xbf6   : > { %6941 = vpow2.f32 %v3100_v22  ;;  %v3070_v14 = vmul.f32 1.442695, %v3039_v38  ;;  %v3043_v47 = vsub.f32 %v8626_v43, %v8679_v46  ;;  %v3046_v17 = vsub.f32 %v8619_v40, %v8679_v46 }
 0xbf7   : > { %6943 = vpow2.f32 %v3060_v11  ;;  %v3064_v36 = vmul.f32 1.442695, %v3036_v24  ;;  %v3040_v60 = vsub.f32 %v8604_v16, %v8679_v46  ;;  %v3066_v7 = vmul.f32 1.442695, %v3037_v52 }
 0xbf8   : > { %6945 = vpow2.f32 %v3062_v61  ;;  %v3041_v53 = vsub.f32 %v8602_v5, %v8679_v46  ;;  %v3076_v37 = vmul.f32 1.442695, %v3042_v54  ;;  %v3050_v55 = vsub.f32 %v8646_v25, %v8679_v46 }
 0xbf9   : > { %6947 = vpow2.f32 %v3056_v39  ;;  %v3078_v22 = vmul.f32 1.442695, %v3043_v47  ;;  %v3047_v11 = vsub.f32 %v8641_v45, %v8679_v46  ;;  %v3051_v61 = vsub.f32 %v8651_v32, %v8679_v46 }
 0xbfa   : > { %6949 = vpow2.f32 %v3058_v51  ;;  %v3072_v38 = vmul.f32 1.442695, %v3040_v60  ;;  %v3044_v39 = vsub.f32 %v8623_v62, %v8679_v46  ;;  %v3055_v24 = vsub.f32 %v8671_v35, %v8679_v46 }
 0xbfb   : > { %6951 = vpow2.f32 %v3068_v27  ;;  %v3074_v51 = vmul.f32 1.442695, %v3041_v53  ;;  %v3045_v52 = vsub.f32 %v8613_v6, %v8679_v46  ;;  %v3084_v27 = vmul.f32 1.442695, %v3046_v17 }
 0xbfc   : > { %6953 = vpow2.f32 %v3070_v14  ;;  %v3052_v54 = vsub.f32 %v8662_v4, %v8679_v46  ;;  %v3053_v14 = vsub.f32 %v8659_v56, %v8679_v46  ;;  %v3080_v53 = vmul.f32 1.442695, %v3044_v39 }
 0xbfd   : > { %6955 = vpow2.f32 %v3064_v36  ;;  %v3086_v36 = vmul.f32 1.442695, %v3047_v11  ;;  %v3048_v17 = vsub.f32 %v8637_v0, %v8679_v46  ;;  %v3082_v21 = vmul.f32 1.442695, %v3045_v52 }
 0xbfe   : > { %6957 = vpow2.f32 %v3066_v7  ;;  %v3049_v48 = vsub.f32 %v8633_v50, %v8679_v46 }
 0xbff   : > { %6959 = vpow2.f32 %v3076_v37  ;;  %v3088_v46 = vmul.f32 1.442695, %v3048_v17 }
 0xc00   : > { %v8725_v47 = vpop.eup %6941  ;;  %6961 = vpow2.f32 %v3078_v22  ;;  %v3090_v23 = vmul.f32 1.442695, %v3049_v48 }
 0xc01   : > { %v8727_v60 = vpop.eup %6943  ;;  %v8731_v7 = vmul.f32 %v8725_v47, %v8673_v34  ;;  %6963 = vpow2.f32 %v3072_v38  ;;  %v3092_v34 = vmul.f32 1.442695, %v3050_v55  ;;  %v3094_v38 = vmul.f32 1.442695, %v3051_v61 }
 0xc02   : > { %v8735_v37 = vpop.eup %6945  ;;  %6965 = vpow2.f32 %v3074_v51  ;;  %v3102_v61 = vmul.f32 1.442695, %v3055_v24 }
 0xc03   : > { %v8739_v22 = vpop.eup %6947  ;;  %v6698_v11 = vpack.i.bf16 %v8735_v37, %v8727_v60  ;;  %6967 = vpow2.f32 %v3084_v27 }
 0xc04   : > { %v8743_v29 = vpop.eup %6949  ;;  %6969 = vpow2.f32 %v3086_v36  ;;  %v3096_v36 = vmul.f32 1.442695, %v3052_v54 }
 0xc05   : > { %v8745_v39 = vpop.eup %6951  ;;  %6699 = vrot.lane.b32.xlu0 %v6698_v11, %s7151_s10  ;;  %v6693_v51 = vpack.i.bf16 %v8743_v29, %v8739_v22  ;;  %6971 = vpow2.f32 %v3080_v53 }
 0xc06   : > { %v8750_v52 = vpop.eup %6953  ;;  %6973 = vpow2.f32 %v3082_v21  ;;  %v3098_v21 = vmul.f32 1.442695, %v3053_v14 }
 0xc07   : > { %v8752_v18 = vpop.eup %6955  ;;  %6694 = vrot.lane.b32.xlu1 %v6693_v51, %s7151_s10  ;;  %v6708_v55 = vpack.i.bf16 %v8750_v52, %v8745_v39  ;;  %6975 = vpow2.f32 %v3092_v34 }
 0xc08   : > { %v8757_v27 = vpop.eup %6957  ;;  %6977 = vpow2.f32 %v3094_v38 }
 0xc09   : > { %v8759_v11 = vpop.eup %6959  ;;  %6709 = vrot.lane.b32.xlu0 %v6708_v55, %s7151_s10  ;;  %v6703_v48 = vpack.i.bf16 %v8757_v27, %v8752_v18  ;;  %6979 = vpow2.f32 %v3088_v46 }
 0xc0a   : > { %v8764_v53 = vpop.eup %6961  ;;  %6981 = vpow2.f32 %v3090_v23 }
 0xc0b   : > { %v8766_v17 = vpop.eup %6963  ;;  %6704 = vrot.lane.b32.xlu1 %v6703_v48, %s7151_s10  ;;  %v6718_v24 = vpack.i.bf16 %v8764_v53, %v8759_v11  ;;  %6983 = vpow2.f32 %v3102_v61 }
 0xc0c   : > { %v8771_v54 = vpop.eup %6965  ;;  %6985 = vpow2.f32 %v3096_v36 }
 0xc0d   : > { %v6968_v34 = vpop.eup %6967  ;;  %6719 = vrot.lane.b32.xlu0 %v6718_v24, %s7151_s10  ;;  %v6713_v14 = vpack.i.bf16 %v8771_v54, %v8766_v17  ;;  %6987 = vpow2.f32 %v3098_v21 }
 0xc0e   : > { %v8776_v38 = vpop.eup %6969  ;;  %v8779_v23 = vmul.f32 %v6968_v34, %v8619_v40 }
 0xc0f   : > { %v8781_v51 = vpop.eup %6971  ;;  %6714 = vrot.lane.b32.xlu1 %v6713_v14, %s7151_s10  ;;  %v6728_v46 = vpack.i.bf16 %v8776_v38, %v6968_v34 }
 0xc10   : > { %v8785_v55 = vpop.eup %6973 }
 0xc11   : > { %v6976_v61 = vpop.eup %6975  ;;  %6729 = vrot.lane.b32.xlu0 %v6728_v46, %s7151_s10  ;;  %v6723_v36 = vpack.i.bf16 %v8785_v55, %v8781_v51 }
 0xc12   : > { %v6978_v48 = vpop.eup %6977  ;;  %v8791_v21 = vmul.f32 %v6976_v61, %v8646_v25 }
 0xc13   : > { %v8793_v40 = vpop.eup %6979  ;;  %6724 = vrot.lane.b32.xlu1 %v6723_v36, %s7151_s10  ;;  %v6738_v24 = vpack.i.bf16 %v6978_v48, %v6976_v61  ;;  %v8797_v14 = vmul.f32 %v6978_v48, %v8651_v32 }
 0xc14   : > { %v8799_v34 = vpop.eup %6981 }
 0xc15   : > { %v6984_v15 = vpop.eup %6983  ;;  %6739 = vrot.lane.b32.xlu0 %v6738_v24, %s7151_s10  ;;  %v6733_v46 = vpack.i.bf16 %v8799_v34, %v8793_v40  ;;  %v3106_v24 = vmul.f32 %v8727_v60, %v8570_v41 }
 0xc16   : > { %v6986_v9 = vpop.eup %6985  ;;  %v6748_v25 = vpack.i.bf16 %v6984_v15, %v8725_v47  ;;  %v8806_v57 = vmul.f32 %v6984_v15, %v8671_v35  ;;  %v3107_v47 = vmul.f32 %v8735_v37, %v8567_v59  ;;  %v3110_v59 = vmul.f32 %v8745_v39, %v8594_v31 }
 0xc17   : > { %v6988_v33 = vpop.eup %6987  ;;  %6734 = vrot.lane.b32.xlu1 %v6733_v46, %s7151_s10  ;;  %v8810_v32 = vmul.f32 %v6986_v9, %v8662_v4  ;;  %v3105_v4 = vmul.f32 %v8743_v29, %v8562_v58  ;;  %v3111_v37 = vmul.f32 %v8750_v52, %v8577_v44 }
 0xc18   : > { %v6743_v61 = vpack.i.bf16 %v6988_v33, %v6986_v9  ;;  %v8813_v36 = vmul.f32 %v6988_v33, %v8659_v56  ;;  %v3104_v33 = vmul.f32 %v8739_v22, %v8564_v28  ;;  %v3108_v22 = vmul.f32 %v8752_v18, %v8575_v42 }
 0xc19   : > { %6749 = vrot.lane.b32.xlu0 %v6748_v25, %s7151_s10 }
 0xc1b   : > { %6744 = vrot.lane.b32.xlu1 %v6743_v61, %s7151_s10 }
 0xc77   : > { %v6700_v48 = vpop.permute.xlu0 %6699 }
 0xc78   : > { %v6702_v15 = vunpack.i.h.bf16 %v6700_v48  ;;  %v6701_v35 = vunpack.i.l.bf16 %v6700_v48 }
 0xc79   : > { %v6695_v9 = vpop.permute.xlu1 %6694 }
 0xc7a   : > { %v3227_v56 = vsel %vm806_vm10, %v3107_v47, %v6702_v15  ;;  %v3226_v46 = vsel %vm806_vm10, %v3106_v24, %v6701_v35  ;;  %v6697_v25 = vunpack.i.h.bf16 %v6695_v9  ;;  %v6696_v61 = vunpack.i.l.bf16 %v6695_v9 }
 0xc7b   : > { %v6710_v41 = vpop.permute.xlu0 %6709  ;;  %v6484_v60 = vpack.c.bf16 %v3227_v56, %v3226_v46  ;;  %v3109_v47 = vmul.f32 %v8757_v27, %v8572_v13  ;;  %v3114_v24 = vmul.f32 %v8759_v11, %v8608_v10  ;;  %v3112_v56 = vmul.f32 %v8766_v17, %v8604_v16 }
 0xc7c   : > { %v3225_v29 = vsel %vm806_vm10, %v3105_v4, %v6697_v25  ;;  %v3224_v58 = vsel %vm806_vm10, %v3104_v33, %v6696_v61  ;;  %v6712_v48 = vunpack.i.h.bf16 %v6710_v41  ;;  %v6711_v28 = vunpack.i.l.bf16 %v6710_v41 }
 0xc7d   : > { %v6705_v15 = vpop.permute.xlu1 %6704  ;;  %v6481_v35 = vpack.c.bf16 %v3225_v29, %v3224_v58  ;;  %v3115_v4 = vmul.f32 %v8764_v53, %v8626_v43  ;;  %v3113_v46 = vmul.f32 %v8771_v54, %v8602_v5  ;;  %v3116_v54 = vmul.f32 %v8781_v51, %v8623_v62 }
 0xc7e   : > { %v3231_v31 = vsel %vm806_vm10, %v3111_v37, %v6712_v48  ;;  %v3230_v44 = vsel %vm806_vm10, %v3110_v59, %v6711_v28  ;;  %v6707_v39 = vunpack.i.h.bf16 %v6705_v15  ;;  %v6706_v52 = vunpack.i.l.bf16 %v6705_v15 }
 0xc7f   : > { %6482 = vmatpush1.bf16.msra.mxu0 %v6481_v35  ;;  %v6720_v9 = vpop.permute.xlu0 %6719  ;;  %v6490_v18 = vpack.c.bf16 %v3231_v31, %v3230_v44  ;;  %v3119_v59 = vmul.f32 %v8776_v38, %v8641_v45  ;;  %v3117_v58 = vmul.f32 %v8785_v55, %v8613_v6  ;;  %v3120_v6 = vmul.f32 %v8793_v40, %v8637_v0 }
 0xc80   : > { %v3229_v42 = vsel %vm806_vm10, %v3109_v47, %v6707_v39  ;;  %v3228_v13 = vsel %vm806_vm10, %v3108_v22, %v6706_v52  ;;  %v6722_v27 = vunpack.i.h.bf16 %v6720_v9  ;;  %v6721_v33 = vunpack.i.l.bf16 %v6720_v9  ;;  %6483 = vmatprep.subr.bf16.mxu0 %v10207_v19 }
 0xc81   : > { %v6715_v10 = vpop.permute.xlu1 %6714  ;;  %v6487_v11 = vpack.c.bf16 %v3229_v42, %v3228_v13  ;;  %v3121_v55 = vmul.f32 %v8799_v34, %v8633_v50 }
 0xc82   : > { %v3235_v43 = vsel %vm806_vm10, %v3115_v4, %v6722_v27  ;;  %v3234_v53 = vsel %vm806_vm10, %v3114_v24, %v6721_v33  ;;  %v6717_v25 = vunpack.i.h.bf16 %v6715_v10  ;;  %v6716_v61 = vunpack.i.l.bf16 %v6715_v10 }
 0xc83   : > { %6485 = vmatpush1.bf16.msra.mxu0 %v6484_v60  ;;  %v6730_v37 = vpop.permute.xlu0 %6729  ;;  %v6496_v41 = vpack.c.bf16 %v3235_v43, %v3234_v53  ;;  %v10305_v53 = vld [vmem:[#allocation69_spill] sm:$0xff] }
 0xc84   : > { %v3233_v29 = vsel %vm806_vm10, %v3113_v46, %v6717_v25  ;;  %v3232_v16 = vsel %vm806_vm10, %v3112_v56, %v6716_v61  ;;  %v6732_v17 = vunpack.i.h.bf16 %v6730_v37  ;;  %v6731_v5 = vunpack.i.l.bf16 %v6730_v37  ;;  %6486 = vmatprep.subr.bf16.mxu0 %v10207_v19  ;;  %v10307_v61 = vld [vmem:[#allocation14_spill] sm:$0xff] }
 0xc85   : > { %v6725_v60 = vpop.permute.xlu1 %6724  ;;  %v6493_v48 = vpack.c.bf16 %v3233_v29, %v3232_v16 }
 0xc86   : > { %v3239_v45 = vsel %vm806_vm10, %v3119_v59, %v6732_v17  ;;  %v3238_v38 = vsel %vm806_vm10, %v8779_v23, %v6731_v5  ;;  %v6727_v28 = vunpack.i.h.bf16 %v6725_v60  ;;  %v6726_v22 = vunpack.i.l.bf16 %v6725_v60 }
 0xc87   : > { %6488 = vmatpush1.bf16.msra.mxu0 %v6487_v11  ;;  %v6740_v47 = vpop.permute.xlu0 %6739  ;;  %v6502_v15 = vpack.c.bf16 %v3239_v45, %v3238_v38 }
 0xc88   : > { %v3237_v35 = vsel %vm806_vm10, %v3117_v58, %v6727_v28  ;;  %v3236_v31 = vsel %vm806_vm10, %v3116_v54, %v6726_v22  ;;  %v6742_v62 = vunpack.i.h.bf16 %v6740_v47  ;;  %v6741_v51 = vunpack.i.l.bf16 %v6740_v47  ;;  %6489 = vmatprep.subr.bf16.mxu0 %v10207_v19 }
 0xc89   : > { %v6735_v23 = vpop.permute.xlu1 %6734  ;;  %v6499_v44 = vpack.c.bf16 %v3237_v35, %v3236_v31 }
 0xc8a   : > { %v3243_v39 = vsel %vm806_vm10, %v8797_v14, %v6742_v62  ;;  %v3242_v52 = vsel %vm806_vm10, %v8791_v21, %v6741_v51  ;;  %v6737_v24 = vunpack.i.h.bf16 %v6735_v23  ;;  %v6736_v4 = vunpack.i.l.bf16 %v6735_v23 }
 0xc8b   : > { %6491 = vmatpush1.bf16.msra.mxu0 %v6490_v18  ;;  %v6750_v9 = vpop.permute.xlu0 %6749  ;;  %v6508_v42 = vpack.c.bf16 %v3243_v39, %v3242_v52 }
 0xc8c   : > { %v3241_v13 = vsel %vm806_vm10, %v3121_v55, %v6737_v24  ;;  %v3240_v0 = vsel %vm806_vm10, %v3120_v6, %v6736_v4  ;;  %v6752_v40 = vunpack.i.h.bf16 %v6750_v9  ;;  %v6751_v27 = vunpack.i.l.bf16 %v6750_v9  ;;  %6492 = vmatprep.subr.bf16.mxu0 %v10207_v19 }
 0xc8d   : > { %v6745_v50 = vpop.permute.xlu1 %6744  ;;  %v6505_v34 = vpack.c.bf16 %v3241_v13, %v3240_v0 }
 0xc8e   : > { %v3247_v14 = vsel %vm806_vm10, %v8806_v57, %v6752_v40  ;;  %v3246_v21 = vsel %vm806_vm10, %v8731_v7, %v6751_v27  ;;  %v6747_v33 = vunpack.i.h.bf16 %v6745_v50  ;;  %v6746_v18 = vunpack.i.l.bf16 %v6745_v50  ;;  %v10301_v7 = vld [vmem:[#allocation66_spill] sm:$0xff] }
 0xc8f   : > { %6494 = vmatpush1.bf16.msra.mxu0 %v6493_v48  ;;  %v6514_v56 = vpack.c.bf16 %v3247_v14, %v3246_v21  ;;  %v10300_v57 = vmov 1.0  }
 0xc90   : > { %v3245_v46 = vsel %vm806_vm10, %v8813_v36, %v6747_v33  ;;  %v3244_v10 = vsel %vm806_vm10, %v8810_v32, %v6746_v18  ;;  %6495 = vmatprep.subr.bf16.mxu0 %v10207_v19  ;;  %v10303_v36 = vld [vmem:[#allocation68_spill] sm:$0xff] }
 0xc91   : > { %v6511_v11 = vpack.c.bf16 %v3245_v46, %v3244_v10  ;;  %v3457_v46 = vld [vmem:[%s9962_s3 + $0x70] sm:$0xff]  ;;  %v3458_v10 = vld [vmem:[%s9962_s3 + $0x78] sm:$0xff] }
 0xc93   : > { %6497 = vmatpush1.bf16.msra.mxu0 %v6496_v41 }
 0xc94   : > { %6498 = vmatprep.subr.bf16.mxu0 %v10207_v19 }
 0xc97   : > { %6500 = vmatpush1.bf16.msra.mxu0 %v6499_v44 }
 0xc98   : > { %6501 = vmatprep.subr.bf16.mxu0 %v10207_v19 }
 0xc9b   : > { %6503 = vmatpush1.bf16.msra.mxu0 %v6502_v15 }
 0xc9c   : > { %6504 = vmatprep.subr.bf16.mxu0 %v10207_v19 }
 0xc9f   : > { %6506 = vmatpush1.bf16.msra.mxu0 %v6505_v34 }
 0xca0   : > { %6507 = vmatprep.subr.bf16.mxu0 %v10207_v19 }
 0xca3   : > { %6509 = vmatpush1.bf16.msra.mxu0 %v6508_v42 }
 0xca4   : > { %6510 = vmatprep.subr.bf16.mxu0 %v10207_v19 }
 0xca7   : > { %6512 = vmatpush1.bf16.msra.mxu0 %v6511_v11  ;;  %v3459_v11 = vld [vmem:[%s9962_s3 + $0x80] sm:$0xff] }
 0xca8   : > { %6513 = vmatprep.subr.bf16.mxu0 %v10207_v19 }
 0xcab   : > { %6515 = vmatpush1.bf16.msra.mxu0 %v6514_v56 }
 0xcae   : > { %5646 = vmatmul.mubr.msk.f32.vlgmr.msra.gmra.mrb[48].mxu0 %vm566_vm8, %v10300_v57 }
 0xcaf   : > { %5647 = vmatprep.mubr.msk.f32.mxu0 %vm646_vm2, %v8097_v2 }
 0xcb2   : > { %5648 = vmatmul.mubr.msk.f32.gmra.mrb[50].mxu0 %vm568_vm11, %v10300_v57 }
 0xcb3   : > { %5649 = vmatprep.mubr.msk.f32.mxu0 %vm646_vm2, %v8113_v3 }
 0xcb6   : > { %5650 = vmatmul.mubr.msk.f32.gmra.mrb[52].mxu0 %vm570_vm14, %v10300_v57 }
 0xcb7   : > { %5651 = vmatprep.mubr.msk.f32.mxu0 %vm646_vm2, %v8129_v1 }
 0xcba   : > { %5652 = vmatmul.mubr.msk.f32.gmra.mrb[54].mxu0 %vm572_vm0, %v10300_v57 }
 0xcbb   : > { %5653 = vmatprep.mubr.msk.f32.mxu0 %vm646_vm2, %v8145_v12 }
 0xcbe   : > { %5654 = vmatmul.mubr.msk.f32.gmra.mrb[56].mxu0 %vm574_vm3, %v10300_v57 }
 0xcbf   : > { %5655 = vmatprep.mubr.msk.f32.mxu0 %vm646_vm2, %v10301_v7 }
 0xcc2   : > { %5656 = vmatmul.mubr.msk.f32.gmra.mrb[58].mxu0 %vm576_vm6, %v10300_v57 }
 0xcc3   : > { %5657 = vmatprep.mubr.msk.f32.mxu0 %vm646_vm2, %v10303_v36 }
 0xcc6   : > { %5658 = vmatmul.mubr.msk.f32.gmra.mrb[60].mxu0 %vm578_vm9, %v10300_v57 }
 0xcc7   : > { %5659 = vmatprep.mubr.msk.f32.mxu0 %vm646_vm2, %v10305_v53 }
 0xcca   : > { %5660 = vmatmul.mubr.msk.f32.gmra.mrb[62].mxu0 %vm580_vm12, %v10300_v57 }
 0xccb   : > { %6276 = vmatprep.mubr.msk.f32.mxu0 %vm646_vm2, %v10307_v61 }
 0xd81   : > { %v8941_v59 = vpop.f32.mrb[48].mxu0 }
 0xd82   : > { %v3361_v37 = vmax.f32 %v8941_v59, 1e-30  ;;  %v3316_v41 = vpop.f32.mrb[49].mxu0  ;;  %vm3353_vm15 = vcmp.gt.f32.partialorder %v8941_v59, 0.0 }
 0xd83   : > { %v3460_v41 = vld [vmem:[%s9962_s3 + $0x88] sm:$0xff] }
 0xd84   : > { %6989 = vrcp.f32 %v3361_v37  ;;  %v6516_v37 = vpack.c.bf16 %v3458_v10, %v3457_v46  ;;  %v10312_v10 = vld [vmem:[#allocation79_spill] sm:$0xff] }
 0xd85   : > { %v8944_v29 = vpop.f32.mrb[50].mxu0 }
 0xd86   : > { %v3362_v16 = vmax.f32 %v8944_v29, 1e-30  ;;  %v3321_v17 = vpop.f32.mrb[51].mxu0  ;;  %6517 = vmatprep.subr.bf16.mxu1 %v6516_v37  ;;  %vm3354_vm1 = vcmp.gt.f32.partialorder %v8944_v29, 0.0 }
 0xd87   : > { %v6520_v17 = vpack.c.bf16 %v3460_v41, %v3459_v11  ;;  %6519 = vmatpush3.bf16.msra.mxu1 %v6516_v37  ;;  %v10313_v37 = vld [vmem:[#allocation78_spill] sm:$0xff] }
 0xd88   : > { %6991 = vrcp.f32 %v3362_v16 }
 0xd89   : > { %v8947_v5 = vpop.f32.mrb[52].mxu0  ;;  %6521 = vmatprep.subr.bf16.mxu1 %v6520_v17 }
 0xd8a   : > { %v3363_v54 = vmax.f32 %v8947_v5, 1e-30  ;;  %v3326_v58 = vpop.f32.mrb[53].mxu0  ;;  %vm3355_vm4 = vcmp.gt.f32.partialorder %v8947_v5, 0.0 }
 0xd8b   : > { %6523 = vmatpush3.bf16.msra.mxu1 %v6520_v17  ;;  %v10314_v17 = vld [vmem:[#allocation83_spill] sm:$0xff] }
 0xd8c   : > { %6993 = vrcp.f32 %v3363_v54 }
 0xd8d   : > { %v8950_v60 = vpop.f32.mrb[54].mxu0 }
 0xd8e   : > { %v6990_v48 = vpop.eup %6989  ;;  %v3364_v45 = vmax.f32 %v8950_v60, 1e-30  ;;  %v3331_v38 = vpop.f32.mrb[55].mxu0  ;;  %vm3356_vm7 = vcmp.gt.f32.partialorder %v8950_v60, 0.0 }
 0xd8f   : > { %3385 = vrot.lane.b32.xlu1 %v6990_v48, %s7149_s17 }
 0xd90   : > { %6995 = vrcp.f32 %v3364_v45 }
 0xd91   : > { %v8954_v28 = vpop.f32.mrb[56].mxu0 }
 0xd92   : > { %v6992_v22 = vpop.eup %6991  ;;  %v3365_v47 = vmax.f32 %v8954_v28, 1e-30  ;;  %v3336_v15 = vpop.f32.mrb[57].mxu0 }
 0xd93   : > { %3387 = vrot.lane.b32.xlu0 %v6992_v22, %s7149_s17 }
 0xd94   : > { %6997 = vrcp.f32 %v3365_v47 }
 0xd95   : > { %v8958_v35 = vpop.f32.mrb[58].mxu0 }
 0xd96   : > { %v6994_v31 = vpop.eup %6993  ;;  %v3366_v62 = vmax.f32 %v8958_v35, 1e-30  ;;  %v3341_v51 = vpop.f32.mrb[59].mxu0 }
 0xd97   : > { %3389 = vrot.lane.b32.xlu1 %v6994_v31, %s7149_s17 }
 0xd98   : > { %6999 = vrcp.f32 %v3366_v62 }
 0xd99   : > { %v8962_v6 = vpop.f32.mrb[60].mxu0 }
 0xd9a   : > { %v6996_v55 = vpop.eup %6995  ;;  %v3367_v23 = vmax.f32 %v8962_v6, 1e-30  ;;  %v3346_v44 = vpop.f32.mrb[61].mxu0 }
 0xd9b   : > { %3391 = vrot.lane.b32.xlu0 %v6996_v55, %s7149_s17 }
 0xd9c   : > { %7001 = vrcp.f32 %v3367_v23  ;;  %v5670_v23 = vld [vmem:[%s9963_s4 + $0x48] sm:$0xff] }
 0xd9d   : > { %v8966_v39 = vpop.f32.mrb[62].mxu0 }
 0xd9e   : > { %v6998_v52 = vpop.eup %6997  ;;  %v3368_v24 = vmax.f32 %v8966_v39, 1e-30  ;;  %v3351_v4 = vpop.f32.mrb[63].mxu0 }
 0xd9f   : > { %3393 = vrot.lane.b32.xlu1 %v6998_v52, %s7149_s17 }
 0xda0   : > { %7003 = vrcp.f32 %v3368_v24  ;;  %v3657_v24 = vsub.s32 6, %v7308_v8 }
 0xda2   : > { %v7000_v9 = vpop.eup %6999 }
 0xda3   : > { %3395 = vrot.lane.b32.xlu0 %v7000_v9, %s7149_s17  ;;  %v7134_v9 = vld [vmem:[%s9964_s5] sm:$0xff] }
 0xda6   : > { %v7002_v42 = vpop.eup %7001 }
 0xda7   : > { %3397 = vrot.lane.b32.xlu1 %v7002_v42, %s7149_s17  ;;  %v9024_v42 = vrot.slane %v7134_v9, %v3657_v24  ;;  %v10320_v24 = vld [vmem:[#allocation10_spill] sm:$0xff] }
 0xdaa   : > { %v7004_v13 = vpop.eup %7003 }
 0xdab   : > { %3399 = vrot.lane.b32.xlu0 %v7004_v13, %s7149_s17 }
 0xe01   : > { %v3386_v0 = vpop.permute.xlu1 %3385 }
 0xe02   : > { %v3409_v40 = vmul.f32 %v3386_v0, %v8941_v59 }
 0xe04   : > { %3425 = vrot.lane.b32.xlu1 %v3409_v40, %s7151_s10 }
 0xe05   : > { %v3388_v27 = vpop.permute.xlu0 %3387 }
 0xe06   : > { %v3410_v50 = vmul.f32 %v3388_v27, %v8944_v29 }
 0xe08   : > { %3427 = vrot.lane.b32.xlu0 %v3410_v50, %s7151_s10  ;;  %v10309_v50 = vld [vmem:[#allocation70_spill] sm:$0xff] }
 0xe09   : > { %v3390_v34 = vpop.permute.xlu1 %3389 }
 0xe0a   : > { %v3411_v14 = vmul.f32 %v3390_v34, %v8947_v5  ;;  %v5669_v5 = vld [vmem:[%s9963_s4 + $0x40] sm:$0xff] }
 0xe0b   : > { %v6524_v44 = vpack.c.bf16 %v5670_v23, %v5669_v5  ;;  %v10316_v5 = vld [vmem:[#allocation12_spill] sm:$0xff]  ;;  %v10317_v23 = vld [vmem:[#allocation9_spill] sm:$0xff] }
 0xe0c   : > { %3429 = vrot.lane.b32.xlu1 %v3411_v14, %s7151_s10 }
 0xe0d   : > { %v3392_v21 = vpop.permute.xlu0 %3391  ;;  %6525 = vmatprep.subr.bf16.mxu1 %v6524_v44 }
 0xe0e   : > { %v3412_v33 = vmul.f32 %v3392_v21, %v8950_v60  ;;  %v10310_v21 = vld [vmem:[#allocation75_spill] sm:$0xff] }
 0xe10   : > { %3431 = vrot.lane.b32.xlu0 %v3412_v33, %s7151_s10 }
 0xe11   : > { %v3394_v18 = vpop.permute.xlu1 %3393 }
 0xe12   : > { %v3413_v56 = vmul.f32 %v3394_v18, %v8954_v28  ;;  %v10311_v18 = vld [vmem:[#allocation74_spill] sm:$0xff] }
 0xe14   : > { %3433 = vrot.lane.b32.xlu1 %v3413_v56, %s7151_s10 }
 0xe15   : > { %v3396_v61 = vpop.permute.xlu0 %3395 }
 0xe16   : > { %v3414_v16 = vmul.f32 %v3396_v61, %v8958_v35 }
 0xe18   : > { %3435 = vrot.lane.b32.xlu0 %v3414_v16, %s7151_s10 }
 0xe19   : > { %v3398_v54 = vpop.permute.xlu1 %3397 }
 0xe1a   : > { %v3415_v58 = vmul.f32 %v3398_v54, %v8962_v6 }
 0xe1c   : > { %3437 = vrot.lane.b32.xlu1 %v3415_v58, %s7151_s10 }
 0xe1d   : > { %v3400_v48 = vpop.permute.xlu0 %3399 }
 0xe1e   : > { %v3416_v45 = vmul.f32 %v3400_v48, %v8966_v39  ;;  %v10315_v48 = vld [vmem:[#allocation82_spill] sm:$0xff] }
 0xe20   : > { %3439 = vrot.lane.b32.xlu0 %v3416_v45, %s7151_s10 }
 0xe76   : > { %v3426_v38 = vpop.permute.xlu1 %3425 }
 0xe77   : > { %v3449_v22 = vsel %vm3353_vm15, %v3426_v38, 0.0  ;;  %vm3357_vm15 = vcmp.gt.f32.partialorder %v8954_v28, 0.0  ;;  %v5671_v38 = vld [vmem:[%s9963_s4 + $0x50] sm:$0xff] }
 0xe78   : > { %3469 = vrot.lane.b32.xlu1 %v3449_v22, %s7149_s17  ;;  %v5672_v22 = vld [vmem:[%s9963_s4 + $0x58] sm:$0xff] }
 0xe7a   : > { %v3428_v47 = vpop.permute.xlu0 %3427 }
 0xe7b   : > { %v3450_v15 = vsel %vm3354_vm1, %v3428_v47, 0.0  ;;  %vm3358_vm1 = vcmp.gt.f32.partialorder %v8958_v35, 0.0  ;;  %v6528_v47 = vpack.c.bf16 %v5672_v22, %v5671_v38 }
 0xe7c   : > { %3471 = vrot.lane.b32.xlu0 %v3450_v15, %s7149_s17  ;;  %v3503_v15 = vsub.s32 2, %v7308_v8 }
 0xe7e   : > { %v3430_v31 = vpop.permute.xlu1 %3429 }
 0xe7f   : > { %v3451_v62 = vsel %vm3355_vm4, %v3430_v31, 0.0  ;;  %vm3359_vm4 = vcmp.gt.f32.partialorder %v8962_v6, 0.0  ;;  %v10308_v6 = vld [vmem:[#allocation71_spill] sm:$0xff]  ;;  %v3504_v31 = vrot.slane %v7134_v9, %v3503_v15 }
 0xe80   : > { %3473 = vrot.lane.b32.xlu1 %v3451_v62, %s7149_s17 }
 0xe82   : > { %v3432_v51 = vpop.permute.xlu0 %3431 }
 0xe83   : > { %v3452_v59 = vsel %vm3356_vm7, %v3432_v51, 0.0  ;;  %vm3360_vm7 = vcmp.gt.f32.partialorder %v8966_v39, 0.0 }
 0xe84   : > { %3475 = vrot.lane.b32.xlu0 %v3452_v59, %s7149_s17 }
 0xe86   : > { %v3434_v55 = vpop.permute.xlu1 %3433 }
 0xe87   : > { %v3453_v29 = vsel %vm3357_vm15, %v3434_v55, 0.0 }
 0xe88   : > { %3477 = vrot.lane.b32.xlu1 %v3453_v29, %s7149_s17 }
 0xe8a   : > { %v3436_v60 = vpop.permute.xlu0 %3435 }
 0xe8b   : > { %v3454_v52 = vsel %vm3358_vm1, %v3436_v60, 0.0  ;;  %v9062_v60 = vadd.f32 %v10317_v23, %v10316_v5  ;;  %v10334_v23 = vld [vmem:[#allocation8_spill] sm:$0xff] }
 0xe8c   : > { %3479 = vrot.lane.b32.xlu0 %v3454_v52, %s7149_s17  ;;  %v10319_v52 = vld [vmem:[#allocation11_spill] sm:$0xff] }
 0xe8d   : > { %10318 = vst [vmem:[#allocation14_spill] sm:$0xff] %v9062_v60 }
 0xe8e   : > { %v3438_v28 = vpop.permute.xlu1 %3437 }
 0xe8f   : > { %v3455_v4 = vsel %vm3359_vm4, %v3438_v28, 0.0  ;;  %v9067_v28 = vadd.f32 %v10320_v24, %v10319_v52  ;;  %v10335_v52 = vld [vmem:[#allocation81_spill] sm:$0xff] }
 0xe90   : > { %3481 = vrot.lane.b32.xlu1 %v3455_v4, %s7149_s17  ;;  %v9128_v24 = vadd.f32 %v10335_v52, %v10334_v23 }
 0xe91   : > { %10321 = vst [vmem:[#allocation71_spill] sm:$0xff] %v9067_v28 }
 0xe92   : > { %v3440_v35 = vpop.permute.xlu0 %3439  ;;  %10336 = vst [vmem:[#allocation78_spill] sm:$0xff] %v9128_v24 }
 0xe93   : > { %v3456_v13 = vsel %vm3360_vm7, %v3440_v35, 0.0 }
 0xe94   : > { %3483 = vrot.lane.b32.xlu0 %v3456_v13, %s7149_s17  ;;  %3813 = vrot.lane.b32.xlu1 %v9024_v42, %s7147_s14 }
 0xeea   : > { %v3470_v0 = vpop.permute.xlu1 %3469 }
 0xeeb   : > { %v3493_v40 = vadd.f32 %v3470_v0, %v10308_v6 }
 0xeed   : > { %6228 = vmatprep.mubr.msk.f32.mxu1 %vm806_vm10, %v3493_v40 }
 0xeee   : > { %v3472_v27 = vpop.permute.xlu0 %3471 }
 0xeef   : > { %v3494_v34 = vadd.f32 %v3472_v27, %v10309_v50  ;;  %v10322_v27 = vld [vmem:[#allocation4_spill] sm:$0xff]  ;;  %v10323_v50 = vld [vmem:[#allocation73_spill] sm:$0xff] }
 0xef1   : > { %6229 = vmatmul.mubr.msk.f32.vlgmr.msra.gmra.mrb[72].mxu1 %vm806_vm10, %v3494_v34  ;;  %v9084_v34 = vadd.f32 %v10323_v50, %v10322_v27  ;;  %v10340_v50 = vld [vmem:[#allocation61_spill] sm:$0xff] }
 0xef2   : > { %v3474_v14 = vpop.permute.xlu1 %3473  ;;  %6527 = vmatpush3.bf16.msra.mxu1 %v6524_v44 }
 0xef3   : > { %v3495_v39 = vadd.f32 %v3474_v14, %v10310_v21  ;;  %6529 = vmatprep.subr.bf16.mxu1 %v6528_v47  ;;  %10324 = vst [vmem:[#allocation70_spill] sm:$0xff] %v9084_v34  ;;  %v10325_v21 = vld [vmem:[#allocation3_spill] sm:$0xff] }
 0xef5   : > { %6231 = vmatprep.mubr.msk.f32.mxu1 %vm806_vm10, %v3495_v39  ;;  %v10326_v39 = vld [vmem:[#allocation72_spill] sm:$0xff] }
 0xef6   : > { %v3476_v33 = vpop.permute.xlu0 %3475  ;;  %6531 = vmatpush3.bf16.msra.mxu1 %v6528_v47 }
 0xef7   : > { %v3496_v56 = vadd.f32 %v3476_v33, %v10311_v18  ;;  %6548 = vmatprep.subr.bf16.mxu1 %v10207_v19  ;;  %v9089_v33 = vadd.f32 %v10326_v39, %v10325_v21 }
 0xef9   : > { %6232 = vmatmul.mubr.msk.f32.gmra.mrb[74].mxu1 %vm806_vm10, %v3496_v56  ;;  %10327 = vst [vmem:[#allocation75_spill] sm:$0xff] %v9089_v33 }
 0xefa   : > { %v3478_v46 = vpop.permute.xlu1 %3477 }
 0xefb   : > { %v3497_v11 = vadd.f32 %v3478_v46, %v10312_v10 }
 0xefd   : > { %6234 = vmatprep.mubr.msk.f32.mxu1 %vm806_vm10, %v3497_v11 }
 0xefe   : > { %v3480_v61 = vpop.permute.xlu0 %3479 }
 0xeff   : > { %v3498_v41 = vadd.f32 %v3480_v61, %v10313_v37 }
 0xf01   : > { %6235 = vmatmul.mubr.msk.f32.gmra.mrb[76].mxu1 %vm806_vm10, %v3498_v41  ;;  %v10328_v41 = vld [vmem:[#allocation6_spill] sm:$0xff] }
 0xf02   : > { %v3482_v16 = vpop.permute.xlu1 %3481 }
 0xf03   : > { %v3499_v54 = vadd.f32 %v3482_v16, %v10314_v17  ;;  %v10329_v16 = vld [vmem:[#allocation77_spill] sm:$0xff] }
 0xf04   : > { %v9106_v17 = vadd.f32 %v10329_v16, %v10328_v41 }
 0xf05   : > { %6237 = vmatprep.mubr.msk.f32.mxu1 %vm806_vm10, %v3499_v54 }
 0xf06   : > { %v3484_v58 = vpop.permute.xlu0 %3483  ;;  %10330 = vst [vmem:[#allocation74_spill] sm:$0xff] %v9106_v17 }
 0xf07   : > { %v3500_v45 = vadd.f32 %v3484_v58, %v10315_v48  ;;  %v10331_v58 = vld [vmem:[#allocation5_spill] sm:$0xff]  ;;  %v10332_v48 = vld [vmem:[#allocation76_spill] sm:$0xff] }
 0xf09   : > { %6238 = vmatmul.mubr.msk.f32.gmra.mrb[78].mxu1 %vm806_vm10, %v3500_v45  ;;  %v9111_v45 = vadd.f32 %v10332_v48, %v10331_v58 }
 0xf0b   : > { %10333 = vst [vmem:[#allocation79_spill] sm:$0xff] %v9111_v45 }
 0xfc4   : > { %v6230_v62 = vpop.f32.mrb[72].mxu1 }
 0xfc5   : > { %v9055_v51 = vadd.f32 %v6230_v62, %v3504_v31  ;;  %v3595_v59 = vpop.f32.mrb[73].mxu1 }
 0xfc6   : > { %v9057_v55 = vadd.f32 %v3595_v59, %v3504_v31 }
 0xfc7   : > { %v3635_v29 = vmax.f32 %v9055_v51, 0.0 }
 0xfc8   : > { %v3634_v44 = vmax.f32 %v9057_v55, 0.0 }
 0xfc9   : > { %v3643_v9 = vadd.f32 %v3635_v29, %v9067_v28 }
 0xfca   : > { %v3642_v4 = vadd.f32 %v3634_v44, %v9062_v60 }
 0xfcc   : > { %v6233_v35 = vpop.f32.mrb[74].mxu1  ;;  %6248 = vmatprep.mubr.msk.f32.mxu1 %vm806_vm10, %v3642_v4 }
 0xfcd   : > { %v9076_v13 = vadd.f32 %v6233_v35, %v3504_v31  ;;  %v3605_v0 = vpop.f32.mrb[75].mxu1  ;;  %6249 = vmatmul.mubr.msk.f32.vlgmr.msra.gmra.mrb[80].mxu1 %vm806_vm10, %v3643_v9  ;;  %v10337_v9 = vld [vmem:[#allocation7_spill] sm:$0xff]  ;;  %v10338_v35 = vld [vmem:[#allocation80_spill] sm:$0xff] }
 0xfce   : > { %v9079_v6 = vadd.f32 %v3605_v0, %v3504_v31  ;;  %v9133_v0 = vadd.f32 %v10338_v35, %v10337_v9 }
 0xfcf   : > { %v3637_v40 = vmax.f32 %v9076_v13, 0.0 }
 0xfd0   : > { %v3636_v14 = vmax.f32 %v9079_v6, 0.0  ;;  %10339 = vst [vmem:[#allocation83_spill] sm:$0xff] %v9133_v0 }
 0xfd1   : > { %v3645_v56 = vadd.f32 %v3637_v40, %v9089_v33 }
 0xfd2   : > { %v3644_v18 = vadd.f32 %v3636_v14, %v9084_v34 }
 0xfd4   : > { %v6236_v46 = vpop.f32.mrb[76].mxu1  ;;  %6251 = vmatprep.mubr.msk.f32.mxu1 %vm806_vm10, %v3644_v18 }
 0xfd5   : > { %v9098_v10 = vadd.f32 %v6236_v46, %v3504_v31  ;;  %v3615_v11 = vpop.f32.mrb[77].mxu1  ;;  %6252 = vmatmul.mubr.msk.f32.gmra.mrb[82].mxu1 %vm806_vm10, %v3645_v56 }
 0xfd6   : > { %v9101_v61 = vadd.f32 %v3615_v11, %v3504_v31  ;;  %v3814_v11 = vpop.permute.xlu1 %3813 }
 0xfd7   : > { %v3639_v37 = vmax.f32 %v9098_v10, 0.0 }
 0xfd8   : > { %v3638_v54 = vmax.f32 %v9101_v61, 0.0 }
 0xfd9   : > { %v3647_v22 = vadd.f32 %v3639_v37, %v9111_v45 }
 0xfda   : > { %v3646_v38 = vadd.f32 %v3638_v54, %v9106_v17 }
 0xfdc   : > { %v6239_v47 = vpop.f32.mrb[78].mxu1  ;;  %6254 = vmatprep.mubr.msk.f32.mxu1 %vm806_vm10, %v3646_v38 }
 0xfdd   : > { %v9120_v15 = vadd.f32 %v6239_v47, %v3504_v31  ;;  %v3625_v62 = vpop.f32.mrb[79].mxu1  ;;  %6255 = vmatmul.mubr.msk.f32.gmra.mrb[84].mxu1 %vm806_vm10, %v3647_v22 }
 0xfde   : > { %v9123_v59 = vadd.f32 %v3625_v62, %v3504_v31 }
 0xfdf   : > { %v3641_v5 = vmax.f32 %v9120_v15, 0.0  ;;  %v10359_v15 = vld [vmem:[#allocation16_spill] sm:$0xff] }
 0xfe0   : > { %v3640_v4 = vmax.f32 %v9123_v59, 0.0 }
 0xfe1   : > { %v3649_v31 = vadd.f32 %v3641_v5, %v9133_v0 }
 0xfe2   : > { %v3648_v27 = vadd.f32 %v3640_v4, %v9128_v24 }
 0xfe4   : > { %6257 = vmatprep.mubr.msk.f32.mxu1 %vm806_vm10, %v3648_v27 }
 0xfe5   : > { %6258 = vmatmul.mubr.msk.f32.gmra.mrb[86].mxu1 %vm806_vm10, %v3649_v31 }
 0xfe6   : > { %5705 = vmatprep.mubr.msk.f32.mxu1 %vm646_vm2, %v10340_v50 }
0x10a0   : > { %v6250_v21 = vpop.f32.mrb[80].mxu1 }
0x10a1   : > { %v3755_v39 = vadd.f32 %v6250_v21, %v9024_v42  ;;  %v3749_v18 = vpop.f32.mrb[81].mxu1 }
0x10a2   : > { %v3750_v56 = vadd.f32 %v3749_v18, %v9024_v42 }
0x10a3   : > { %vm3789_vm15 = vcmp.ge.f32.partialorder %v3755_v39, 0.0  ;;  %v3797_v46 = vmul.f32 0.2, %v3755_v39 }
0x10a4   : > { %vm3788_vm1 = vcmp.ge.f32.partialorder %v3750_v56, 0.0  ;;  %v3796_v41 = vmul.f32 0.2, %v3750_v56 }
0x10a5   : > { %v3805_v16 = vsel %vm3789_vm15, %v3755_v39, %v3797_v46 }
0x10a6   : > { %v3817_v58 = vmul.f32 %v3814_v11, %v3805_v16  ;;  %v3804_v48 = vsel %vm3788_vm1, %v3750_v56, %v3796_v41 }
0x10a7   : > { %v3816_v38 = vmul.f32 %v3814_v11, %v3804_v48 }
0x10a8   : > { %v6253_v22 = vpop.f32.mrb[82].mxu1  ;;  %v3827_v47 = vsel %vm972_vm13, %v3817_v58, 0.0 }
0x10a9   : > { %v3765_v62 = vadd.f32 %v6253_v22, %v9024_v42  ;;  %3828 = vadd.xlane.f32.xlu1 %v3827_v47  ;;  %v3759_v23 = vpop.f32.mrb[83].mxu1  ;;  %v3824_v52 = vsel %vm972_vm13, %v3816_v38, 0.0 }
0x10aa   : > { %v3760_v9 = vadd.f32 %v3759_v23, %v9024_v42  ;;  %3825 = vadd.xlane.f32.xlu0 %v3824_v52 }
0x10ab   : > { %vm3791_vm4 = vcmp.ge.f32.partialorder %v3765_v62, 0.0  ;;  %v3799_v35 = vmul.f32 0.2, %v3765_v62 }
0x10ac   : > { %vm3790_vm7 = vcmp.ge.f32.partialorder %v3760_v9, 0.0  ;;  %v3798_v27 = vmul.f32 0.2, %v3760_v9 }
0x10ad   : > { %v3807_v31 = vsel %vm3791_vm4, %v3765_v62, %v3799_v35 }
0x10ae   : > { %v3819_v50 = vmul.f32 %v3814_v11, %v3807_v31  ;;  %v3806_v21 = vsel %vm3790_vm7, %v3760_v9, %v3798_v27 }
0x10af   : > { %v3818_v56 = vmul.f32 %v3814_v11, %v3806_v21 }
0x10b0   : > { %v6256_v39 = vpop.f32.mrb[84].mxu1  ;;  %v3833_v18 = vsel %vm972_vm13, %v3819_v50, 0.0 }
0x10b1   : > { %v3775_v46 = vadd.f32 %v6256_v39, %v9024_v42  ;;  %v3769_v41 = vpop.f32.mrb[85].mxu1  ;;  %3834 = vadd.xlane.f32.xlu0 %v3833_v18  ;;  %v3830_v38 = vsel %vm972_vm13, %v3818_v56, 0.0 }
0x10b2   : > { %v3770_v16 = vadd.f32 %v3769_v41, %v9024_v42 }
0x10b3   : > { %vm3793_vm15 = vcmp.ge.f32.partialorder %v3775_v46, 0.0  ;;  %v3801_v58 = vmul.f32 0.2, %v3775_v46 }
0x10b4   : > { %vm3792_vm1 = vcmp.ge.f32.partialorder %v3770_v16, 0.0  ;;  %v3800_v48 = vmul.f32 0.2, %v3770_v16 }
0x10b5   : > { %3831 = vadd.xlane.f32.xlu0 %v3830_v38  ;;  %v3809_v22 = vsel %vm3793_vm15, %v3775_v46, %v3801_v58 }
0x10b6   : > { %v3821_v47 = vmul.f32 %v3814_v11, %v3809_v22  ;;  %v3808_v62 = vsel %vm3792_vm1, %v3770_v16, %v3800_v48 }
0x10b7   : > { %v3820_v23 = vmul.f32 %v3814_v11, %v3808_v62 }
0x10b8   : > { %v6259_v52 = vpop.f32.mrb[86].mxu1  ;;  %v3839_v9 = vsel %vm972_vm13, %v3821_v47, 0.0 }
0x10b9   : > { %v3785_v35 = vadd.f32 %v6259_v52, %v9024_v42  ;;  %3840 = vadd.xlane.f32.xlu0 %v3839_v9  ;;  %v3779_v27 = vpop.f32.mrb[87].mxu1  ;;  %v3836_v31 = vsel %vm972_vm13, %v3820_v23, 0.0 }
0x10ba   : > { %v3780_v50 = vadd.f32 %v3779_v27, %v9024_v42  ;;  %3837 = vadd.xlane.f32.xlu1 %v3836_v31 }
0x10bb   : > { %vm3795_vm4 = vcmp.ge.f32.partialorder %v3785_v35, 0.0  ;;  %v3803_v21 = vmul.f32 0.2, %v3785_v35 }
0x10bc   : > { %vm3794_vm7 = vcmp.ge.f32.partialorder %v3780_v50, 0.0  ;;  %v3802_v39 = vmul.f32 0.2, %v3780_v50 }
0x10bd   : > { %v3811_v18 = vsel %vm3795_vm4, %v3785_v35, %v3803_v21 }
0x10be   : > { %v3823_v56 = vmul.f32 %v3814_v11, %v3811_v18  ;;  %v3810_v46 = vsel %vm3794_vm7, %v3780_v50, %v3802_v39 }
0x10bf   : > { %v3822_v41 = vmul.f32 %v3814_v11, %v3810_v46 }
0x10c0   : > { %v3845_v16 = vsel %vm972_vm13, %v3823_v56, 0.0 }
0x10c1   : > { %3846 = vadd.xlane.f32.xlu0 %v3845_v16  ;;  %v3842_v58 = vsel %vm972_vm13, %v3822_v41, 0.0 }
0x10c2   : > { %3843 = vadd.xlane.f32.xlu1 %v3842_v58 }
0x1136   : > { %v3829_v48 = vpop.xlane.xlu1 %3828 }
0x1137   : > { %v3849_v38 = vadd.f32 %v3829_v48, %v9024_v42  ;;  %v3826_v22 = vpop.xlane.xlu0 %3825 }
0x1138   : > { %v3848_v47 = vadd.f32 %v3826_v22, %v9024_v42 }
0x1139   : > { %v3857_v62 = vsub.f32 0.0, %v3849_v38 }
0x113a   : > { %v3856_v23 = vsub.f32 0.0, %v3848_v47 }
0x113b   : > { %v3866_v52 = vmul.f32 1.442695, %v3857_v62 }
0x113c   : > { %v3864_v9 = vmul.f32 1.442695, %v3856_v23 }
0x113d   : > { %7005 = vpow2.f32 %v3866_v52 }
0x113e   : > { %7007 = vpow2.f32 %v3864_v9  ;;  %v3835_v35 = vpop.xlane.xlu0 %3834 }
0x113f   : > { %v3851_v11 = vadd.f32 %v3835_v35, %v9024_v42 }
0x1141   : > { %v3859_v27 = vsub.f32 0.0, %v3851_v11 }
0x1142   : > { %v3832_v31 = vpop.xlane.xlu0 %3831 }
0x1143   : > { %v3870_v50 = vmul.f32 1.442695, %v3859_v27  ;;  %v3850_v21 = vadd.f32 %v3832_v31, %v9024_v42 }
0x1145   : > { %7009 = vpow2.f32 %v3870_v50  ;;  %v3858_v39 = vsub.f32 0.0, %v3850_v21 }
0x1146   : > { %v3841_v18 = vpop.xlane.xlu0 %3840 }
0x1147   : > { %v7006_v56 = vpop.eup %7005  ;;  %v3868_v46 = vmul.f32 1.442695, %v3858_v39  ;;  %v3853_v41 = vadd.f32 %v3841_v18, %v9024_v42  ;;  %v3838_v16 = vpop.xlane.xlu1 %3837 }
0x1148   : > { %v7008_v58 = vpop.eup %7007  ;;  %v3881_v48 = vadd.f32 1.0, %v7006_v56  ;;  %v3852_v38 = vadd.f32 %v3838_v16, %v9024_v42 }
0x1149   : > { %v3880_v22 = vadd.f32 1.0, %v7008_v58  ;;  %7011 = vpow2.f32 %v3868_v46  ;;  %v3861_v47 = vsub.f32 0.0, %v3853_v41 }
0x114a   : > { %7013 = vrcp.f32 %v3881_v48  ;;  %v3860_v62 = vsub.f32 0.0, %v3852_v38 }
0x114b   : > { %7015 = vrcp.f32 %v3880_v22  ;;  %v3874_v23 = vmul.f32 1.442695, %v3861_v47 }
0x114c   : > { %v3872_v52 = vmul.f32 1.442695, %v3860_v62 }
0x114d   : > { %7017 = vpow2.f32 %v3874_v23 }
0x114e   : > { %7019 = vpow2.f32 %v3872_v52  ;;  %v3847_v9 = vpop.xlane.xlu0 %3846 }
0x114f   : > { %v7010_v35 = vpop.eup %7009  ;;  %v3855_v11 = vadd.f32 %v3847_v9, %v9024_v42  ;;  %v3844_v27 = vpop.xlane.xlu1 %3843 }
0x1150   : > { %v3883_v31 = vadd.f32 1.0, %v7010_v35  ;;  %v3854_v50 = vadd.f32 %v3844_v27, %v9024_v42 }
0x1151   : > { %v3863_v21 = vsub.f32 0.0, %v3855_v11 }
0x1152   : > { %v3862_v39 = vsub.f32 0.0, %v3854_v50  ;;  %7021 = vrcp.f32 %v3883_v31 }
0x1153   : > { %v7012_v18 = vpop.eup %7011  ;;  %v3878_v56 = vmul.f32 1.442695, %v3863_v21 }
0x1154   : > { %v7014_v46 = vpop.eup %7013  ;;  %v3882_v41 = vadd.f32 1.0, %v7012_v18  ;;  %v3876_v16 = vmul.f32 1.442695, %v3862_v39 }
0x1155   : > { %v7016_v58 = vpop.eup %7015  ;;  %7023 = vpow2.f32 %v3878_v56  ;;  %3911 = vperm.xlu0 %6691, %v7014_v46   ;;  %v3953_v22 = vsub.f32 1.0, %v7014_v46 }
0x1156   : > { %7025 = vrcp.f32 %v3882_v41  ;;  %3906 = vperm.xlu1 %6692, %v7016_v58   ;;  %v3952_v62 = vsub.f32 1.0, %v7016_v58 }
0x1157   : > { %v7018_v48 = vpop.eup %7017  ;;  %7027 = vpow2.f32 %v3876_v16 }
0x1158   : > { %v7020_v38 = vpop.eup %7019  ;;  %v3885_v42 = vadd.f32 1.0, %v7018_v48 }
0x1159   : > { %v3884_v47 = vadd.f32 1.0, %v7020_v38 }
0x115a   : > { %3967 = vperm.xlu1 %6692, %v3953_v22  }
0x115b   : > { %7029 = vrcp.f32 %v3884_v47 }
0x115c   : > { %v7022_v23 = vpop.eup %7021  ;;  %7031 = vrcp.f32 %v3885_v42 }
0x115d   : > { %v3955_v50 = vsub.f32 1.0, %v7022_v23 }
0x115e   : > { %3962 = vperm.xlu1 %6692, %v3952_v62  }
0x115f   : > { %v7024_v52 = vpop.eup %7023 }
0x1160   : > { %v7026_v9 = vpop.eup %7025  ;;  %v3887_v27 = vadd.f32 1.0, %v7024_v52 }
0x1161   : > { %v7028_v35 = vpop.eup %7027  ;;  %3916 = vperm.xlu0 %6691, %v7026_v9   ;;  %v3954_v31 = vsub.f32 1.0, %v7026_v9 }
0x1162   : > { %v3886_v11 = vadd.f32 1.0, %v7028_v35  ;;  %3921 = vperm.xlu1 %6692, %v7022_v23  }
0x1164   : > { %7033 = vrcp.f32 %v3886_v11 }
0x1165   : > { %3972 = vperm.xlu0 %6691, %v3954_v31   ;;  %7035 = vrcp.f32 %v3887_v27  ;;  %v7030_v21 = vpop.eup %7029 }
0x1166   : > { %3977 = vperm.xlu1 %6692, %v3955_v50   ;;  %v7032_v39 = vpop.eup %7031  ;;  %v3956_v18 = vsub.f32 1.0, %v7030_v21 }
0x1167   : > { %v3957_v56 = vsub.f32 1.0, %v7032_v39 }
0x1169   : > { %3926 = vperm.xlu0 %6691, %v7030_v21  }
0x116a   : > { %3931 = vperm.xlu1 %6692, %v7032_v39  }
0x116d   : > { %3982 = vperm.xlu0 %6691, %v3956_v18  }
0x116e   : > { %3987 = vperm.xlu1 %6692, %v3957_v56   ;;  %v7034_v46 = vpop.eup %7033 }
0x116f   : > { %v7036_v41 = vpop.eup %7035  ;;  %v3958_v16 = vsub.f32 1.0, %v7034_v46 }
0x1170   : > { %v3959_v58 = vsub.f32 1.0, %v7036_v41 }
0x1171   : > { %3936 = vperm.xlu0 %6691, %v7034_v46  }
0x1172   : > { %3941 = vperm.xlu1 %6692, %v7036_v41  }
0x1175   : > { %3992 = vperm.xlu0 %6691, %v3958_v16  }
0x1176   : > { %3997 = vperm.xlu1 %6692, %v3959_v58  }
0x11d4   : > { %v3912_v22 = vpop.permute.xlu0 %3911 }
0x11d5   : > { %v3907_v48 = vpop.permute.xlu1 %3906  ;;  %v9172_v62 = vmul.f32 %v3912_v22, %v3635_v29 }
0x11d6   : > { %v9176_v23 = vmul.f32 %v3907_v48, %v3634_v44 }
0x11d7   : > { %10341 = vst [vmem:[#allocation82_spill] sm:$0xff] %v9172_v62 }
0x11d8   : > { %10342 = vst [vmem:[#allocation12_spill] sm:$0xff] %v9176_v23 }
0x11d9   : > { %v3968_v38 = vpop.permute.xlu1 %3967 }
0x11da   : > { %v4001_v47 = vmul.f32 %v3968_v38, %v9067_v28 }
0x11dc   : > { %v9180_v9 = vadd.f32 %v4001_v47, %v9172_v62 }
0x11dd   : > { %v3963_v42 = vpop.permute.xlu1 %3962 }
0x11de   : > { %v4000_v52 = vmul.f32 %v3963_v42, %v9062_v60  ;;  %10343 = vst [vmem:[#allocation9_spill] sm:$0xff] %v9180_v9 }
0x11e0   : > { %v9183_v35 = vadd.f32 %v4000_v52, %v9176_v23  ;;  %v3917_v11 = vpop.permute.xlu0 %3916  ;;  %v10397_v23 = vld [vmem:[#allocation54_spill] sm:$0xff] }
0x11e1   : > { %v3922_v27 = vpop.permute.xlu1 %3921  ;;  %v9189_v55 = vmul.f32 %v3917_v11, %v3636_v14 }
0x11e2   : > { %10344 = vst [vmem:[#allocation11_spill] sm:$0xff] %v9183_v35  ;;  %v6532_v31 = vpack.c.bf16 %v9180_v9, %v9183_v35  ;;  %v9194_v50 = vmul.f32 %v3922_v27, %v3637_v40 }
0x11e3   : > { %10345 = vst [vmem:[#allocation10_spill] sm:$0xff] %v9189_v55 }
0x11e4   : > { %v3973_v51 = vpop.permute.xlu0 %3972  ;;  %6533 = vmatprep.subr.bf16.mxu0 %v6532_v31  ;;  %10346 = vst [vmem:[#allocation4_spill] sm:$0xff] %v9194_v50 }
0x11e5   : > { %v4002_v29 = vmul.f32 %v3973_v51, %v9084_v34  ;;  %6535 = vmatpush3.bf16.msra.mxu0 %v6532_v31  ;;  %v3978_v44 = vpop.permute.xlu1 %3977  ;;  %v10358_v51 = vld [vmem:[#allocation15_spill] sm:$0xff] }
0x11e6   : > { %v4003_v21 = vmul.f32 %v3978_v44, %v9089_v33  ;;  %v10362_v44 = vld [vmem:[#allocation19_spill] sm:$0xff] }
0x11e7   : > { %v9198_v39 = vadd.f32 %v4002_v29, %v9189_v55  ;;  %v10361_v29 = vld [vmem:[#allocation18_spill] sm:$0xff]  ;;  %v10396_v55 = vld [vmem:[#allocation53_spill] sm:$0xff] }
0x11e8   : > { %v9201_v18 = vadd.f32 %v4003_v21, %v9194_v50  ;;  %v3927_v56 = vpop.permute.xlu0 %3926  ;;  %v10363_v21 = vld [vmem:[#allocation20_spill] sm:$0xff] }
0x11e9   : > { %10347 = vst [vmem:[#allocation73_spill] sm:$0xff] %v9198_v39  ;;  %v3932_v6 = vpop.permute.xlu1 %3931  ;;  %v9207_v13 = vmul.f32 %v3927_v56, %v3638_v54  ;;  %v10364_v56 = vld [vmem:[#allocation21_spill] sm:$0xff] }
0x11ea   : > { %10348 = vst [vmem:[#allocation3_spill] sm:$0xff] %v9201_v18  ;;  %v6536_v14 = vpack.c.bf16 %v9201_v18, %v9198_v39  ;;  %v9212_v16 = vmul.f32 %v3932_v6, %v3639_v37  ;;  %v10365_v6 = vld [vmem:[#allocation22_spill] sm:$0xff] }
0x11eb   : > { %10349 = vst [vmem:[#allocation72_spill] sm:$0xff] %v9207_v13 }
0x11ec   : > { %v3983_v46 = vpop.permute.xlu0 %3982  ;;  %6537 = vmatprep.subr.bf16.mxu0 %v6536_v14  ;;  %10350 = vst [vmem:[#allocation6_spill] sm:$0xff] %v9212_v16 }
0x11ed   : > { %v4004_v40 = vmul.f32 %v3983_v46, %v9106_v17  ;;  %6539 = vmatpush3.bf16.msra.mxu0 %v6536_v14  ;;  %v3988_v41 = vpop.permute.xlu1 %3987  ;;  %v10366_v14 = vld [vmem:[#allocation23_spill] sm:$0xff]  ;;  %v10367_v46 = vld [vmem:[#allocation24_spill] sm:$0xff] }
0x11ee   : > { %v4005_v58 = vmul.f32 %v3988_v41, %v9111_v45  ;;  %v10369_v41 = vld [vmem:[#allocation26_spill] sm:$0xff] }
0x11ef   : > { %v9216_v48 = vadd.f32 %v4004_v40, %v9207_v13  ;;  %v10368_v40 = vld [vmem:[#allocation25_spill] sm:$0xff] }
0x11f0   : > { %v9219_v38 = vadd.f32 %v4005_v58, %v9212_v16  ;;  %v3937_v22 = vpop.permute.xlu0 %3936  ;;  %v10370_v58 = vld [vmem:[#allocation27_spill] sm:$0xff] }
0x11f1   : > { %10351 = vst [vmem:[#allocation77_spill] sm:$0xff] %v9216_v48  ;;  %v3942_v61 = vpop.permute.xlu1 %3941  ;;  %v9225_v10 = vmul.f32 %v3937_v22, %v3640_v4  ;;  %v10357_v4 = vld [vmem:[#allocation13_spill] sm:$0xff]  ;;  %v10371_v22 = vld [vmem:[#allocation28_spill] sm:$0xff] }
0x11f2   : > { %10352 = vst [vmem:[#allocation5_spill] sm:$0xff] %v9219_v38  ;;  %v6540_v54 = vpack.c.bf16 %v9219_v38, %v9216_v48  ;;  %v9230_v52 = vmul.f32 %v3942_v61, %v3641_v5  ;;  %v10360_v5 = vld [vmem:[#allocation17_spill] sm:$0xff] }
0x11f3   : > { %10353 = vst [vmem:[#allocation76_spill] sm:$0xff] %v9225_v10  ;;  %v10372_v61 = vld [vmem:[#allocation29_spill] sm:$0xff] }
0x11f4   : > { %v3993_v47 = vpop.permute.xlu0 %3992  ;;  %6541 = vmatprep.subr.bf16.mxu0 %v6540_v54  ;;  %10354 = vst [vmem:[#allocation8_spill] sm:$0xff] %v9230_v52 }
0x11f5   : > { %v4006_v37 = vmul.f32 %v3993_v47, %v9128_v24  ;;  %6543 = vmatpush3.bf16.msra.mxu0 %v6540_v54  ;;  %v3998_v42 = vpop.permute.xlu1 %3997  ;;  %v10373_v54 = vld [vmem:[#allocation30_spill] sm:$0xff]  ;;  %v10374_v47 = vld [vmem:[#allocation31_spill] sm:$0xff] }
0x11f6   : > { %v4007_v11 = vmul.f32 %v3998_v42, %v9133_v0  ;;  %v10376_v42 = vld [vmem:[#allocation33_spill] sm:$0xff] }
0x11f7   : > { %v9234_v27 = vadd.f32 %v4006_v37, %v9225_v10  ;;  %v10375_v37 = vld [vmem:[#allocation32_spill] sm:$0xff] }
0x11f8   : > { %v9237_v31 = vadd.f32 %v4007_v11, %v9230_v52  ;;  %v10377_v11 = vld [vmem:[#allocation34_spill] sm:$0xff]  ;;  %v10386_v52 = vld [vmem:[#allocation43_spill] sm:$0xff] }
0x11f9   : > { %10355 = vst [vmem:[#allocation81_spill] sm:$0xff] %v9234_v27 }
0x11fa   : > { %10356 = vst [vmem:[#allocation7_spill] sm:$0xff] %v9237_v31  ;;  %v6544_v59 = vpack.c.bf16 %v9237_v31, %v9234_v27 }
0x11fc   : > { %6545 = vmatprep.subr.bf16.mxu0 %v6544_v59 }
0x11fd   : > { %6547 = vmatpush3.bf16.msra.mxu0 %v6544_v59  ;;  %v10378_v59 = vld [vmem:[#allocation35_spill] sm:$0xff] }
0x1200   : > { %6277 = vmatmul.mubr.msk.f32.vlgmr.msra.gmra.mrb[64].mxu0 %vm646_vm2, %v10357_v4  ;;  %v10379_v4 = vld [vmem:[#allocation36_spill] sm:$0xff] }
0x1201   : > { %6279 = vmatprep.mubr.msk.f32.mxu0 %vm646_vm2, %v10358_v51 }
0x1204   : > { %6280 = vmatmul.mubr.msk.f32.gmra.mrb[66].mxu0 %vm646_vm2, %v10359_v15 }
0x1205   : > { %6282 = vmatprep.mubr.msk.f32.mxu0 %vm646_vm2, %v10360_v5 }
0x1208   : > { %6283 = vmatmul.mubr.msk.f32.gmra.mrb[68].mxu0 %vm646_vm2, %v10361_v29 }
0x1209   : > { %6285 = vmatprep.mubr.msk.f32.mxu0 %vm646_vm2, %v10362_v44 }
0x120c   : > { %6286 = vmatmul.mubr.msk.f32.gmra.mrb[70].mxu0 %vm646_vm2, %v10363_v21 }
0x120d   : > { %6288 = vmatprep.mubr.msk.f32.mxu0 %vm646_vm2, %v10364_v56 }
0x1210   : > { %6289 = vmatmul.mubr.msk.f32.gmra.mrb[72].mxu0 %vm646_vm2, %v10365_v6 }
0x1211   : > { %6291 = vmatprep.mubr.msk.f32.mxu0 %vm646_vm2, %v10366_v14 }
0x1214   : > { %6292 = vmatmul.mubr.msk.f32.gmra.mrb[74].mxu0 %vm646_vm2, %v10367_v46  ;;  %v10380_v46 = vld [vmem:[#allocation37_spill] sm:$0xff] }
0x1215   : > { %6294 = vmatprep.mubr.msk.f32.mxu0 %vm646_vm2, %v10368_v40 }
0x1218   : > { %6295 = vmatmul.mubr.msk.f32.gmra.mrb[76].mxu0 %vm646_vm2, %v10369_v41  ;;  %v10381_v41 = vld [vmem:[#allocation38_spill] sm:$0xff] }
0x1219   : > { %6297 = vmatprep.mubr.msk.f32.mxu0 %vm646_vm2, %v10370_v58 }
0x121c   : > { %6298 = vmatmul.mubr.msk.f32.gmra.mrb[78].mxu0 %vm646_vm2, %v10371_v22 }
0x121d   : > { %6300 = vmatprep.mubr.msk.f32.mxu0 %vm646_vm2, %v10372_v61  ;;  %v10382_v61 = vld [vmem:[#allocation39_spill] sm:$0xff] }
0x1220   : > { %6301 = vmatmul.mubr.msk.f32.gmra.mrb[80].mxu0 %vm646_vm2, %v10373_v54 }
0x1221   : > { %6303 = vmatprep.mubr.msk.f32.mxu0 %vm646_vm2, %v10374_v47  ;;  %v10383_v47 = vld [vmem:[#allocation40_spill] sm:$0xff] }
0x1224   : > { %6304 = vmatmul.mubr.msk.f32.gmra.mrb[82].mxu0 %vm646_vm2, %v10375_v37 }
0x1225   : > { %6306 = vmatprep.mubr.msk.f32.mxu0 %vm646_vm2, %v10376_v42  ;;  %v10384_v42 = vld [vmem:[#allocation41_spill] sm:$0xff] }
0x1228   : > { %6307 = vmatmul.mubr.msk.f32.gmra.mrb[84].mxu0 %vm646_vm2, %v10377_v11 }
0x1229   : > { %6309 = vmatprep.mubr.msk.f32.mxu0 %vm646_vm2, %v10378_v59  ;;  %v10385_v59 = vld [vmem:[#allocation42_spill] sm:$0xff] }
0x122c   : > { %6310 = vmatmul.mubr.msk.f32.gmra.mrb[86].mxu0 %vm646_vm2, %v10379_v4 }
0x12d3   : > { %v6278_v51 = vpop.f32.mrb[64].mxu0 }
0x12d4   : > { %v4090_v15 = vpop.f32.mrb[65].mxu0  ;;  %v4096_v40 = vadd.f32 %v6278_v51, %v10380_v46  ;;  %v10387_v46 = vld [vmem:[#allocation44_spill] sm:$0xff] }
0x12d5   : > { %v4091_v58 = vadd.f32 %v4090_v15, %v10381_v41 }
0x12d6   : > { %v4210_v24 = vmax.f32 %v4096_v40, 0.0 }
0x12d7   : > { %v6281_v5 = vpop.f32.mrb[66].mxu0  ;;  %v4209_v16 = vmax.f32 %v4091_v58, 0.0  ;;  %v10390_v58 = vld [vmem:[#allocation48_spill] sm:$0xff] }
0x12d8   : > { %v4100_v29 = vpop.f32.mrb[67].mxu0  ;;  %v4106_v54 = vadd.f32 %v6281_v5, %v10382_v61  ;;  %v10388_v5 = vld [vmem:[#allocation45_spill] sm:$0xff] }
0x12d9   : > { %v4101_v37 = vadd.f32 %v4100_v29, %v10383_v47  ;;  %v9296_v47 = vadd.f32 1e-07, %v4210_v24 }
0x12da   : > { %v4212_v13 = vmax.f32 %v4106_v54, 0.0 }
0x12db   : > { %v6284_v44 = vpop.f32.mrb[68].mxu0  ;;  %v4211_v17 = vmax.f32 %v4101_v37, 0.0 }
0x12dc   : > { %v4110_v21 = vpop.f32.mrb[69].mxu0  ;;  %v4116_v11 = vadd.f32 %v6284_v44, %v10384_v42  ;;  %v9298_v44 = vadd.f32 1e-07, %v4209_v16  ;;  %v9301_v40 = vadd.f32 1e-07, %v4212_v13 }
0x12dd   : > { %v4111_v4 = vadd.f32 %v4110_v21, %v10385_v59  ;;  %v10389_v21 = vld [vmem:[#allocation46_spill] sm:$0xff]  ;;  %v9304_v37 = vadd.f32 1e-07, %v4211_v17 }
0x12de   : > { %v4214_v51 = vmax.f32 %v4116_v11, 0.0  ;;  %v4257_v13 = vsel %vm806_vm10, %v9298_v44, -inf  ;;  %v10392_v17 = vld [vmem:[#allocation50_spill] sm:$0xff] }
0x12df   : > { %v6287_v56 = vpop.f32.mrb[70].mxu0  ;;  %v4213_v41 = vmax.f32 %v4111_v4, 0.0 }
0x12e0   : > { %v4120_v6 = vpop.f32.mrb[71].mxu0  ;;  %v4126_v0 = vadd.f32 %v6287_v56, %v10386_v52  ;;  %v9306_v42 = vadd.f32 1e-07, %v4214_v51 }
0x12e1   : > { %v4121_v15 = vadd.f32 %v4120_v6, %v10387_v46  ;;  %v9320_v46 = vsel %vm806_vm10, %v9301_v40, -inf }
0x12e2   : > { %v4216_v50 = vmax.f32 %v4126_v0, 0.0  ;;  %v10391_v0 = vld [vmem:[#allocation49_spill] sm:$0xff] }
0x12e3   : > { %v6290_v14 = vpop.f32.mrb[72].mxu0  ;;  %v4215_v6 = vmax.f32 %v4121_v15, 0.0  ;;  %v10393_v15 = vld [vmem:[#allocation47_spill] sm:$0xff] }
0x12e4   : > { %v4130_v22 = vpop.f32.mrb[73].mxu0  ;;  %v4136_v61 = vadd.f32 %v6290_v14, %v10388_v5  ;;  %v9309_v14 = vadd.f32 1e-07, %v4213_v41  ;;  %v9311_v24 = vadd.f32 1e-07, %v4216_v50  ;;  %v10394_v5 = vld [vmem:[#allocation52_spill] sm:$0xff] }
0x12e5   : > { %v4131_v52 = vadd.f32 %v4130_v22, %v10389_v21  ;;  %v4258_v22 = vsel %vm806_vm10, %v9296_v47, -inf  ;;  %v4263_v21 = vsel %vm806_vm10, %v9306_v42, -inf }
0x12e6   : > { %v4218_v16 = vmax.f32 %v4136_v61, 0.0 }
0x12e7   : > { %v6293_v10 = vpop.f32.mrb[74].mxu0 }
0x12e8   : > { %v4140_v45 = vpop.f32.mrb[75].mxu0  ;;  %v4146_v41 = vadd.f32 %v6293_v10, %v10393_v15  ;;  %v9336_v10 = vadd.f32 1e-07, %v4218_v16 }
0x12e9   : > { %v4141_v54 = vadd.f32 %v4140_v45, %v10390_v58  ;;  %v4217_v45 = vmax.f32 %v4131_v52, 0.0  ;;  %v9328_v58 = vadd.f32 1e-07, %v4215_v6 }
0x12ea   : > { %v4220_v62 = vmax.f32 %v4146_v41, 0.0 }
0x12eb   : > { %v6296_v29 = vpop.f32.mrb[76].mxu0  ;;  %v4219_v50 = vmax.f32 %v4141_v54, 0.0  ;;  %v4265_v16 = vsel %vm806_vm10, %v9328_v58, -inf }
0x12ec   : > { %v4150_v56 = vpop.f32.mrb[77].mxu0  ;;  %v4156_v11 = vadd.f32 %v6296_v29, %v10391_v0  ;;  %v4259_v29 = vsel %vm806_vm10, %v9304_v37, -inf  ;;  %v9334_v0 = vsel %vm806_vm10, %v9311_v24, -inf }
0x12ed   : > { %v4151_v4 = vadd.f32 %v4150_v56, %v10392_v17  ;;  %v4261_v56 = vsel %vm806_vm10, %v9309_v14, -inf  ;;  %v9342_v28 = vadd.f32 1e-07, %v4219_v50  ;;  %v10398_v50 = vld [vmem:[#allocation55_spill] sm:$0xff] }
0x12ee   : > { %v4222_v52 = vmax.f32 %v4156_v11, 0.0  ;;  %v4264_v11 = vmax.f32 %v4258_v22, %v4263_v21  ;;  %v4262_v31 = vmax.f32 %v4257_v13, %v4261_v56  ;;  %v4266_v56 = vmax.f32 %v4259_v29, %v4265_v16 }
0x12ef   : > { %v6299_v59 = vpop.f32.mrb[78].mxu0  ;;  %v4221_v15 = vmax.f32 %v4151_v4, 0.0  ;;  %v4268_v4 = vmax.f32 %v9320_v46, %v9334_v0  ;;  %v4273_v46 = vsel %vm806_vm10, %v9342_v28, -inf  ;;  %v10399_v0 = vld [vmem:[#allocation56_spill] sm:$0xff] }
0x12f0   : > { %v4160_v51 = vpop.f32.mrb[79].mxu0  ;;  %v4274_v16 = vmax.f32 %v4266_v56, %v4273_v46 }
0x12f1   : > { %v4161_v61 = vadd.f32 %v4160_v51, %v10394_v5  ;;  %v9338_v51 = vadd.f32 1e-07, %v4217_v45  ;;  %v10395_v5 = vld [vmem:[#allocation51_spill] sm:$0xff] }
0x12f2   : > { %v4166_v33 = vadd.f32 %v6299_v59, %v10395_v5 }
0x12f3   : > { %v4223_v54 = vmax.f32 %v4161_v61, 0.0  ;;  %v6302_v17 = vpop.f32.mrb[80].mxu0  ;;  %v9347_v61 = vadd.f32 1e-07, %v4222_v52 }
0x12f4   : > { %v4176_v6 = vadd.f32 %v6302_v17, %v10396_v55  ;;  %v4170_v34 = vpop.f32.mrb[81].mxu0  ;;  %v4271_v55 = vsel %vm806_vm10, %v9336_v10, -inf  ;;  %v4224_v13 = vmax.f32 %v4166_v33, 0.0  ;;  %v9360_v17 = vadd.f32 1e-07, %v4220_v62 }
0x12f5   : > { %v4171_v60 = vadd.f32 %v4170_v34, %v10397_v23  ;;  %v9353_v59 = vadd.f32 1e-07, %v4223_v54  ;;  %v4269_v34 = vsel %vm806_vm10, %v9338_v51, -inf  ;;  %v9357_v23 = vadd.f32 1e-07, %v4221_v15 }
0x12f6   : > { %v4226_v45 = vmax.f32 %v4176_v6, 0.0  ;;  %v4272_v5 = vmax.f32 %v4264_v11, %v4271_v55  ;;  %v4270_v27 = vmax.f32 %v4262_v31, %v4269_v34  ;;  %v10400_v11 = vld [vmem:[#allocation57_spill] sm:$0xff] }
0x12f7   : > { %v4225_v22 = vmax.f32 %v4171_v60, 0.0  ;;  %v6305_v41 = vpop.f32.mrb[82].mxu0  ;;  %v4279_v60 = vsel %vm806_vm10, %v9347_v61, -inf  ;;  %v4281_v33 = vsel %vm806_vm10, %v9353_v59, -inf }
0x12f8   : > { %v4186_v21 = vadd.f32 %v6305_v41, %v10398_v50  ;;  %v4180_v52 = vpop.f32.mrb[83].mxu0  ;;  %v9367_v6 = vadd.f32 1e-07, %v4226_v45  ;;  %v4277_v50 = vsel %vm806_vm10, %v9357_v23, -inf  ;;  %v4275_v45 = vsel %vm806_vm10, %v9360_v17, -inf }
0x12f9   : > { %v4181_v54 = vadd.f32 %v4180_v52, %v10399_v0  ;;  %v9371_v41 = vadd.f32 1e-07, %v4225_v22  ;;  %v9375_v52 = vadd.f32 1e-07, %v4224_v13  ;;  %v4280_v31 = vmax.f32 %v4272_v5, %v4279_v60 }
0x12fa   : > { %v4228_v15 = vmax.f32 %v4186_v21, 0.0  ;;  %v10401_v21 = vld [vmem:[#allocation58_spill] sm:$0xff]  ;;  %v4282_v38 = vmax.f32 %v4274_v16, %v4281_v33  ;;  %v4287_v56 = vsel %vm806_vm10, %v9367_v6, -inf  ;;  %v4278_v13 = vmax.f32 %v4270_v27, %v4277_v50  ;;  %v10402_v16 = vld [vmem:[#allocation59_spill] sm:$0xff]  ;;  %v10403_v50 = vld [vmem:[#allocation60_spill] sm:$0xff] }
0x12fb   : > { %v4227_v62 = vmax.f32 %v4181_v54, 0.0  ;;  %v6308_v29 = vpop.f32.mrb[84].mxu0  ;;  %v4283_v60 = vsel %vm806_vm10, %v9375_v52, -inf }
0x12fc   : > { %v4196_v55 = vadd.f32 %v6308_v29, %v10400_v11  ;;  %v4190_v0 = vpop.f32.mrb[85].mxu0  ;;  %v9385_v46 = vadd.f32 1e-07, %v4228_v15  ;;  %v4285_v29 = vsel %vm806_vm10, %v9371_v41, -inf }
0x12fd   : > { %v9380_v34 = vadd.f32 1e-07, %v4227_v62  ;;  %v4191_v22 = vadd.f32 %v4190_v0, %v10401_v21  ;;  %v4276_v21 = vmax.f32 %v4268_v4, %v4275_v45  ;;  %v4286_v39 = vmax.f32 %v4278_v13, %v4285_v29 }
0x12fe   : > { %v4230_v54 = vmax.f32 %v4196_v55, 0.0  ;;  %v4288_v55 = vmax.f32 %v4280_v31, %v4287_v56 }
0x12ff   : > { %v4289_v11 = vsel %vm806_vm10, %v9380_v34, -inf  ;;  %v4229_v48 = vmax.f32 %v4191_v22, 0.0  ;;  %v6311_v5 = vpop.f32.mrb[86].mxu0  ;;  %v4291_v22 = vsel %vm806_vm10, %v9385_v46, -inf }
0x1300   : > { %v4290_v62 = vmax.f32 %v4282_v38, %v4289_v11  ;;  %v9393_v33 = vadd.f32 1e-07, %v4230_v54  ;;  %v4206_v0 = vadd.f32 %v6311_v5, %v10402_v16  ;;  %v4200_v15 = vpop.f32.mrb[87].mxu0  ;;  %v4284_v38 = vmax.f32 %v4276_v21, %v4283_v60 }
0x1301   : > { %v9396_v27 = vadd.f32 1e-07, %v4229_v48  ;;  %v4201_v18 = vadd.f32 %v4200_v15, %v10403_v50 }
0x1302   : > { %v4295_v9 = vsel %vm806_vm10, %v9393_v33, -inf  ;;  %v4232_v35 = vmax.f32 %v4206_v0, 0.0  ;;  %v4292_v48 = vmax.f32 %v4284_v38, %v4291_v22 }
0x1303   : > { %v4296_v54 = vmax.f32 %v4288_v55, %v4295_v9  ;;  %v4293_v11 = vsel %vm806_vm10, %v9396_v27, -inf  ;;  %v4231_v5 = vmax.f32 %v4201_v18, 0.0 }
0x1304   : > { %v4294_v4 = vmax.f32 %v4286_v39, %v4293_v11  ;;  %v9405_v45 = vadd.f32 1e-07, %v4232_v35 }
0x1305   : > { %v9407_v31 = vadd.f32 1e-07, %v4231_v5 }
0x1306   : > { %v4301_v56 = vmax.f32 %v4294_v4, %v4296_v54  ;;  %v4299_v13 = vsel %vm806_vm10, %v9405_v45, -inf }
0x1307   : > { %v4300_v29 = vmax.f32 %v4292_v48, %v4299_v13  ;;  %v4297_v16 = vsel %vm806_vm10, %v9407_v31, -inf }
0x1308   : > { %v4298_v60 = vmax.f32 %v4290_v62, %v4297_v16 }
0x130a   : > { %v4302_v9 = vmax.f32 %v4298_v60, %v4300_v29 }
0x130c   : > { %v4303_v0 = vmax.f32 %v4301_v56, %v4302_v9 }
0x130e   : > { %v4304_v15 = vrot.slane %v4303_v0, 4 }
0x1310   : > { %v4305_v21 = vmax.f32 %v4303_v0, %v4304_v15 }
0x1312   : > { %v4306_v18 = vrot.slane %v4305_v21, 2 }
0x1314   : > { %v4307_v39 = vmax.f32 %v4305_v21, %v4306_v18 }
0x1316   : > { %v4308_v35 = vrot.slane %v4307_v39, 1 }
0x1318   : > { %v9413_v55 = vmax.f32 %v4307_v39, %v4308_v35 }
0x131a   : > { %v4332_v50 = vsub.f32 %v9407_v31, %v9413_v55  ;;  %v4312_v22 = vsub.f32 %v9304_v37, %v9413_v55  ;;  %v4313_v38 = vsub.f32 %v9301_v40, %v9413_v55  ;;  %v4310_v62 = vsub.f32 %v9298_v44, %v9413_v55 }
0x131b   : > { %v4311_v54 = vsub.f32 %v9296_v47, %v9413_v55  ;;  %v4316_v11 = vsub.f32 %v9328_v58, %v9413_v55  ;;  %v4317_v56 = vsub.f32 %v9311_v24, %v9413_v55  ;;  %v4314_v29 = vsub.f32 %v9309_v14, %v9413_v55 }
0x131c   : > { %v4378_v5 = vmul.f32 1.442695, %v4332_v50  ;;  %v4338_v4 = vmul.f32 1.442695, %v4312_v22  ;;  %v4340_v48 = vmul.f32 1.442695, %v4313_v38  ;;  %v4315_v60 = vsub.f32 %v9306_v42, %v9413_v55 }
0x131d   : > { %v4334_v13 = vmul.f32 1.442695, %v4310_v62  ;;  %v4336_v16 = vmul.f32 1.442695, %v4311_v54  ;;  %v4346_v9 = vmul.f32 1.442695, %v4316_v11  ;;  %v4320_v0 = vsub.f32 %v9342_v28, %v9413_v55 }
0x131e   : > { %7037 = vpow2.f32 %v4378_v5  ;;  %v4348_v15 = vmul.f32 1.442695, %v4317_v56  ;;  %v4321_v21 = vsub.f32 %v9360_v17, %v9413_v55  ;;  %v4324_v18 = vsub.f32 %v9353_v59, %v9413_v55 }
0x131f   : > { %7039 = vpow2.f32 %v4338_v4  ;;  %v4342_v39 = vmul.f32 1.442695, %v4314_v29  ;;  %v4318_v35 = vsub.f32 %v9338_v51, %v9413_v55  ;;  %v4344_v50 = vmul.f32 1.442695, %v4315_v60 }
0x1320   : > { %7041 = vpow2.f32 %v4340_v48  ;;  %v4319_v22 = vsub.f32 %v9336_v10, %v9413_v55  ;;  %v4354_v38 = vmul.f32 1.442695, %v4320_v0  ;;  %v4328_v62 = vsub.f32 %v9380_v34, %v9413_v55 }
0x1321   : > { %7043 = vpow2.f32 %v4334_v13  ;;  %v4356_v54 = vmul.f32 1.442695, %v4321_v21  ;;  %v4325_v11 = vsub.f32 %v9375_v52, %v9413_v55  ;;  %v4329_v5 = vsub.f32 %v9385_v46, %v9413_v55 }
0x1322   : > { %7045 = vpow2.f32 %v4336_v16  ;;  %v4350_v4 = vmul.f32 1.442695, %v4318_v35  ;;  %v4322_v48 = vsub.f32 %v9357_v23, %v9413_v55  ;;  %v4333_v56 = vsub.f32 %v9405_v45, %v9413_v55 }
0x1323   : > { %7047 = vpow2.f32 %v4346_v9  ;;  %v4352_v13 = vmul.f32 1.442695, %v4319_v22  ;;  %v4323_v29 = vsub.f32 %v9347_v61, %v9413_v55  ;;  %v4362_v16 = vmul.f32 1.442695, %v4324_v18 }
0x1324   : > { %7049 = vpow2.f32 %v4348_v15  ;;  %v4330_v60 = vsub.f32 %v9396_v27, %v9413_v55  ;;  %v4331_v9 = vsub.f32 %v9393_v33, %v9413_v55  ;;  %v4364_v15 = vmul.f32 1.442695, %v4325_v11 }
0x1325   : > { %7051 = vpow2.f32 %v4342_v39  ;;  %v4358_v35 = vmul.f32 1.442695, %v4322_v48  ;;  %v4326_v18 = vsub.f32 %v9371_v41, %v9413_v55  ;;  %v4360_v22 = vmul.f32 1.442695, %v4323_v29 }
0x1326   : > { %7053 = vpow2.f32 %v4344_v50 }
0x1327   : > { %7055 = vpow2.f32 %v4354_v38  ;;  %v4327_v38 = vsub.f32 %v9367_v6, %v9413_v55  ;;  %v4366_v55 = vmul.f32 1.442695, %v4326_v18  ;;  %v4376_v18 = vmul.f32 1.442695, %v4331_v9 }
0x1328   : > { %v9459_v0 = vpop.eup %7037  ;;  %7057 = vpow2.f32 %v4356_v54 }
0x1329   : > { %v9461_v21 = vpop.eup %7039  ;;  %v9465_v39 = vmul.f32 %v9459_v0, %v9407_v31  ;;  %7059 = vpow2.f32 %v4350_v4  ;;  %v4370_v31 = vmul.f32 1.442695, %v4328_v62  ;;  %v4372_v4 = vmul.f32 1.442695, %v4329_v5 }
0x132a   : > { %v9469_v50 = vpop.eup %7041  ;;  %7061 = vpow2.f32 %v4352_v13  ;;  %v4368_v53 = vmul.f32 1.442695, %v4327_v38  ;;  %v4380_v5 = vmul.f32 1.442695, %v4333_v56 }
0x132b   : > { %v9473_v54 = vpop.eup %7043  ;;  %v6758_v11 = vpack.i.bf16 %v9469_v50, %v9461_v21  ;;  %7063 = vpow2.f32 %v4362_v16 }
0x132c   : > { %v9477_v25 = vpop.eup %7045  ;;  %7065 = vpow2.f32 %v4364_v15  ;;  %v4374_v15 = vmul.f32 1.442695, %v4330_v60 }
0x132d   : > { %v9479_v48 = vpop.eup %7047  ;;  %6759 = vrot.lane.b32.xlu1 %v6758_v11, %s7151_s10  ;;  %v6753_v13 = vpack.i.bf16 %v9477_v25, %v9473_v54  ;;  %7067 = vpow2.f32 %v4358_v35 }
0x132e   : > { %v9484_v29 = vpop.eup %7049  ;;  %7069 = vpow2.f32 %v4360_v22 }
0x132f   : > { %v9486_v43 = vpop.eup %7051  ;;  %6754 = vrot.lane.b32.xlu0 %v6753_v13, %s7151_s10  ;;  %v6768_v62 = vpack.i.bf16 %v9484_v29, %v9479_v48  ;;  %7071 = vpow2.f32 %v4370_v31 }
0x1330   : > { %v9491_v16 = vpop.eup %7053  ;;  %7073 = vpow2.f32 %v4372_v4 }
0x1331   : > { %v9493_v11 = vpop.eup %7055  ;;  %6769 = vrot.lane.b32.xlu1 %v6768_v62, %s7151_s10  ;;  %v6763_v35 = vpack.i.bf16 %v9491_v16, %v9486_v43  ;;  %7075 = vpow2.f32 %v4366_v55 }
0x1332   : > { %v9498_v22 = vpop.eup %7057  ;;  %7077 = vpow2.f32 %v4368_v53 }
0x1333   : > { %v9500_v38 = vpop.eup %7059  ;;  %6764 = vrot.lane.b32.xlu0 %v6763_v35, %s7151_s10  ;;  %v6778_v56 = vpack.i.bf16 %v9498_v22, %v9493_v11  ;;  %7079 = vpow2.f32 %v4380_v5 }
0x1334   : > { %v9505_v60 = vpop.eup %7061  ;;  %7081 = vpow2.f32 %v4374_v15 }
0x1335   : > { %v7064_v31 = vpop.eup %7063  ;;  %6779 = vrot.lane.b32.xlu1 %v6778_v56, %s7151_s10  ;;  %v6773_v9 = vpack.i.bf16 %v9505_v60, %v9500_v38  ;;  %7083 = vpow2.f32 %v4376_v18 }
0x1336   : > { %v9510_v4 = vpop.eup %7065  ;;  %v9513_v53 = vmul.f32 %v7064_v31, %v9353_v59 }
0x1337   : > { %v9515_v13 = vpop.eup %7067  ;;  %6774 = vrot.lane.b32.xlu0 %v6773_v9, %s7151_s10  ;;  %v6788_v55 = vpack.i.bf16 %v9510_v4, %v7064_v31 }
0x1338   : > { %v9519_v62 = vpop.eup %7069 }
0x1339   : > { %v7072_v5 = vpop.eup %7071  ;;  %6789 = vrot.lane.b32.xlu1 %v6788_v55, %s7151_s10  ;;  %v6783_v15 = vpack.i.bf16 %v9519_v62, %v9515_v13 }
0x133a   : > { %v7074_v35 = vpop.eup %7073  ;;  %v9525_v18 = vmul.f32 %v7072_v5, %v9380_v34 }
0x133b   : > { %v9527_v59 = vpop.eup %7075  ;;  %6784 = vrot.lane.b32.xlu0 %v6783_v15, %s7151_s10  ;;  %v6798_v56 = vpack.i.bf16 %v7074_v35, %v7072_v5  ;;  %v9531_v9 = vmul.f32 %v7074_v35, %v9385_v46 }
0x133c   : > { %v9533_v31 = vpop.eup %7077 }
0x133d   : > { %v7080_v36 = vpop.eup %7079  ;;  %6799 = vrot.lane.b32.xlu1 %v6798_v56, %s7151_s10  ;;  %v6793_v55 = vpack.i.bf16 %v9533_v31, %v9527_v59  ;;  %v4384_v56 = vmul.f32 %v9461_v21, %v9304_v37  ;;  %v4389_v37 = vmul.f32 %v9484_v29, %v9311_v24 }
0x133e   : > { %v7082_v32 = vpop.eup %7081  ;;  %v6808_v34 = vpack.i.bf16 %v7080_v36, %v9459_v0  ;;  %v9540_v7 = vmul.f32 %v7080_v36, %v9405_v45  ;;  %v4385_v0 = vmul.f32 %v9469_v50, %v9301_v40  ;;  %v4388_v40 = vmul.f32 %v9479_v48, %v9328_v58 }
0x133f   : > { %v7084_v63 = vpop.eup %7083  ;;  %6794 = vrot.lane.b32.xlu0 %v6793_v55, %s7151_s10  ;;  %v9544_v46 = vmul.f32 %v7082_v32, %v9396_v27  ;;  %v4383_v27 = vmul.f32 %v9477_v25, %v9296_v47 }
0x1340   : > { %v6803_v5 = vpack.i.bf16 %v7084_v63, %v7082_v32  ;;  %v9547_v15 = vmul.f32 %v7084_v63, %v9393_v33  ;;  %v4382_v63 = vmul.f32 %v9473_v54, %v9298_v44 }
0x1341   : > { %6809 = vrot.lane.b32.xlu1 %v6808_v34, %s7151_s10 }
0x1343   : > { %6804 = vrot.lane.b32.xlu0 %v6803_v5, %s7151_s10 }
0x139f   : > { %v6760_v35 = vpop.permute.xlu1 %6759 }
0x13a0   : > { %v6762_v36 = vunpack.i.h.bf16 %v6760_v35  ;;  %v6761_v45 = vunpack.i.l.bf16 %v6760_v35  ;;  %v4386_v35 = vmul.f32 %v9486_v43, %v9309_v14 }
0x13a1   : > { %v6755_v32 = vpop.permute.xlu0 %6754 }
0x13a2   : > { %v4505_v33 = vsel %vm806_vm10, %v4385_v0, %v6762_v36  ;;  %v4504_v55 = vsel %vm806_vm10, %v4384_v56, %v6761_v45  ;;  %v6757_v34 = vunpack.i.h.bf16 %v6755_v32  ;;  %v6756_v5 = vunpack.i.l.bf16 %v6755_v32 }
0x13a3   : > { %v6552_v12 = vpack.c.bf16 %v4505_v33, %v4504_v55  ;;  %v6770_v21 = vpop.permute.xlu1 %6769  ;;  %v4387_v0 = vmul.f32 %v9491_v16, %v9306_v42  ;;  %v4392_v56 = vmul.f32 %v9493_v11, %v9342_v28  ;;  %v4390_v33 = vmul.f32 %v9500_v38, %v9338_v51 }
0x13a4   : > { %v4503_v25 = vsel %vm806_vm10, %v4383_v27, %v6757_v34  ;;  %v4502_v47 = vsel %vm806_vm10, %v4382_v63, %v6756_v5  ;;  %v6772_v50 = vunpack.i.h.bf16 %v6770_v21  ;;  %v6771_v44 = vunpack.i.l.bf16 %v6770_v21 }
0x13a5   : > { %v6549_v54 = vpack.c.bf16 %v4503_v25, %v4502_v47  ;;  %v6765_v36 = vpop.permute.xlu0 %6764  ;;  %v4393_v27 = vmul.f32 %v9498_v22, %v9360_v17  ;;  %v4391_v55 = vmul.f32 %v9505_v60, %v9336_v10  ;;  %v4394_v60 = vmul.f32 %v9515_v13, %v9357_v23 }
0x13a6   : > { %v4509_v58 = vsel %vm806_vm10, %v4389_v37, %v6772_v50  ;;  %v4508_v48 = vsel %vm806_vm10, %v4388_v40, %v6771_v44  ;;  %v6767_v24 = vunpack.i.h.bf16 %v6765_v36  ;;  %v6766_v29 = vunpack.i.l.bf16 %v6765_v36 }
0x13a7   : > { %v6558_v45 = vpack.c.bf16 %v4509_v58, %v4508_v48  ;;  %6550 = vmatpush1.bf16.msra.mxu1 %v6549_v54  ;;  %v6780_v32 = vpop.permute.xlu1 %6779  ;;  %v4397_v40 = vmul.f32 %v9510_v4, %v9375_v52  ;;  %v4395_v47 = vmul.f32 %v9519_v62, %v9347_v61  ;;  %v4398_v13 = vmul.f32 %v9527_v59, %v9371_v41 }
0x13a8   : > { %v4507_v43 = vsel %vm806_vm10, %v4387_v0, %v6767_v24  ;;  %v4506_v42 = vsel %vm806_vm10, %v4386_v35, %v6766_v29  ;;  %v6782_v14 = vunpack.i.h.bf16 %v6780_v32  ;;  %v6781_v16 = vunpack.i.l.bf16 %v6780_v32  ;;  %6551 = vmatprep.subr.bf16.mxu1 %v10207_v19 }
0x13a9   : > { %v6555_v63 = vpack.c.bf16 %v4507_v43, %v4506_v42  ;;  %v6775_v28 = vpop.permute.xlu0 %6774 }
0x13aa   : > { %v4513_v11 = vsel %vm806_vm10, %v4393_v27, %v6782_v14  ;;  %v4512_v17 = vsel %vm806_vm10, %v4392_v56, %v6781_v16  ;;  %v6777_v22 = vunpack.i.h.bf16 %v6775_v28  ;;  %v6776_v34 = vunpack.i.l.bf16 %v6775_v28 }
0x13ab   : > { %v6564_v5 = vpack.c.bf16 %v4513_v11, %v4512_v17  ;;  %6553 = vmatpush1.bf16.msra.mxu1 %v6552_v12  ;;  %v6790_v37 = vpop.permute.xlu1 %6789 }
0x13ac   : > { %v4511_v21 = vsel %vm806_vm10, %v4391_v55, %v6777_v22  ;;  %v4510_v51 = vsel %vm806_vm10, %v4390_v33, %v6776_v34  ;;  %v6792_v38 = vunpack.i.h.bf16 %v6790_v37  ;;  %v6791_v25 = vunpack.i.l.bf16 %v6790_v37  ;;  %6554 = vmatprep.subr.bf16.mxu1 %v10207_v19 }
0x13ad   : > { %v6561_v10 = vpack.c.bf16 %v4511_v21, %v4510_v51  ;;  %v6785_v12 = vpop.permute.xlu0 %6784 }
0x13ae   : > { %v4517_v50 = vsel %vm806_vm10, %v4397_v40, %v6792_v38  ;;  %v4516_v52 = vsel %vm806_vm10, %v9513_v53, %v6791_v25  ;;  %v6787_v4 = vunpack.i.h.bf16 %v6785_v12  ;;  %v6786_v44 = vunpack.i.l.bf16 %v6785_v12 }
0x13af   : > { %v6570_v54 = vpack.c.bf16 %v4517_v50, %v4516_v52  ;;  %6556 = vmatpush1.bf16.msra.mxu1 %v6555_v63  ;;  %v6800_v35 = vpop.permute.xlu1 %6799  ;;  %v4399_v53 = vmul.f32 %v9533_v31, %v9367_v6 }
0x13b0   : > { %v4515_v0 = vsel %vm806_vm10, %v4395_v47, %v6787_v4  ;;  %v4514_v36 = vsel %vm806_vm10, %v4394_v60, %v6786_v44  ;;  %v6802_v58 = vunpack.i.h.bf16 %v6800_v35  ;;  %v6801_v23 = vunpack.i.l.bf16 %v6800_v35  ;;  %6557 = vmatprep.subr.bf16.mxu1 %v10207_v19 }
0x13b1   : > { %v6567_v61 = vpack.c.bf16 %v4515_v0, %v4514_v36  ;;  %v6795_v62 = vpop.permute.xlu0 %6794 }
0x13b2   : > { %v4521_v48 = vsel %vm806_vm10, %v9531_v9, %v6802_v58  ;;  %v4520_v24 = vsel %vm806_vm10, %v9525_v18, %v6801_v23  ;;  %v6797_v29 = vunpack.i.h.bf16 %v6795_v62  ;;  %v6796_v56 = vunpack.i.l.bf16 %v6795_v62 }
0x13b3   : > { %v6576_v27 = vpack.c.bf16 %v4521_v48, %v4520_v24  ;;  %6559 = vmatpush1.bf16.msra.mxu1 %v6558_v45  ;;  %v6810_v32 = vpop.permute.xlu1 %6809 }
0x13b4   : > { %v4519_v43 = vsel %vm806_vm10, %v4399_v53, %v6797_v29  ;;  %v4518_v42 = vsel %vm806_vm10, %v4398_v13, %v6796_v56  ;;  %v6812_v41 = vunpack.i.h.bf16 %v6810_v32  ;;  %v6811_v59 = vunpack.i.l.bf16 %v6810_v32  ;;  %6560 = vmatprep.subr.bf16.mxu1 %v10207_v19 }
0x13b5   : > { %v6573_v6 = vpack.c.bf16 %v4519_v43, %v4518_v42  ;;  %v6805_v31 = vpop.permute.xlu0 %6804  ;;  %v4735_v42 = vld [vmem:[%s9962_s3 + $0x90] sm:$0xff] }
0x13b6   : > { %v4525_v9 = vsel %vm806_vm10, %v9540_v7, %v6812_v41  ;;  %v4524_v18 = vsel %vm806_vm10, %v9465_v39, %v6811_v59  ;;  %v6807_v14 = vunpack.i.h.bf16 %v6805_v31  ;;  %v6806_v16 = vunpack.i.l.bf16 %v6805_v31  ;;  %v4736_v41 = vld [vmem:[%s9962_s3 + $0x98] sm:$0xff]  ;;  %v4737_v59 = vld [vmem:[%s9962_s3 + $0xa0] sm:$0xff] }
0x13b7   : > { %v6582_v45 = vpack.c.bf16 %v4525_v9, %v4524_v18  ;;  %6562 = vmatpush1.bf16.msra.mxu1 %v6561_v10  ;;  %v6584_v31 = vpack.c.bf16 %v4736_v41, %v4735_v42  ;;  %v4738_v9 = vld [vmem:[%s9962_s3 + $0xa8] sm:$0xff] }
0x13b8   : > { %v4523_v63 = vsel %vm806_vm10, %v9547_v15, %v6807_v14  ;;  %v4522_v33 = vsel %vm806_vm10, %v9544_v46, %v6806_v16  ;;  %6563 = vmatprep.subr.bf16.mxu1 %v10207_v19  ;;  %v6588_v14 = vpack.c.bf16 %v4738_v9, %v4737_v59  ;;  %v10420_v9 = vld [vmem:[#allocation14_spill] sm:$0xff] }
0x13b9   : > { %v6579_v55 = vpack.c.bf16 %v4523_v63, %v4522_v33  ;;  %6585 = vmatprep.subr.bf16.mxu0 %v6584_v31 }
0x13ba   : > { %6587 = vmatpush3.bf16.msra.mxu0 %v6584_v31 }
0x13bb   : > { %6565 = vmatpush1.bf16.msra.mxu1 %v6564_v5  ;;  %6589 = vmatprep.subr.bf16.mxu0 %v6588_v14 }
0x13bc   : > { %6566 = vmatprep.subr.bf16.mxu1 %v10207_v19 }
0x13be   : > { %6591 = vmatpush3.bf16.msra.mxu0 %v6588_v14 }
0x13bf   : > { %6568 = vmatpush1.bf16.msra.mxu1 %v6567_v61 }
0x13c0   : > { %6569 = vmatprep.subr.bf16.mxu1 %v10207_v19 }
0x13c3   : > { %6571 = vmatpush1.bf16.msra.mxu1 %v6570_v54 }
0x13c4   : > { %6572 = vmatprep.subr.bf16.mxu1 %v10207_v19 }
0x13c7   : > { %6574 = vmatpush1.bf16.msra.mxu1 %v6573_v6 }
0x13c8   : > { %6575 = vmatprep.subr.bf16.mxu1 %v10207_v19 }
0x13cb   : > { %6577 = vmatpush1.bf16.msra.mxu1 %v6576_v27 }
0x13cc   : > { %6578 = vmatprep.subr.bf16.mxu1 %v10207_v19 }
0x13cf   : > { %6580 = vmatpush1.bf16.msra.mxu1 %v6579_v55 }
0x13d0   : > { %6581 = vmatprep.subr.bf16.mxu1 %v10207_v19  ;;  %v10404_v19 = vld [vmem:[#allocation64_spill] sm:$0xff] }
0x13d3   : > { %6583 = vmatpush1.bf16.msra.mxu1 %v6582_v45 }
0x13d6   : > { %5706 = vmatmul.mubr.msk.f32.vlgmr.msra.gmra.mrb[88].mxu1 %vm566_vm8, %v10300_v57 }
0x13d7   : > { %5707 = vmatprep.mubr.msk.f32.mxu1 %vm646_vm2, %v8097_v2  ;;  %v10406_v2 = vld [vmem:[#allocation66_spill] sm:$0xff] }
0x13da   : > { %5708 = vmatmul.mubr.msk.f32.gmra.mrb[90].mxu1 %vm568_vm11, %v10300_v57 }
0x13db   : > { %5709 = vmatprep.mubr.msk.f32.mxu1 %vm646_vm2, %v8113_v3  ;;  %v10408_v3 = vld [vmem:[#allocation68_spill] sm:$0xff] }
0x13de   : > { %5710 = vmatmul.mubr.msk.f32.gmra.mrb[92].mxu1 %vm570_vm14, %v10300_v57 }
0x13df   : > { %5711 = vmatprep.mubr.msk.f32.mxu1 %vm646_vm2, %v8129_v1  ;;  %v10410_v1 = vld [vmem:[#allocation69_spill] sm:$0xff] }
0x13e2   : > { %5712 = vmatmul.mubr.msk.f32.gmra.mrb[94].mxu1 %vm572_vm0, %v10300_v57 }
0x13e3   : > { %5713 = vmatprep.mubr.msk.f32.mxu1 %vm646_vm2, %v10404_v19 }
0x13e6   : > { %5714 = vmatmul.mubr.msk.f32.gmra.mrb[96].mxu1 %vm574_vm3, %v10300_v57 }
0x13e7   : > { %5715 = vmatprep.mubr.msk.f32.mxu1 %vm646_vm2, %v10406_v2 }
0x13ea   : > { %5716 = vmatmul.mubr.msk.f32.gmra.mrb[98].mxu1 %vm576_vm6, %v10300_v57 }
0x13eb   : > { %5717 = vmatprep.mubr.msk.f32.mxu1 %vm646_vm2, %v10408_v3 }
0x13ee   : > { %5718 = vmatmul.mubr.msk.f32.gmra.mrb[100].mxu1 %vm578_vm9, %v10300_v57 }
0x13ef   : > { %5719 = vmatprep.mubr.msk.f32.mxu1 %vm646_vm2, %v10410_v1 }
0x13f2   : > { %5720 = vmatmul.mubr.msk.f32.gmra.mrb[102].mxu1 %vm580_vm12, %v10300_v57 }
0x14a9   : > { %v9673_v39 = vpop.f32.mrb[88].mxu1 }
0x14aa   : > { %v4639_v46 = vmax.f32 %v9673_v39, 1e-30  ;;  %v4594_v15 = vpop.f32.mrb[89].mxu1  ;;  %vm4631_vm2 = vcmp.gt.f32.partialorder %v9673_v39, 0.0 }
0x14ac   : > { %7085 = vrcp.f32 %v4639_v46 }
0x14ad   : > { %v9676_v28 = vpop.f32.mrb[90].mxu1 }
0x14ae   : > { %v4640_v11 = vmax.f32 %v9676_v28, 1e-30  ;;  %v4599_v17 = vpop.f32.mrb[91].mxu1  ;;  %vm4632_vm8 = vcmp.gt.f32.partialorder %v9676_v28, 0.0 }
0x14b0   : > { %7087 = vrcp.f32 %v4640_v11 }
0x14b1   : > { %v9679_v22 = vpop.f32.mrb[92].mxu1 }
0x14b2   : > { %v4641_v34 = vmax.f32 %v9679_v22, 1e-30  ;;  %v4604_v5 = vpop.f32.mrb[93].mxu1  ;;  %vm4633_vm11 = vcmp.gt.f32.partialorder %v9679_v22, 0.0 }
0x14b4   : > { %7089 = vrcp.f32 %v4641_v34 }
0x14b5   : > { %v9682_v26 = vpop.f32.mrb[94].mxu1 }
0x14b6   : > { %v7086_v57 = vpop.eup %7085  ;;  %v4642_v40 = vmax.f32 %v9682_v26, 1e-30  ;;  %v4609_v37 = vpop.f32.mrb[95].mxu1  ;;  %vm4634_vm14 = vcmp.gt.f32.partialorder %v9682_v26, 0.0 }
0x14b7   : > { %4663 = vrot.lane.b32.xlu0 %v7086_v57, %s7149_s17 }
0x14b8   : > { %7091 = vrcp.f32 %v4642_v40  ;;  %v10412_v40 = vld [vmem:[#allocation11_spill] sm:$0xff] }
0x14b9   : > { %v9686_v21 = vpop.f32.mrb[96].mxu1 }
0x14ba   : > { %v7088_v51 = vpop.eup %7087  ;;  %v4643_v38 = vmax.f32 %v9686_v21, 1e-30  ;;  %v4614_v25 = vpop.f32.mrb[97].mxu1  ;;  %vm4635_vm0 = vcmp.gt.f32.partialorder %v9686_v21, 0.0 }
0x14bb   : > { %4665 = vrot.lane.b32.xlu1 %v7088_v51, %s7149_s17  ;;  %v10413_v51 = vld [vmem:[#allocation9_spill] sm:$0xff] }
0x14bc   : > { %7093 = vrcp.f32 %v4643_v38 }
0x14bd   : > { %v9690_v10 = vpop.f32.mrb[98].mxu1 }
0x14be   : > { %v7090_v60 = vpop.eup %7089  ;;  %v4644_v47 = vmax.f32 %v9690_v10, 1e-30  ;;  %v4619_v12 = vpop.f32.mrb[99].mxu1  ;;  %vm4636_vm3 = vcmp.gt.f32.partialorder %v9690_v10, 0.0 }
0x14bf   : > { %4667 = vrot.lane.b32.xlu0 %v7090_v60, %s7149_s17  ;;  %v10415_v12 = vld [vmem:[#allocation3_spill] sm:$0xff] }
0x14c0   : > { %7095 = vrcp.f32 %v4644_v47 }
0x14c1   : > { %v9694_v50 = vpop.f32.mrb[100].mxu1 }
0x14c2   : > { %v7092_v52 = vpop.eup %7091  ;;  %v4645_v4 = vmax.f32 %v9694_v50, 1e-30  ;;  %v4624_v44 = vpop.f32.mrb[101].mxu1  ;;  %vm4637_vm6 = vcmp.gt.f32.partialorder %v9694_v50, 0.0 }
0x14c3   : > { %4669 = vrot.lane.b32.xlu1 %v7092_v52, %s7149_s17 }
0x14c4   : > { %7097 = vrcp.f32 %v4645_v4  ;;  %v10416_v4 = vld [vmem:[#allocation77_spill] sm:$0xff] }
0x14c5   : > { %v9698_v54 = vpop.f32.mrb[102].mxu1 }
0x14c6   : > { %v7094_v35 = vpop.eup %7093  ;;  %v4646_v0 = vmax.f32 %v9698_v54, 1e-30  ;;  %v4629_v36 = vpop.f32.mrb[103].mxu1  ;;  %vm4638_vm9 = vcmp.gt.f32.partialorder %v9698_v54, 0.0 }
0x14c7   : > { %4671 = vrot.lane.b32.xlu0 %v7094_v35, %s7149_s17  ;;  %v10417_v35 = vld [vmem:[#allocation5_spill] sm:$0xff] }
0x14c8   : > { %7099 = vrcp.f32 %v4646_v0 }
0x14ca   : > { %v7096_v58 = vpop.eup %7095 }
0x14cb   : > { %4673 = vrot.lane.b32.xlu1 %v7096_v58, %s7149_s17  ;;  %v10418_v58 = vld [vmem:[#allocation81_spill] sm:$0xff] }
0x14ce   : > { %v7098_v23 = vpop.eup %7097 }
0x14cf   : > { %4675 = vrot.lane.b32.xlu0 %v7098_v23, %s7149_s17 }
0x14d2   : > { %v7100_v61 = vpop.eup %7099 }
0x14d3   : > { %4677 = vrot.lane.b32.xlu1 %v7100_v61, %s7149_s17 }
0x1529   : > { %v4664_v13 = vpop.permute.xlu0 %4663 }
0x152a   : > { %v4687_v53 = vmul.f32 %v4664_v13, %v9673_v39  ;;  %v10419_v13 = vld [vmem:[#allocation7_spill] sm:$0xff] }
0x152c   : > { %4703 = vrot.lane.b32.xlu0 %v4687_v53, %s7151_s10 }
0x152d   : > { %v4666_v62 = vpop.permute.xlu1 %4665 }
0x152e   : > { %v4688_v48 = vmul.f32 %v4666_v62, %v9676_v28  ;;  %v4935_v28 = vsub.s32 7, %v7308_v8  ;;  %v5729_v62 = vld [vmem:[%s9963_s4 + $0x60] sm:$0xff] }
0x1530   : > { %4705 = vrot.lane.b32.xlu1 %v4688_v48, %s7151_s10  ;;  %v5730_v48 = vld [vmem:[%s9963_s4 + $0x68] sm:$0xff] }
0x1531   : > { %v4668_v24 = vpop.permute.xlu0 %4667 }
0x1532   : > { %v4689_v29 = vmul.f32 %v4668_v24, %v9679_v22  ;;  %v7135_v22 = vld [vmem:[%s9964_s5] sm:$0xff]  ;;  %v5731_v24 = vld [vmem:[%s9963_s4 + $0x70] sm:$0xff] }
0x1533   : > { %v9750_v34 = vrot.slane %v7135_v22, %v4935_v28 }
0x1534   : > { %4707 = vrot.lane.b32.xlu0 %v4689_v29, %s7151_s10  ;;  %v6592_v29 = vpack.c.bf16 %v5730_v48, %v5729_v62 }
0x1535   : > { %v4670_v56 = vpop.permute.xlu1 %4669 }
0x1536   : > { %v4690_v27 = vmul.f32 %v4670_v56, %v9682_v26  ;;  %v5732_v56 = vld [vmem:[%s9963_s4 + $0x78] sm:$0xff]  ;;  %6593 = vmatprep.subr.bf16.mxu0 %v6592_v29 }
0x1538   : > { %4709 = vrot.lane.b32.xlu1 %v4690_v27, %s7151_s10  ;;  %v6596_v27 = vpack.c.bf16 %v5732_v56, %v5731_v24 }
0x1539   : > { %v4672_v32 = vpop.permute.xlu0 %4671 }
0x153a   : > { %v4691_v43 = vmul.f32 %v4672_v32, %v9686_v21  ;;  %v4781_v32 = vsub.s32 3, %v7308_v8 }
0x153c   : > { %4711 = vrot.lane.b32.xlu0 %v4691_v43, %s7151_s10  ;;  %v4782_v43 = vrot.slane %v7135_v22, %v4781_v32 }
0x153d   : > { %v4674_v6 = vpop.permute.xlu1 %4673 }
0x153e   : > { %v4692_v18 = vmul.f32 %v4674_v6, %v9690_v10  ;;  %v10414_v10 = vld [vmem:[#allocation73_spill] sm:$0xff] }
0x1540   : > { %4713 = vrot.lane.b32.xlu1 %v4692_v18, %s7151_s10  ;;  %v10421_v18 = vld [vmem:[#allocation12_spill] sm:$0xff] }
0x1541   : > { %v4676_v16 = vpop.permute.xlu0 %4675  ;;  %v9793_v14 = vadd.f32 %v10421_v18, %v10420_v9 }
0x1542   : > { %v4693_v45 = vmul.f32 %v4676_v16, %v9694_v50 }
0x1544   : > { %4715 = vrot.lane.b32.xlu0 %v4693_v45, %s7151_s10  ;;  %v10422_v45 = vld [vmem:[#allocation71_spill] sm:$0xff] }
0x1545   : > { %v4678_v63 = vpop.permute.xlu1 %4677 }
0x1546   : > { %v4694_v33 = vmul.f32 %v4678_v63, %v9698_v54  ;;  %v10423_v63 = vld [vmem:[#allocation82_spill] sm:$0xff] }
0x1548   : > { %4717 = vrot.lane.b32.xlu1 %v4694_v33, %s7151_s10  ;;  %v9798_v33 = vadd.f32 %v10423_v63, %v10422_v45 }
0x159e   : > { %v4704_v55 = vpop.permute.xlu0 %4703 }
0x159f   : > { %v4727_v19 = vsel %vm4631_vm2, %v4704_v55, 0.0 }
0x15a0   : > { %4747 = vrot.lane.b32.xlu0 %v4727_v19, %s7149_s17 }
0x15a2   : > { %v4706_v30 = vpop.permute.xlu1 %4705 }
0x15a3   : > { %v4728_v2 = vsel %vm4632_vm8, %v4706_v30, 0.0 }
0x15a4   : > { %4749 = vrot.lane.b32.xlu1 %v4728_v2, %s7149_s17 }
0x15a6   : > { %v4708_v20 = vpop.permute.xlu0 %4707 }
0x15a7   : > { %v4729_v3 = vsel %vm4633_vm11, %v4708_v20, 0.0 }
0x15a8   : > { %4751 = vrot.lane.b32.xlu0 %v4729_v3, %s7149_s17 }
0x15aa   : > { %v4710_v49 = vpop.permute.xlu1 %4709 }
0x15ab   : > { %v4730_v1 = vsel %vm4634_vm14, %v4710_v49, 0.0  ;;  %v10424_v49 = vld [vmem:[#allocation70_spill] sm:$0xff] }
0x15ac   : > { %4753 = vrot.lane.b32.xlu1 %v4730_v1, %s7149_s17  ;;  %v10425_v1 = vld [vmem:[#allocation10_spill] sm:$0xff] }
0x15ae   : > { %v4712_v7 = vpop.permute.xlu0 %4711 }
0x15af   : > { %v4731_v39 = vsel %vm4635_vm0, %v4712_v7, 0.0  ;;  %v9815_v7 = vadd.f32 %v10425_v1, %v10424_v49 }
0x15b0   : > { %4755 = vrot.lane.b32.xlu0 %v4731_v39, %s7149_s17 }
0x15b2   : > { %v4714_v46 = vpop.permute.xlu1 %4713 }
0x15b3   : > { %v4732_v15 = vsel %vm4636_vm3, %v4714_v46, 0.0  ;;  %v10426_v46 = vld [vmem:[#allocation75_spill] sm:$0xff] }
0x15b4   : > { %4757 = vrot.lane.b32.xlu1 %v4732_v15, %s7149_s17  ;;  %v10427_v15 = vld [vmem:[#allocation4_spill] sm:$0xff] }
0x15b5   : > { %v9820_v28 = vadd.f32 %v10427_v15, %v10426_v46 }
0x15b6   : > { %v4716_v11 = vpop.permute.xlu0 %4715 }
0x15b7   : > { %v4733_v17 = vsel %vm4637_vm6, %v4716_v11, 0.0 }
0x15b8   : > { %4759 = vrot.lane.b32.xlu0 %v4733_v17, %s7149_s17 }
0x15ba   : > { %v4718_v5 = vpop.permute.xlu1 %4717 }
0x15bb   : > { %v4734_v26 = vsel %vm4638_vm9, %v4718_v5, 0.0 }
0x15bc   : > { %4761 = vrot.lane.b32.xlu1 %v4734_v26, %s7149_s17  ;;  %5091 = vrot.lane.b32.xlu0 %v9750_v34, %s7147_s14 }
0x1612   : > { %v4748_v57 = vpop.permute.xlu0 %4747 }
0x1613   : > { %v4771_v37 = vadd.f32 %v4748_v57, %v10412_v40 }
0x1615   : > { %6320 = vmatprep.mubr.msk.f32.mxu0 %vm806_vm10, %v4771_v37  ;;  %v10428_v37 = vld [vmem:[#allocation74_spill] sm:$0xff] }
0x1616   : > { %v4750_v21 = vpop.permute.xlu1 %4749 }
0x1617   : > { %v4772_v38 = vadd.f32 %v4750_v21, %v10413_v51  ;;  %v10429_v21 = vld [vmem:[#allocation72_spill] sm:$0xff] }
0x1618   : > { %v9837_v51 = vadd.f32 %v10429_v21, %v10428_v37 }
0x1619   : > { %6321 = vmatmul.mubr.msk.f32.vlgmr.msra.gmra.mrb[88].mxu0 %vm806_vm10, %v4772_v38 }
0x161a   : > { %v4752_v25 = vpop.permute.xlu0 %4751  ;;  %6595 = vmatpush3.bf16.msra.mxu0 %v6592_v29 }
0x161b   : > { %v4773_v60 = vadd.f32 %v4752_v25, %v10414_v10  ;;  %6597 = vmatprep.subr.bf16.mxu0 %v6596_v27  ;;  %v10430_v25 = vld [vmem:[#allocation79_spill] sm:$0xff]  ;;  %v10431_v10 = vld [vmem:[#allocation6_spill] sm:$0xff] }
0x161d   : > { %6323 = vmatprep.mubr.msk.f32.mxu0 %vm806_vm10, %v4773_v60  ;;  %v9842_v60 = vadd.f32 %v10431_v10, %v10430_v25 }
0x161e   : > { %v4754_v47 = vpop.permute.xlu1 %4753  ;;  %6599 = vmatpush3.bf16.msra.mxu0 %v6596_v27 }
0x161f   : > { %v4774_v50 = vadd.f32 %v4754_v47, %v10415_v12 }
0x1621   : > { %6324 = vmatmul.mubr.msk.f32.gmra.mrb[90].mxu0 %vm806_vm10, %v4774_v50 }
0x1622   : > { %v4756_v52 = vpop.permute.xlu0 %4755 }
0x1623   : > { %v4775_v44 = vadd.f32 %v4756_v52, %v10416_v4 }
0x1625   : > { %6326 = vmatprep.mubr.msk.f32.mxu0 %vm806_vm10, %v4775_v44 }
0x1626   : > { %v4758_v54 = vpop.permute.xlu1 %4757 }
0x1627   : > { %v4776_v0 = vadd.f32 %v4758_v54, %v10417_v35  ;;  %v10432_v35 = vld [vmem:[#allocation78_spill] sm:$0xff] }
0x1629   : > { %6327 = vmatmul.mubr.msk.f32.gmra.mrb[92].mxu0 %vm806_vm10, %v4776_v0  ;;  %v10433_v0 = vld [vmem:[#allocation76_spill] sm:$0xff] }
0x162a   : > { %v4760_v36 = vpop.permute.xlu0 %4759 }
0x162b   : > { %v4777_v23 = vadd.f32 %v4760_v36, %v10418_v58  ;;  %v9859_v36 = vadd.f32 %v10433_v0, %v10432_v35 }
0x162d   : > { %6329 = vmatprep.mubr.msk.f32.mxu0 %vm806_vm10, %v4777_v23  ;;  %v10434_v23 = vld [vmem:[#allocation83_spill] sm:$0xff] }
0x162e   : > { %v4762_v61 = vpop.permute.xlu1 %4761  ;;  %v5092_v32 = vpop.permute.xlu0 %5091 }
0x162f   : > { %v4778_v53 = vadd.f32 %v4762_v61, %v10419_v13  ;;  %v10435_v61 = vld [vmem:[#allocation8_spill] sm:$0xff] }
0x1630   : > { %v9864_v13 = vadd.f32 %v10435_v61, %v10434_v23 }
0x1631   : > { %6330 = vmatmul.mubr.msk.f32.gmra.mrb[94].mxu0 %vm806_vm10, %v4778_v53 }
0x16ec   : > { %v6322_v42 = vpop.f32.mrb[88].mxu0 }
0x16ed   : > { %v9786_v41 = vadd.f32 %v6322_v42, %v4782_v43  ;;  %v4873_v59 = vpop.f32.mrb[89].mxu0 }
0x16ee   : > { %v9788_v6 = vadd.f32 %v4873_v59, %v4782_v43 }
0x16ef   : > { %v4913_v31 = vmax.f32 %v9786_v41, 0.0 }
0x16f0   : > { %v4912_v16 = vmax.f32 %v9788_v6, 0.0 }
0x16f1   : > { %v4921_v55 = vadd.f32 %v4913_v31, %v9798_v33 }
0x16f2   : > { %v4920_v8 = vadd.f32 %v4912_v16, %v9793_v14 }
0x16f4   : > { %v6325_v19 = vpop.f32.mrb[90].mxu0  ;;  %6340 = vmatprep.mubr.msk.f32.mxu0 %vm806_vm10, %v4920_v8 }
0x16f5   : > { %v9807_v30 = vadd.f32 %v6325_v19, %v4782_v43  ;;  %v4883_v2 = vpop.f32.mrb[91].mxu0  ;;  %6341 = vmatmul.mubr.msk.f32.vlgmr.msra.gmra.mrb[96].mxu0 %vm806_vm10, %v4921_v55 }
0x16f6   : > { %v9810_v20 = vadd.f32 %v4883_v2, %v4782_v43 }
0x16f7   : > { %v4915_v3 = vmax.f32 %v9807_v30, 0.0 }
0x16f8   : > { %v4914_v39 = vmax.f32 %v9810_v20, 0.0 }
0x16f9   : > { %v4923_v17 = vadd.f32 %v4915_v3, %v9820_v28 }
0x16fa   : > { %v4922_v11 = vadd.f32 %v4914_v39, %v9815_v7 }
0x16fc   : > { %v6328_v22 = vpop.f32.mrb[92].mxu0  ;;  %6343 = vmatprep.mubr.msk.f32.mxu0 %vm806_vm10, %v4922_v11 }
0x16fd   : > { %v9829_v5 = vadd.f32 %v6328_v22, %v4782_v43  ;;  %v4893_v26 = vpop.f32.mrb[93].mxu0  ;;  %6344 = vmatmul.mubr.msk.f32.gmra.mrb[98].mxu0 %vm806_vm10, %v4923_v17 }
0x16fe   : > { %v9832_v57 = vadd.f32 %v4893_v26, %v4782_v43 }
0x16ff   : > { %v4917_v40 = vmax.f32 %v9829_v5, 0.0 }
0x1700   : > { %v4916_v38 = vmax.f32 %v9832_v57, 0.0 }
0x1701   : > { %v4925_v12 = vadd.f32 %v4917_v40, %v9842_v60 }
0x1702   : > { %v4924_v47 = vadd.f32 %v4916_v38, %v9837_v51 }
0x1704   : > { %v6331_v50 = vpop.f32.mrb[94].mxu0  ;;  %6346 = vmatprep.mubr.msk.f32.mxu0 %vm806_vm10, %v4924_v47 }
0x1705   : > { %v9851_v52 = vadd.f32 %v6331_v50, %v4782_v43  ;;  %v4903_v4 = vpop.f32.mrb[95].mxu0  ;;  %6347 = vmatmul.mubr.msk.f32.gmra.mrb[100].mxu0 %vm806_vm10, %v4925_v12 }
0x1706   : > { %v9854_v44 = vadd.f32 %v4903_v4, %v4782_v43 }
0x1707   : > { %v4919_v54 = vmax.f32 %v9851_v52, 0.0 }
0x1708   : > { %v4918_v58 = vmax.f32 %v9854_v44, 0.0 }
0x1709   : > { %v4927_v62 = vadd.f32 %v4919_v54, %v9864_v13 }
0x170a   : > { %v4926_v53 = vadd.f32 %v4918_v58, %v9859_v36 }
0x170c   : > { %6349 = vmatprep.mubr.msk.f32.mxu0 %vm806_vm10, %v4926_v53 }
0x170d   : > { %6350 = vmatmul.mubr.msk.f32.gmra.mrb[102].mxu0 %vm806_vm10, %v4927_v62 }
0x17c8   : > { %v6342_v48 = vpop.f32.mrb[96].mxu0 }
0x17c9   : > { %v5033_v24 = vadd.f32 %v6342_v48, %v9750_v34  ;;  %v5027_v29 = vpop.f32.mrb[97].mxu0 }
0x17ca   : > { %v5028_v56 = vadd.f32 %v5027_v29, %v9750_v34 }
0x17cb   : > { %vm5067_vm12 = vcmp.ge.f32.partialorder %v5033_v24, 0.0  ;;  %v5075_v27 = vmul.f32 0.2, %v5033_v24 }
0x17cc   : > { %vm5066_vm15 = vcmp.ge.f32.partialorder %v5028_v56, 0.0  ;;  %v5074_v43 = vmul.f32 0.2, %v5028_v56 }
0x17cd   : > { %v5083_v42 = vsel %vm5067_vm12, %v5033_v24, %v5075_v27 }
0x17ce   : > { %v5095_v59 = vmul.f32 %v5092_v32, %v5083_v42  ;;  %v5082_v9 = vsel %vm5066_vm15, %v5028_v56, %v5074_v43 }
0x17cf   : > { %v5094_v18 = vmul.f32 %v5092_v32, %v5082_v9 }
0x17d0   : > { %v6345_v45 = vpop.f32.mrb[98].mxu0  ;;  %v5105_v63 = vsel %vm972_vm13, %v5095_v59, 0.0 }
0x17d1   : > { %v5043_v8 = vadd.f32 %v6345_v45, %v9750_v34  ;;  %5106 = vadd.xlane.f32.xlu0 %v5105_v63  ;;  %v5037_v55 = vpop.f32.mrb[99].mxu0  ;;  %v5102_v19 = vsel %vm972_vm13, %v5094_v18, 0.0  ;;  %v5238_v45 = vld [vmem:[%s9962_s3 + $0xb0] sm:$0xff]  ;;  %v5239_v63 = vld [vmem:[%s9962_s3 + $0xb8] sm:$0xff] }
0x17d2   : > { %v5038_v2 = vadd.f32 %v5037_v55, %v9750_v34  ;;  %5103 = vadd.xlane.f32.xlu1 %v5102_v19 }
0x17d3   : > { %vm5069_vm1 = vcmp.ge.f32.partialorder %v5043_v8, 0.0  ;;  %v5077_v49 = vmul.f32 0.2, %v5043_v8 }
0x17d4   : > { %vm5068_vm4 = vcmp.ge.f32.partialorder %v5038_v2, 0.0  ;;  %v5076_v1 = vmul.f32 0.2, %v5038_v2 }
0x17d5   : > { %v5085_v46 = vsel %vm5069_vm1, %v5043_v8, %v5077_v49  ;;  %v6600_v8 = vpack.c.bf16 %v5239_v63, %v5238_v45 }
0x17d6   : > { %v5097_v15 = vmul.f32 %v5092_v32, %v5085_v46  ;;  %v5084_v11 = vsel %vm5068_vm4, %v5038_v2, %v5076_v1 }
0x17d7   : > { %v5096_v17 = vmul.f32 %v5092_v32, %v5084_v11  ;;  %6601 = vmatprep.subr.bf16.mxu1 %v6600_v8 }
0x17d8   : > { %v6348_v22 = vpop.f32.mrb[100].mxu0  ;;  %v5111_v26 = vsel %vm972_vm13, %v5097_v15, 0.0  ;;  %6603 = vmatpush3.bf16.msra.mxu1 %v6600_v8 }
0x17d9   : > { %v5053_v37 = vadd.f32 %v6348_v22, %v9750_v34  ;;  %v5047_v21 = vpop.f32.mrb[101].mxu0  ;;  %5112 = vadd.xlane.f32.xlu1 %v5111_v26  ;;  %v5108_v25 = vsel %vm972_vm13, %v5096_v17, 0.0 }
0x17da   : > { %v5048_v10 = vadd.f32 %v5047_v21, %v9750_v34  ;;  %5109 = vadd.xlane.f32.xlu0 %v5108_v25 }
0x17db   : > { %vm5071_vm7 = vcmp.ge.f32.partialorder %v5053_v37, 0.0  ;;  %v5079_v47 = vmul.f32 0.2, %v5053_v37 }
0x17dc   : > { %vm5070_vm2 = vcmp.ge.f32.partialorder %v5048_v10, 0.0  ;;  %v5078_v12 = vmul.f32 0.2, %v5048_v10 }
0x17dd   : > { %v5087_v50 = vsel %vm5071_vm7, %v5053_v37, %v5079_v47 }
0x17de   : > { %v5099_v4 = vmul.f32 %v5092_v32, %v5087_v50  ;;  %v5086_v35 = vsel %vm5070_vm2, %v5048_v10, %v5078_v12 }
0x17df   : > { %v5098_v0 = vmul.f32 %v5092_v32, %v5086_v35 }
0x17e0   : > { %v6351_v23 = vpop.f32.mrb[102].mxu0  ;;  %v5117_v61 = vsel %vm972_vm13, %v5099_v4, 0.0 }
0x17e1   : > { %v5063_v53 = vadd.f32 %v6351_v23, %v9750_v34  ;;  %5118 = vadd.xlane.f32.xlu1 %v5117_v61  ;;  %v5057_v62 = vpop.f32.mrb[103].mxu0  ;;  %v5114_v48 = vsel %vm972_vm13, %v5098_v0, 0.0 }
0x17e2   : > { %v5058_v24 = vadd.f32 %v5057_v62, %v9750_v34  ;;  %5115 = vadd.xlane.f32.xlu0 %v5114_v48 }
0x17e3   : > { %vm5073_vm8 = vcmp.ge.f32.partialorder %v5063_v53, 0.0  ;;  %v5081_v29 = vmul.f32 0.2, %v5063_v53 }
0x17e4   : > { %vm5072_vm11 = vcmp.ge.f32.partialorder %v5058_v24, 0.0  ;;  %v5080_v56 = vmul.f32 0.2, %v5058_v24 }
0x17e5   : > { %v5089_v27 = vsel %vm5073_vm8, %v5063_v53, %v5081_v29 }
0x17e6   : > { %v5101_v43 = vmul.f32 %v5092_v32, %v5089_v27  ;;  %v5088_v42 = vsel %vm5072_vm11, %v5058_v24, %v5080_v56 }
0x17e7   : > { %v5100_v59 = vmul.f32 %v5092_v32, %v5088_v42 }
0x17e8   : > { %v5123_v9 = vsel %vm972_vm13, %v5101_v43, 0.0 }
0x17e9   : > { %5124 = vadd.xlane.f32.xlu1 %v5123_v9  ;;  %v5120_v18 = vsel %vm972_vm13, %v5100_v59, 0.0 }
0x17ea   : > { %5121 = vadd.xlane.f32.xlu0 %v5120_v18 }
0x185e   : > { %v5107_v55 = vpop.xlane.xlu0 %5106 }
0x185f   : > { %v5127_v32 = vadd.f32 %v5107_v55, %v9750_v34  ;;  %v5104_v19 = vpop.xlane.xlu1 %5103 }
0x1860   : > { %v5126_v2 = vadd.f32 %v5104_v19, %v9750_v34 }
0x1861   : > { %v5135_v49 = vsub.f32 0.0, %v5127_v32 }
0x1862   : > { %v5134_v1 = vsub.f32 0.0, %v5126_v2 }
0x1863   : > { %v5144_v46 = vmul.f32 1.442695, %v5135_v49 }
0x1864   : > { %v5142_v15 = vmul.f32 1.442695, %v5134_v1 }
0x1865   : > { %7101 = vpow2.f32 %v5144_v46  ;;  %v5241_v46 = vld [vmem:[%s9962_s3 + $0xc8] sm:$0xff] }
0x1866   : > { %7103 = vpow2.f32 %v5142_v15  ;;  %v5113_v11 = vpop.xlane.xlu1 %5112 }
0x1867   : > { %v5129_v17 = vadd.f32 %v5113_v11, %v9750_v34  ;;  %v5110_v22 = vpop.xlane.xlu0 %5109 }
0x1868   : > { %v5128_v26 = vadd.f32 %v5110_v22, %v9750_v34 }
0x1869   : > { %v5137_v37 = vsub.f32 0.0, %v5129_v17 }
0x186a   : > { %v5136_v21 = vsub.f32 0.0, %v5128_v26 }
0x186b   : > { %v5148_v25 = vmul.f32 1.442695, %v5137_v37 }
0x186c   : > { %v5146_v10 = vmul.f32 1.442695, %v5136_v21 }
0x186d   : > { %7105 = vpow2.f32 %v5148_v25 }
0x186e   : > { %7107 = vpow2.f32 %v5146_v10  ;;  %v5119_v47 = vpop.xlane.xlu1 %5118 }
0x186f   : > { %v7102_v12 = vpop.eup %7101  ;;  %v5131_v50 = vadd.f32 %v5119_v47, %v9750_v34  ;;  %v5116_v4 = vpop.xlane.xlu0 %5115 }
0x1870   : > { %v7104_v35 = vpop.eup %7103  ;;  %v5159_v0 = vadd.f32 1.0, %v7102_v12  ;;  %v5130_v23 = vadd.f32 %v5116_v4, %v9750_v34  ;;  %v10436_v4 = vld [vmem:[#allocation2_spill] sm:$0xff] }
0x1871   : > { %v5158_v61 = vadd.f32 1.0, %v7104_v35  ;;  %v5139_v53 = vsub.f32 0.0, %v5131_v50 }
0x1872   : > { %7109 = vrcp.f32 %v5159_v0  ;;  %v5138_v62 = vsub.f32 0.0, %v5130_v23 }
0x1873   : > { %7111 = vrcp.f32 %v5158_v61  ;;  %v5152_v48 = vmul.f32 1.442695, %v5139_v53 }
0x1874   : > { %v5150_v24 = vmul.f32 1.442695, %v5138_v62 }
0x1875   : > { %7113 = vpow2.f32 %v5152_v48 }
0x1876   : > { %7115 = vpow2.f32 %v5150_v24  ;;  %v5125_v29 = vpop.xlane.xlu1 %5124 }
0x1877   : > { %v7106_v56 = vpop.eup %7105  ;;  %v5133_v27 = vadd.f32 %v5125_v29, %v9750_v34  ;;  %v5122_v43 = vpop.xlane.xlu0 %5121 }
0x1878   : > { %v7108_v42 = vpop.eup %7107  ;;  %v5161_v59 = vadd.f32 1.0, %v7106_v56  ;;  %v5132_v9 = vadd.f32 %v5122_v43, %v9750_v34  ;;  %v5240_v34 = vld [vmem:[%s9962_s3 + $0xc0] sm:$0xff] }
0x1879   : > { %v5160_v18 = vadd.f32 1.0, %v7108_v42  ;;  %v5141_v45 = vsub.f32 0.0, %v5133_v27  ;;  %v6604_v11 = vpack.c.bf16 %v5241_v46, %v5240_v34 }
0x187a   : > { %7117 = vrcp.f32 %v5161_v59  ;;  %v5140_v63 = vsub.f32 0.0, %v5132_v9 }
0x187b   : > { %7119 = vrcp.f32 %v5160_v18  ;;  %v5156_v8 = vmul.f32 1.442695, %v5141_v45  ;;  %6605 = vmatprep.subr.bf16.mxu1 %v6604_v11 }
0x187c   : > { %v7110_v55 = vpop.eup %7109  ;;  %v5154_v32 = vmul.f32 1.442695, %v5140_v63  ;;  %6607 = vmatpush3.bf16.msra.mxu1 %v6604_v11 }
0x187d   : > { %v7112_v19 = vpop.eup %7111  ;;  %7121 = vpow2.f32 %v5156_v8  ;;  %5189 = vperm.xlu1 %6692, %v7110_v55  }
0x187e   : > { %7123 = vpow2.f32 %v5154_v32  ;;  %5184 = vperm.xlu0 %6691, %v7112_v19  }
0x187f   : > { %v7114_v2 = vpop.eup %7113 }
0x1880   : > { %v7116_v49 = vpop.eup %7115  ;;  %v5163_v1 = vadd.f32 1.0, %v7114_v2 }
0x1881   : > { %v5162_v15 = vadd.f32 1.0, %v7116_v49 }
0x1882   : > { %7125 = vrcp.f32 %v5163_v1 }
0x1883   : > { %7127 = vrcp.f32 %v5162_v15 }
0x1884   : > { %v7118_v17 = vpop.eup %7117 }
0x1885   : > { %v7120_v22 = vpop.eup %7119  ;;  %5199 = vperm.xlu0 %6691, %v7118_v17  }
0x1886   : > { %5194 = vperm.xlu1 %6692, %v7120_v22  }
0x1887   : > { %v7122_v26 = vpop.eup %7121 }
0x1888   : > { %v7124_v37 = vpop.eup %7123  ;;  %v5165_v21 = vadd.f32 1.0, %v7122_v26 }
0x1889   : > { %v5164_v25 = vadd.f32 1.0, %v7124_v37 }
0x188a   : > { %7129 = vrcp.f32 %v5165_v21 }
0x188b   : > { %7131 = vrcp.f32 %v5164_v25 }
0x188c   : > { %v7126_v10 = vpop.eup %7125 }
0x188d   : > { %v7128_v47 = vpop.eup %7127  ;;  %5209 = vperm.xlu0 %6691, %v7126_v10  }
0x188e   : > { %5204 = vperm.xlu1 %6692, %v7128_v47  }
0x1894   : > { %v7130_v12 = vpop.eup %7129 }
0x1895   : > { %v7132_v50 = vpop.eup %7131  ;;  %5219 = vperm.xlu0 %6691, %v7130_v12  }
0x1896   : > { %5214 = vperm.xlu1 %6692, %v7132_v50  }
0x189a   : > { %5242 = vrot.lane.b32.xlu1 %v10436_v4, %s7145_s26  ;;  %s5753_s26 = sshll.u32 %s10438_s22, 6 }
0x189b   : > { %s288_s8 = scalar_lea.vmem %s9965_s6, %s5753_s26 }
0x18fc   : > { %v5190_v35 = vpop.permute.xlu1 %5189 }
0x18fd   : > { %v5223_v0 = vmul.f32 %v5190_v35, %v4913_v31  ;;  %v5185_v23 = vpop.permute.xlu0 %5184 }
0x18fe   : > { %v5222_v61 = vmul.f32 %v5185_v23, %v4912_v16 }
0x18ff   : > { %v5231_v62 = vadd.f32 %v5223_v0, %v9798_v33 }
0x1900   : > { %v5230_v53 = vadd.f32 %v5222_v61, %v9793_v14 }
0x1902   : > { %6360 = vmatprep.mubr.msk.f32.mxu1 %vm806_vm10, %v5230_v53 }
0x1903   : > { %6361 = vmatmul.mubr.msk.f32.vlgmr.msra.gmra.mrb[104].mxu1 %vm806_vm10, %v5231_v62 }
0x1904   : > { %v5200_v48 = vpop.permute.xlu0 %5199 }
0x1905   : > { %v5225_v24 = vmul.f32 %v5200_v48, %v4915_v3  ;;  %v5195_v29 = vpop.permute.xlu1 %5194 }
0x1906   : > { %v5224_v41 = vmul.f32 %v5195_v29, %v4914_v39 }
0x1907   : > { %v5233_v6 = vadd.f32 %v5225_v24, %v9820_v28 }
0x1908   : > { %v5232_v31 = vadd.f32 %v5224_v41, %v9815_v7 }
0x190a   : > { %6363 = vmatprep.mubr.msk.f32.mxu1 %vm806_vm10, %v5232_v31 }
0x190b   : > { %6364 = vmatmul.mubr.msk.f32.gmra.mrb[106].mxu1 %vm806_vm10, %v5233_v6 }
0x190c   : > { %v5210_v14 = vpop.permute.xlu0 %5209 }
0x190d   : > { %v5227_v16 = vmul.f32 %v5210_v14, %v4917_v40  ;;  %v5205_v33 = vpop.permute.xlu1 %5204 }
0x190e   : > { %v5226_v30 = vmul.f32 %v5205_v33, %v4916_v38 }
0x190f   : > { %v5235_v3 = vadd.f32 %v5227_v16, %v9842_v60 }
0x1910   : > { %v5234_v20 = vadd.f32 %v5226_v30, %v9837_v51 }
0x1912   : > { %6366 = vmatprep.mubr.msk.f32.mxu1 %vm806_vm10, %v5234_v20 }
0x1913   : > { %6367 = vmatmul.mubr.msk.f32.gmra.mrb[108].mxu1 %vm806_vm10, %v5235_v3 }
0x1914   : > { %v5220_v7 = vpop.permute.xlu0 %5219 }
0x1915   : > { %v5229_v39 = vmul.f32 %v5220_v7, %v4919_v54  ;;  %v5215_v28 = vpop.permute.xlu1 %5214 }
0x1916   : > { %v5228_v5 = vmul.f32 %v5215_v28, %v4918_v58 }
0x1917   : > { %v5237_v57 = vadd.f32 %v5229_v39, %v9864_v13 }
0x1918   : > { %v5236_v40 = vadd.f32 %v5228_v5, %v9859_v36 }
0x1919   : > { %v5243_v51 = vpop.permute.xlu1 %5242 }
0x191a   : > { %6369 = vmatprep.mubr.msk.f32.mxu1 %vm806_vm10, %v5236_v40 }
0x191b   : > { %6370 = vmatmul.mubr.msk.f32.gmra.mrb[110].mxu1 %vm806_vm10, %v5237_v57 }
0x19d6   : > { %v6362_v38 = vpop.f32.mrb[104].mxu1 }
0x19d7   : > { %v5341_v60 = vadd.f32 %v6362_v38, %v5243_v51  ;;  %v5335_v52 = vpop.f32.mrb[105].mxu1 }
0x19d8   : > { %v5336_v54 = vadd.f32 %v5335_v52, %v5243_v51 }
0x19d9   : > { %5375 = vst.msk [vmem:[%s288_s8 + $0x8] sm:$0xff] %vm1114_vm5, %v5341_v60 }
0x19da   : > { %5374 = vst.msk [vmem:[%s288_s8] sm:$0xff] %vm1114_vm5, %v5336_v54 }
0x19de   : > { %v6365_v44 = vpop.f32.mrb[106].mxu1 }
0x19df   : > { %v5351_v36 = vadd.f32 %v6365_v44, %v5243_v51  ;;  %v5345_v58 = vpop.f32.mrb[107].mxu1 }
0x19e0   : > { %v5346_v13 = vadd.f32 %v5345_v58, %v5243_v51 }
0x19e1   : > { %5377 = vst.msk [vmem:[%s288_s8 + $0x18] sm:$0xff] %vm1114_vm5, %v5351_v36 }
0x19e2   : > { %5376 = vst.msk [vmem:[%s288_s8 + $0x10] sm:$0xff] %vm1114_vm5, %v5346_v13 }
0x19e6   : > { %v6368_v56 = vpop.f32.mrb[108].mxu1 }
0x19e7   : > { %v5361_v27 = vadd.f32 %v6368_v56, %v5243_v51  ;;  %v5355_v43 = vpop.f32.mrb[109].mxu1 }
0x19e8   : > { %v5356_v42 = vadd.f32 %v5355_v43, %v5243_v51 }
0x19e9   : > { %5379 = vst.msk [vmem:[%s288_s8 + $0x28] sm:$0xff] %vm1114_vm5, %v5361_v27 }
0x19ea   : > { %5378 = vst.msk [vmem:[%s288_s8 + $0x20] sm:$0xff] %vm1114_vm5, %v5356_v42 }
0x19ee   : > { %v6371_v59 = vpop.f32.mrb[110].mxu1 }
0x19ef   : > { %v5371_v9 = vadd.f32 %v6371_v59, %v5243_v51  ;;  %v5365_v18 = vpop.f32.mrb[111].mxu1 }
0x19f0   : > { %v5366_v45 = vadd.f32 %v5365_v18, %v5243_v51 }
0x19f1   : > { %5381 = vst.msk [vmem:[%s288_s8 + $0x38] sm:$0xff] %vm1114_vm5, %v5371_v9 }
0x19f2   : > { %5380 = vst.msk [vmem:[%s288_s8 + $0x30] sm:$0xff] %vm1114_vm5, %v5366_v45 }
0x19f3 PF: > { %s16_s21 = sadd.s32 1, %s7142_s21  }
0x19f4   : > { %p13_p4 = scmp.ge.s32.totalorder %s16_s21, 4  }
0x19f6   :  { %15 = sbr.rel (!%p13_p4) target bundleno = 1 (0x1), region = 83 }

</bundles_post_ra>
